<compile_context>
chip_gen: v7x
topology: tpu7x:2x2x1
jax: 0.10.0
libtpu: 0.0.40
codegen_flags: <defaults>
</compile_context>

<pallas_src>
import functools
import math

import jax
import jax.numpy as jnp
from jax.experimental import pallas as pl
from jax.experimental.pallas import tpu as pltpu


CFG = dict(vocab=100, max_pos=16, H=32, nH=4, I=64, L=2,
           max_len=8, hidden_layer=16, out_features=2)


# ----------------------------- fused Pallas kernel -----------------------------

def _layernorm(x, g, b, eps=1e-12):
    mean = jnp.mean(x, axis=-1, keepdims=True)
    var = jnp.mean((x - mean) ** 2, axis=-1, keepdims=True)
    return (x - mean) * jax.lax.rsqrt(var + eps) * g + b


def _bert_fused_kernel(x_ref, bias_ref,
                       ln0_g_ref, ln0_b_ref,
                       wq_ref, bq_ref, wk_ref, bk_ref, wv_ref, bv_ref,
                       wo_ref, bo_ref, ln1_g_ref, ln1_b_ref,
                       wi_ref, bi_ref, wf_ref, bf_ref, ln2_g_ref, ln2_b_ref,
                       w1_ref, b1_ref, w2_ref, b2_ref,
                       o_ref, *, B, S, H, nH, L, scale):
    f32 = jnp.float32
    x = x_ref[...].astype(f32)          # (B*S, H) summed embeddings
    bias = bias_ref[...].astype(f32)    # (B*S, B*S) additive attention bias

    # embedding LayerNorm
    x = _layernorm(x, ln0_g_ref[...], ln0_b_ref[...])

    for l in range(L):
        wq = wq_ref[l]; bq = bq_ref[l]      # (nH, H, Dh), (nH, 1, Dh)
        wk = wk_ref[l]; bk = bk_ref[l]
        wv = wv_ref[l]; bv = bv_ref[l]
        wo = wo_ref[l]                      # (nH, Dh, H)

        # multi-head self-attention; output projection folded into the head loop
        attn = jnp.zeros_like(x)            # (B*S, H)
        for h in range(nH):
            q = jnp.dot(x, wq[h], preferred_element_type=f32) + bq[h]   # (B*S, Dh)
            k = jnp.dot(x, wk[h], preferred_element_type=f32) + bk[h]
            v = jnp.dot(x, wv[h], preferred_element_type=f32) + bv[h]
            # scores over all B*S keys; bias masks padded and cross-batch keys
            s = jax.lax.dot_general(q, k, (((1,), (1,)), ((), ())),
                                    preferred_element_type=f32) * scale
            s = s + bias                                                # (B*S, B*S)
            m = jnp.max(s, axis=-1, keepdims=True)
            p = jnp.exp(s - m)
            p = p * pl.reciprocal(jnp.sum(p, axis=-1, keepdims=True), approx=True)
            ctx = jnp.dot(p, v, preferred_element_type=f32)             # (B*S, Dh)
            attn = attn + jnp.dot(ctx, wo[h], preferred_element_type=f32)
        attn = attn + bo_ref[l]
        x = _layernorm(attn + x, ln1_g_ref[l], ln1_b_ref[l])

        # feed-forward
        inter = jnp.dot(x, wi_ref[l], preferred_element_type=f32) + bi_ref[l]
        # TODO(synk): HF BERT uses erf-based GELU; tanh approximation used for safe Mosaic lowering.
        inter = jax.nn.gelu(inter, approximate=True)
        ffn = jnp.dot(inter, wf_ref[l], preferred_element_type=f32) + bf_ref[l]
        x = _layernorm(ffn + x, ln2_g_ref[l], ln2_b_ref[l])

    # classifier head: F.max_pool1d(hidden, H).squeeze(2) == max over hidden dim
    pooled = jnp.max(x.reshape(B, S, H), axis=-1)                        # (B, S)
    # dropout(p=0.1) is identity in eval mode
    hdn = jnp.dot(pooled, w1_ref[...], preferred_element_type=f32) + b1_ref[...]
    hdn = jnp.maximum(hdn, 0.0)                                          # relu(fc1(.))
    logits = jnp.dot(hdn, w2_ref[...], preferred_element_type=f32) + b2_ref[...]
    o_ref[...] = logits.astype(o_ref.dtype)                              # fc2(.)


# ----------------------------- parameters -----------------------------

def init_params(key, cfg=CFG):
    keys = iter(jax.random.split(key, 256))

    def n(shape, std=0.02):
        return jax.random.normal(next(keys), shape, jnp.float32) * std

    def u(shape, bound):
        return jax.random.uniform(next(keys), shape, jnp.float32, -bound, bound)

    H, I, L = cfg["H"], cfg["I"], cfg["L"]
    params = {
        "emb": {
            "word": n((cfg["vocab"], H)),
            "pos": n((cfg["max_pos"], H)),
            "type": n((2, H)),
            "ln_g": jnp.ones((H,), jnp.float32),
            "ln_b": jnp.zeros((H,), jnp.float32),
        },
        "layers": [],
    }
    for _ in range(L):
        params["layers"].append({
            "wq": n((H, H)), "bq": jnp.zeros((H,)),
            "wk": n((H, H)), "bk": jnp.zeros((H,)),
            "wv": n((H, H)), "bv": jnp.zeros((H,)),
            "wo": n((H, H)), "bo": jnp.zeros((H,)),
            "ln1_g": jnp.ones((H,)), "ln1_b": jnp.zeros((H,)),
            "wi": n((H, I)), "bi": jnp.zeros((I,)),
            "wf": n((I, H)), "bf": jnp.zeros((H,)),
            "ln2_g": jnp.ones((H,)), "ln2_b": jnp.zeros((H,)),
        })
    # classifier: fc1 / fc2 kaiming-normal weights (fan_in), torch-default biases
    ml, hl, of = cfg["max_len"], cfg["hidden_layer"], cfg["out_features"]
    params["fc1_w"] = n((ml, hl), std=math.sqrt(2.0 / ml))      # stored (in, out)
    params["fc1_b"] = u((hl,), 1.0 / math.sqrt(ml))
    params["fc2_w"] = n((hl, of), std=math.sqrt(2.0 / hl))
    params["fc2_b"] = u((of,), 1.0 / math.sqrt(hl))
    return params


def pack_params(params, cfg=CFG):
    """Repack into the fused-kernel layout: layer-stacked, per-head-split weights."""
    H, nH, L, I = cfg["H"], cfg["nH"], cfg["L"], cfg["I"]
    Dh = H // nH

    def stack(name):
        return jnp.stack([lp[name] for lp in params["layers"]])

    def per_head_in(w):        # (L, H, H)  -> (L, nH, H, Dh): column blocks per head
        return w.reshape(L, H, nH, Dh).transpose(0, 2, 1, 3)

    def per_head_bias(b):      # (L, H)     -> (L, nH, 1, Dh)
        return b.reshape(L, nH, 1, Dh)

    def per_head_out(w):       # (L, H, H)  -> (L, nH, Dh, H): row blocks per head
        return w.reshape(L, nH, Dh, H)

    emb = params["emb"]
    return {
        "word": emb["word"], "pos": emb["pos"], "type": emb["type"],
        "ln0_g": emb["ln_g"].reshape(1, H), "ln0_b": emb["ln_b"].reshape(1, H),
        "wq": per_head_in(stack("wq")), "bq": per_head_bias(stack("bq")),
        "wk": per_head_in(stack("wk")), "bk": per_head_bias(stack("bk")),
        "wv": per_head_in(stack("wv")), "bv": per_head_bias(stack("bv")),
        "wo": per_head_out(stack("wo")), "bo": stack("bo").reshape(L, 1, H),
        "ln1_g": stack("ln1_g").reshape(L, 1, H),
        "ln1_b": stack("ln1_b").reshape(L, 1, H),
        "wi": stack("wi"), "bi": stack("bi").reshape(L, 1, I),
        "wf": stack("wf"), "bf": stack("bf").reshape(L, 1, H),
        "ln2_g": stack("ln2_g").reshape(L, 1, H),
        "ln2_b": stack("ln2_b").reshape(L, 1, H),
        "fc1_w": params["fc1_w"], "fc1_b": params["fc1_b"].reshape(1, -1),
        "fc2_w": params["fc2_w"], "fc2_b": params["fc2_b"].reshape(1, -1),
    }


# ----------------------------- forward (glue + single pallas_call) -----------------------------

def _build_attn_bias(attention_mask, B, S):
    # bias[i, j] = 0 if query i and key j are in the same batch row AND key j is
    # not padding, else -10000 (matches BERT's additive key mask; the -10000
    # entries underflow to exactly 0 probability after softmax).
    batch_id = jnp.arange(B * S, dtype=jnp.int32) // S
    same_batch = batch_id[:, None] == batch_id[None, :]
    key_valid = attention_mask.reshape(-1) > 0
    allowed = jnp.logical_and(same_batch, key_valid[None, :])
    return jnp.where(allowed, 0.0, -10000.0).astype(jnp.float32)


def forward(packed, input_ids, attention_mask, cfg=CFG):
    B, S = input_ids.shape
    H, nH, L = cfg["H"], cfg["nH"], cfg["L"]
    Dh = H // nH

    # Embedding gather stays in XLA glue (data-dependent gather); everything
    # after it is a single fused Pallas kernel.
    x_emb = (jnp.take(packed["word"], input_ids, axis=0)
             + packed["pos"][None, :S, :]
             + packed["type"][0][None, None, :])                # token_type_ids == 0
    x_emb = x_emb.reshape(B * S, H)
    bias = _build_attn_bias(attention_mask, B, S)

    inputs = [x_emb, bias,
              packed["ln0_g"], packed["ln0_b"],
              packed["wq"], packed["bq"], packed["wk"], packed["bk"],
              packed["wv"], packed["bv"], packed["wo"], packed["bo"],
              packed["ln1_g"], packed["ln1_b"],
              packed["wi"], packed["bi"], packed["wf"], packed["bf"],
              packed["ln2_g"], packed["ln2_b"],
              packed["fc1_w"], packed["fc1_b"], packed["fc2_w"], packed["fc2_b"]]

    out_f = packed["fc2_w"].shape[1]
    kernel = functools.partial(_bert_fused_kernel, B=B, S=S, H=H, nH=nH, L=L,
                               scale=1.0 / math.sqrt(Dh))
    return pl.pallas_call(
        kernel,
        out_shape=jax.ShapeDtypeStruct((B, out_f), jnp.float32),
        in_specs=[pl.BlockSpec(memory_space=pltpu.MemorySpace.VMEM)] * len(inputs),
        out_specs=pl.BlockSpec(memory_space=pltpu.MemorySpace.VMEM),
    )(*inputs)


if __name__ == "__main__":
    key = jax.random.PRNGKey(0)
    kp, kid = jax.random.split(key)

    params = init_params(kp)
    packed = pack_params(params)

    B, S = 2, CFG["max_len"]
    input_ids = jax.random.randint(kid, (B, S), 0, CFG["vocab"], dtype=jnp.int32)
    attention_mask = jnp.array([[1, 1, 1, 1, 1, 1, 1, 1],
                                [1, 1, 1, 1, 1, 0, 0, 0]], dtype=jnp.int32)

    logits = jax.jit(forward)(packed, input_ids, attention_mask)
    jax.block_until_ready(logits)
    assert logits.shape == (B, CFG["out_features"])
    assert bool(jnp.all(jnp.isfinite(logits)))
    print("KERNEL_OK")
</pallas_src>

<mosaic_0001>
module attributes {stable_mosaic.version = 11 : i64} {
  func.func @_bert_fused_kernel(%arg0: memref<16x32xf32, #tpu.memory_space<vmem>>, %arg1: memref<16x16xf32, #tpu.memory_space<vmem>>, %arg2: memref<1x32xf32, #tpu.memory_space<vmem>>, %arg3: memref<1x32xf32, #tpu.memory_space<vmem>>, %arg4: memref<2x4x32x8xf32, #tpu.memory_space<vmem>>, %arg5: memref<2x4x1x8xf32, #tpu.memory_space<vmem>>, %arg6: memref<2x4x32x8xf32, #tpu.memory_space<vmem>>, %arg7: memref<2x4x1x8xf32, #tpu.memory_space<vmem>>, %arg8: memref<2x4x32x8xf32, #tpu.memory_space<vmem>>, %arg9: memref<2x4x1x8xf32, #tpu.memory_space<vmem>>, %arg10: memref<2x4x8x32xf32, #tpu.memory_space<vmem>>, %arg11: memref<2x1x32xf32, #tpu.memory_space<vmem>>, %arg12: memref<2x1x32xf32, #tpu.memory_space<vmem>>, %arg13: memref<2x1x32xf32, #tpu.memory_space<vmem>>, %arg14: memref<2x32x64xf32, #tpu.memory_space<vmem>>, %arg15: memref<2x1x64xf32, #tpu.memory_space<vmem>>, %arg16: memref<2x64x32xf32, #tpu.memory_space<vmem>>, %arg17: memref<2x1x32xf32, #tpu.memory_space<vmem>>, %arg18: memref<2x1x32xf32, #tpu.memory_space<vmem>>, %arg19: memref<2x1x32xf32, #tpu.memory_space<vmem>>, %arg20: memref<8x16xf32, #tpu.memory_space<vmem>>, %arg21: memref<1x16xf32, #tpu.memory_space<vmem>>, %arg22: memref<16x2xf32, #tpu.memory_space<vmem>>, %arg23: memref<1x2xf32, #tpu.memory_space<vmem>>, %arg24: memref<2x2xf32, #tpu.memory_space<vmem>>) attributes {dimension_semantics = [], scalar_prefetch = 0 : i64, scratch_operands = 0 : i64, tpu.core_type = #tpu.core_type<tc>} {
    %c0 = arith.constant 0 : index
    %c0_0 = arith.constant 0 : index
    %0 = vector.load %arg0[%c0, %c0_0] : memref<16x32xf32, #tpu.memory_space<vmem>>, vector<16x32xf32>
    %c0_1 = arith.constant 0 : index
    %c0_2 = arith.constant 0 : index
    %1 = vector.load %arg1[%c0_1, %c0_2] : memref<16x16xf32, #tpu.memory_space<vmem>>, vector<16x16xf32>
    %c0_3 = arith.constant 0 : index
    %c0_4 = arith.constant 0 : index
    %2 = vector.load %arg2[%c0_3, %c0_4] : memref<1x32xf32, #tpu.memory_space<vmem>>, vector<1x32xf32>
    %c0_5 = arith.constant 0 : index
    %c0_6 = arith.constant 0 : index
    %3 = vector.load %arg3[%c0_5, %c0_6] : memref<1x32xf32, #tpu.memory_space<vmem>>, vector<1x32xf32>
    %cst = arith.constant dense<0.000000e+00> : vector<16xf32>
    %4 = vector.multi_reduction <add>, %0, %cst [1] : vector<16x32xf32> to vector<16xf32>
    %5 = vector.shape_cast %4 : vector<16xf32> to vector<16x1xf32>
    %cst_7 = arith.constant 3.200000e+01 : f32
    %6 = vector.broadcast %cst_7 : f32 to vector<16x1xf32>
    %7 = arith.divf %5, %6 : vector<16x1xf32>
    %8 = vector.broadcast %7 : vector<16x1xf32> to vector<16x32xf32>
    %9 = arith.subf %0, %8 : vector<16x32xf32>
    %10 = arith.mulf %9, %9 : vector<16x32xf32>
    %cst_8 = arith.constant dense<0.000000e+00> : vector<16xf32>
    %11 = vector.multi_reduction <add>, %10, %cst_8 [1] : vector<16x32xf32> to vector<16xf32>
    %12 = vector.shape_cast %11 : vector<16xf32> to vector<16x1xf32>
    %cst_9 = arith.constant 3.200000e+01 : f32
    %13 = vector.broadcast %cst_9 : f32 to vector<16x1xf32>
    %14 = arith.divf %12, %13 : vector<16x1xf32>
    %15 = vector.broadcast %7 : vector<16x1xf32> to vector<16x32xf32>
    %16 = arith.subf %0, %15 : vector<16x32xf32>
    %cst_10 = arith.constant 9.99999996E-13 : f32
    %17 = vector.broadcast %cst_10 : f32 to vector<16x1xf32>
    %18 = arith.addf %14, %17 : vector<16x1xf32>
    %19 = math.rsqrt %18 : vector<16x1xf32>
    %20 = vector.broadcast %19 : vector<16x1xf32> to vector<16x32xf32>
    %21 = arith.mulf %16, %20 : vector<16x32xf32>
    %22 = vector.broadcast %2 : vector<1x32xf32> to vector<16x32xf32>
    %23 = arith.mulf %21, %22 : vector<16x32xf32>
    %24 = vector.broadcast %3 : vector<1x32xf32> to vector<16x32xf32>
    %25 = arith.addf %23, %24 : vector<16x32xf32>
    %c0_11 = arith.constant 0 : index
    %c0_12 = arith.constant 0 : index
    %c0_13 = arith.constant 0 : index
    %c0_14 = arith.constant 0 : index
    %26 = vector.load %arg4[%c0_11, %c0_12, %c0_13, %c0_14] : memref<2x4x32x8xf32, #tpu.memory_space<vmem>>, vector<1x4x32x8xf32>
    %27 = vector.shape_cast %26 : vector<1x4x32x8xf32> to vector<4x32x8xf32>
    %c0_15 = arith.constant 0 : index
    %c0_16 = arith.constant 0 : index
    %c0_17 = arith.constant 0 : index
    %c0_18 = arith.constant 0 : index
    %28 = vector.load %arg5[%c0_15, %c0_16, %c0_17, %c0_18] : memref<2x4x1x8xf32, #tpu.memory_space<vmem>>, vector<1x4x1x8xf32>
    %29 = vector.shape_cast %28 : vector<1x4x1x8xf32> to vector<4x1x8xf32>
    %c0_19 = arith.constant 0 : index
    %c0_20 = arith.constant 0 : index
    %c0_21 = arith.constant 0 : index
    %c0_22 = arith.constant 0 : index
    %30 = vector.load %arg6[%c0_19, %c0_20, %c0_21, %c0_22] : memref<2x4x32x8xf32, #tpu.memory_space<vmem>>, vector<1x4x32x8xf32>
    %31 = vector.shape_cast %30 : vector<1x4x32x8xf32> to vector<4x32x8xf32>
    %c0_23 = arith.constant 0 : index
    %c0_24 = arith.constant 0 : index
    %c0_25 = arith.constant 0 : index
    %c0_26 = arith.constant 0 : index
    %32 = vector.load %arg7[%c0_23, %c0_24, %c0_25, %c0_26] : memref<2x4x1x8xf32, #tpu.memory_space<vmem>>, vector<1x4x1x8xf32>
    %33 = vector.shape_cast %32 : vector<1x4x1x8xf32> to vector<4x1x8xf32>
    %c0_27 = arith.constant 0 : index
    %c0_28 = arith.constant 0 : index
    %c0_29 = arith.constant 0 : index
    %c0_30 = arith.constant 0 : index
    %34 = vector.load %arg8[%c0_27, %c0_28, %c0_29, %c0_30] : memref<2x4x32x8xf32, #tpu.memory_space<vmem>>, vector<1x4x32x8xf32>
    %35 = vector.shape_cast %34 : vector<1x4x32x8xf32> to vector<4x32x8xf32>
    %c0_31 = arith.constant 0 : index
    %c0_32 = arith.constant 0 : index
    %c0_33 = arith.constant 0 : index
    %c0_34 = arith.constant 0 : index
    %36 = vector.load %arg9[%c0_31, %c0_32, %c0_33, %c0_34] : memref<2x4x1x8xf32, #tpu.memory_space<vmem>>, vector<1x4x1x8xf32>
    %37 = vector.shape_cast %36 : vector<1x4x1x8xf32> to vector<4x1x8xf32>
    %c0_35 = arith.constant 0 : index
    %c0_36 = arith.constant 0 : index
    %c0_37 = arith.constant 0 : index
    %c0_38 = arith.constant 0 : index
    %38 = vector.load %arg10[%c0_35, %c0_36, %c0_37, %c0_38] : memref<2x4x8x32xf32, #tpu.memory_space<vmem>>, vector<1x4x8x32xf32>
    %39 = vector.shape_cast %38 : vector<1x4x8x32xf32> to vector<4x8x32xf32>
    %cst_39 = arith.constant 0.000000e+00 : f32
    %40 = vector.broadcast %cst_39 : f32 to vector<16x32xf32>
    %41 = vector.extract_strided_slice %27 {offsets = [0, 0, 0], sizes = [1, 32, 8], strides = [1, 1, 1]} : vector<4x32x8xf32> to vector<1x32x8xf32>
    %42 = vector.shape_cast %41 : vector<1x32x8xf32> to vector<32x8xf32>
    %cst_40 = arith.constant dense<0.000000e+00> : vector<16x8xf32>
    %43 = tpu.matmul %25, %42, %cst_40 {dimension_numbers = #tpu.dot_dimension_numbers<[1], [0], [0], [1], [0, 0, 1, 1], [], []>} : vector<16x32xf32>, vector<32x8xf32>, vector<16x8xf32> -> vector<16x8xf32>
    %44 = vector.extract_strided_slice %29 {offsets = [0, 0, 0], sizes = [1, 1, 8], strides = [1, 1, 1]} : vector<4x1x8xf32> to vector<1x1x8xf32>
    %45 = vector.shape_cast %44 : vector<1x1x8xf32> to vector<1x8xf32>
    %46 = vector.broadcast %45 : vector<1x8xf32> to vector<16x8xf32>
    %47 = arith.addf %43, %46 : vector<16x8xf32>
    %48 = vector.extract_strided_slice %31 {offsets = [0, 0, 0], sizes = [1, 32, 8], strides = [1, 1, 1]} : vector<4x32x8xf32> to vector<1x32x8xf32>
    %49 = vector.shape_cast %48 : vector<1x32x8xf32> to vector<32x8xf32>
    %cst_41 = arith.constant dense<0.000000e+00> : vector<16x8xf32>
    %50 = tpu.matmul %25, %49, %cst_41 {dimension_numbers = #tpu.dot_dimension_numbers<[1], [0], [0], [1], [0, 0, 1, 1], [], []>} : vector<16x32xf32>, vector<32x8xf32>, vector<16x8xf32> -> vector<16x8xf32>
    %51 = vector.extract_strided_slice %33 {offsets = [0, 0, 0], sizes = [1, 1, 8], strides = [1, 1, 1]} : vector<4x1x8xf32> to vector<1x1x8xf32>
    %52 = vector.shape_cast %51 : vector<1x1x8xf32> to vector<1x8xf32>
    %53 = vector.broadcast %52 : vector<1x8xf32> to vector<16x8xf32>
    %54 = arith.addf %50, %53 : vector<16x8xf32>
    %55 = vector.extract_strided_slice %35 {offsets = [0, 0, 0], sizes = [1, 32, 8], strides = [1, 1, 1]} : vector<4x32x8xf32> to vector<1x32x8xf32>
    %56 = vector.shape_cast %55 : vector<1x32x8xf32> to vector<32x8xf32>
    %cst_42 = arith.constant dense<0.000000e+00> : vector<16x8xf32>
    %57 = tpu.matmul %25, %56, %cst_42 {dimension_numbers = #tpu.dot_dimension_numbers<[1], [0], [0], [1], [0, 0, 1, 1], [], []>} : vector<16x32xf32>, vector<32x8xf32>, vector<16x8xf32> -> vector<16x8xf32>
    %58 = vector.extract_strided_slice %37 {offsets = [0, 0, 0], sizes = [1, 1, 8], strides = [1, 1, 1]} : vector<4x1x8xf32> to vector<1x1x8xf32>
    %59 = vector.shape_cast %58 : vector<1x1x8xf32> to vector<1x8xf32>
    %60 = vector.broadcast %59 : vector<1x8xf32> to vector<16x8xf32>
    %61 = arith.addf %57, %60 : vector<16x8xf32>
    %cst_43 = arith.constant dense<0.000000e+00> : vector<16x16xf32>
    %62 = tpu.matmul %47, %54, %cst_43 {dimension_numbers = #tpu.dot_dimension_numbers<[1], [1], [0], [0], [0, 0, 1, 0], [], []>} : vector<16x8xf32>, vector<16x8xf32>, vector<16x16xf32> -> vector<16x16xf32>
    %cst_44 = arith.constant 0.353553385 : f32
    %63 = vector.broadcast %cst_44 : f32 to vector<16x16xf32>
    %64 = arith.mulf %62, %63 : vector<16x16xf32>
    %65 = arith.addf %64, %1 : vector<16x16xf32>
    %cst_45 = arith.constant dense<0xFF800000> : vector<16xf32>
    %66 = vector.multi_reduction <maximumf>, %65, %cst_45 [1] : vector<16x16xf32> to vector<16xf32>
    %67 = vector.shape_cast %66 : vector<16xf32> to vector<16x1xf32>
    %68 = vector.broadcast %67 : vector<16x1xf32> to vector<16x16xf32>
    %69 = arith.subf %65, %68 : vector<16x16xf32>
    %70 = math.exp %69 : vector<16x16xf32>
    %cst_46 = arith.constant dense<0.000000e+00> : vector<16xf32>
    %71 = vector.multi_reduction <add>, %70, %cst_46 [1] : vector<16x16xf32> to vector<16xf32>
    %72 = vector.shape_cast %71 : vector<16xf32> to vector<16x1xf32>
    %73 = tpu.reciprocal %72 {approx = true} : vector<16x1xf32> -> vector<16x1xf32>
    %74 = vector.broadcast %73 : vector<16x1xf32> to vector<16x16xf32>
    %75 = arith.mulf %70, %74 : vector<16x16xf32>
    %cst_47 = arith.constant dense<0.000000e+00> : vector<16x8xf32>
    %76 = tpu.matmul %75, %61, %cst_47 {dimension_numbers = #tpu.dot_dimension_numbers<[1], [0], [0], [1], [0, 0, 1, 1], [], []>} : vector<16x16xf32>, vector<16x8xf32>, vector<16x8xf32> -> vector<16x8xf32>
    %77 = vector.extract_strided_slice %39 {offsets = [0, 0, 0], sizes = [1, 8, 32], strides = [1, 1, 1]} : vector<4x8x32xf32> to vector<1x8x32xf32>
    %78 = vector.shape_cast %77 : vector<1x8x32xf32> to vector<8x32xf32>
    %cst_48 = arith.constant dense<0.000000e+00> : vector<16x32xf32>
    %79 = tpu.matmul %76, %78, %cst_48 {dimension_numbers = #tpu.dot_dimension_numbers<[1], [0], [0], [1], [0, 0, 1, 1], [], []>} : vector<16x8xf32>, vector<8x32xf32>, vector<16x32xf32> -> vector<16x32xf32>
    %80 = arith.addf %40, %79 : vector<16x32xf32>
    %81 = vector.extract_strided_slice %27 {offsets = [1, 0, 0], sizes = [1, 32, 8], strides = [1, 1, 1]} : vector<4x32x8xf32> to vector<1x32x8xf32>
    %82 = vector.shape_cast %81 : vector<1x32x8xf32> to vector<32x8xf32>
    %cst_49 = arith.constant dense<0.000000e+00> : vector<16x8xf32>
    %83 = tpu.matmul %25, %82, %cst_49 {dimension_numbers = #tpu.dot_dimension_numbers<[1], [0], [0], [1], [0, 0, 1, 1], [], []>} : vector<16x32xf32>, vector<32x8xf32>, vector<16x8xf32> -> vector<16x8xf32>
    %84 = vector.extract_strided_slice %29 {offsets = [1, 0, 0], sizes = [1, 1, 8], strides = [1, 1, 1]} : vector<4x1x8xf32> to vector<1x1x8xf32>
    %85 = vector.shape_cast %84 : vector<1x1x8xf32> to vector<1x8xf32>
    %86 = vector.broadcast %85 : vector<1x8xf32> to vector<16x8xf32>
    %87 = arith.addf %83, %86 : vector<16x8xf32>
    %88 = vector.extract_strided_slice %31 {offsets = [1, 0, 0], sizes = [1, 32, 8], strides = [1, 1, 1]} : vector<4x32x8xf32> to vector<1x32x8xf32>
    %89 = vector.shape_cast %88 : vector<1x32x8xf32> to vector<32x8xf32>
    %cst_50 = arith.constant dense<0.000000e+00> : vector<16x8xf32>
    %90 = tpu.matmul %25, %89, %cst_50 {dimension_numbers = #tpu.dot_dimension_numbers<[1], [0], [0], [1], [0, 0, 1, 1], [], []>} : vector<16x32xf32>, vector<32x8xf32>, vector<16x8xf32> -> vector<16x8xf32>
    %91 = vector.extract_strided_slice %33 {offsets = [1, 0, 0], sizes = [1, 1, 8], strides = [1, 1, 1]} : vector<4x1x8xf32> to vector<1x1x8xf32>
    %92 = vector.shape_cast %91 : vector<1x1x8xf32> to vector<1x8xf32>
    %93 = vector.broadcast %92 : vector<1x8xf32> to vector<16x8xf32>
    %94 = arith.addf %90, %93 : vector<16x8xf32>
    %95 = vector.extract_strided_slice %35 {offsets = [1, 0, 0], sizes = [1, 32, 8], strides = [1, 1, 1]} : vector<4x32x8xf32> to vector<1x32x8xf32>
    %96 = vector.shape_cast %95 : vector<1x32x8xf32> to vector<32x8xf32>
    %cst_51 = arith.constant dense<0.000000e+00> : vector<16x8xf32>
    %97 = tpu.matmul %25, %96, %cst_51 {dimension_numbers = #tpu.dot_dimension_numbers<[1], [0], [0], [1], [0, 0, 1, 1], [], []>} : vector<16x32xf32>, vector<32x8xf32>, vector<16x8xf32> -> vector<16x8xf32>
    %98 = vector.extract_strided_slice %37 {offsets = [1, 0, 0], sizes = [1, 1, 8], strides = [1, 1, 1]} : vector<4x1x8xf32> to vector<1x1x8xf32>
    %99 = vector.shape_cast %98 : vector<1x1x8xf32> to vector<1x8xf32>
    %100 = vector.broadcast %99 : vector<1x8xf32> to vector<16x8xf32>
    %101 = arith.addf %97, %100 : vector<16x8xf32>
    %cst_52 = arith.constant dense<0.000000e+00> : vector<16x16xf32>
    %102 = tpu.matmul %87, %94, %cst_52 {dimension_numbers = #tpu.dot_dimension_numbers<[1], [1], [0], [0], [0, 0, 1, 0], [], []>} : vector<16x8xf32>, vector<16x8xf32>, vector<16x16xf32> -> vector<16x16xf32>
    %cst_53 = arith.constant 0.353553385 : f32
    %103 = vector.broadcast %cst_53 : f32 to vector<16x16xf32>
    %104 = arith.mulf %102, %103 : vector<16x16xf32>
    %105 = arith.addf %104, %1 : vector<16x16xf32>
    %cst_54 = arith.constant dense<0xFF800000> : vector<16xf32>
    %106 = vector.multi_reduction <maximumf>, %105, %cst_54 [1] : vector<16x16xf32> to vector<16xf32>
    %107 = vector.shape_cast %106 : vector<16xf32> to vector<16x1xf32>
    %108 = vector.broadcast %107 : vector<16x1xf32> to vector<16x16xf32>
    %109 = arith.subf %105, %108 : vector<16x16xf32>
    %110 = math.exp %109 : vector<16x16xf32>
    %cst_55 = arith.constant dense<0.000000e+00> : vector<16xf32>
    %111 = vector.multi_reduction <add>, %110, %cst_55 [1] : vector<16x16xf32> to vector<16xf32>
    %112 = vector.shape_cast %111 : vector<16xf32> to vector<16x1xf32>
    %113 = tpu.reciprocal %112 {approx = true} : vector<16x1xf32> -> vector<16x1xf32>
    %114 = vector.broadcast %113 : vector<16x1xf32> to vector<16x16xf32>
    %115 = arith.mulf %110, %114 : vector<16x16xf32>
    %cst_56 = arith.constant dense<0.000000e+00> : vector<16x8xf32>
    %116 = tpu.matmul %115, %101, %cst_56 {dimension_numbers = #tpu.dot_dimension_numbers<[1], [0], [0], [1], [0, 0, 1, 1], [], []>} : vector<16x16xf32>, vector<16x8xf32>, vector<16x8xf32> -> vector<16x8xf32>
    %117 = vector.extract_strided_slice %39 {offsets = [1, 0, 0], sizes = [1, 8, 32], strides = [1, 1, 1]} : vector<4x8x32xf32> to vector<1x8x32xf32>
    %118 = vector.shape_cast %117 : vector<1x8x32xf32> to vector<8x32xf32>
    %cst_57 = arith.constant dense<0.000000e+00> : vector<16x32xf32>
    %119 = tpu.matmul %116, %118, %cst_57 {dimension_numbers = #tpu.dot_dimension_numbers<[1], [0], [0], [1], [0, 0, 1, 1], [], []>} : vector<16x8xf32>, vector<8x32xf32>, vector<16x32xf32> -> vector<16x32xf32>
    %120 = arith.addf %80, %119 : vector<16x32xf32>
    %121 = vector.extract_strided_slice %27 {offsets = [2, 0, 0], sizes = [1, 32, 8], strides = [1, 1, 1]} : vector<4x32x8xf32> to vector<1x32x8xf32>
    %122 = vector.shape_cast %121 : vector<1x32x8xf32> to vector<32x8xf32>
    %cst_58 = arith.constant dense<0.000000e+00> : vector<16x8xf32>
    %123 = tpu.matmul %25, %122, %cst_58 {dimension_numbers = #tpu.dot_dimension_numbers<[1], [0], [0], [1], [0, 0, 1, 1], [], []>} : vector<16x32xf32>, vector<32x8xf32>, vector<16x8xf32> -> vector<16x8xf32>
    %124 = vector.extract_strided_slice %29 {offsets = [2, 0, 0], sizes = [1, 1, 8], strides = [1, 1, 1]} : vector<4x1x8xf32> to vector<1x1x8xf32>
    %125 = vector.shape_cast %124 : vector<1x1x8xf32> to vector<1x8xf32>
    %126 = vector.broadcast %125 : vector<1x8xf32> to vector<16x8xf32>
    %127 = arith.addf %123, %126 : vector<16x8xf32>
    %128 = vector.extract_strided_slice %31 {offsets = [2, 0, 0], sizes = [1, 32, 8], strides = [1, 1, 1]} : vector<4x32x8xf32> to vector<1x32x8xf32>
    %129 = vector.shape_cast %128 : vector<1x32x8xf32> to vector<32x8xf32>
    %cst_59 = arith.constant dense<0.000000e+00> : vector<16x8xf32>
    %130 = tpu.matmul %25, %129, %cst_59 {dimension_numbers = #tpu.dot_dimension_numbers<[1], [0], [0], [1], [0, 0, 1, 1], [], []>} : vector<16x32xf32>, vector<32x8xf32>, vector<16x8xf32> -> vector<16x8xf32>
    %131 = vector.extract_strided_slice %33 {offsets = [2, 0, 0], sizes = [1, 1, 8], strides = [1, 1, 1]} : vector<4x1x8xf32> to vector<1x1x8xf32>
    %132 = vector.shape_cast %131 : vector<1x1x8xf32> to vector<1x8xf32>
    %133 = vector.broadcast %132 : vector<1x8xf32> to vector<16x8xf32>
    %134 = arith.addf %130, %133 : vector<16x8xf32>
    %135 = vector.extract_strided_slice %35 {offsets = [2, 0, 0], sizes = [1, 32, 8], strides = [1, 1, 1]} : vector<4x32x8xf32> to vector<1x32x8xf32>
    %136 = vector.shape_cast %135 : vector<1x32x8xf32> to vector<32x8xf32>
    %cst_60 = arith.constant dense<0.000000e+00> : vector<16x8xf32>
    %137 = tpu.matmul %25, %136, %cst_60 {dimension_numbers = #tpu.dot_dimension_numbers<[1], [0], [0], [1], [0, 0, 1, 1], [], []>} : vector<16x32xf32>, vector<32x8xf32>, vector<16x8xf32> -> vector<16x8xf32>
    %138 = vector.extract_strided_slice %37 {offsets = [2, 0, 0], sizes = [1, 1, 8], strides = [1, 1, 1]} : vector<4x1x8xf32> to vector<1x1x8xf32>
    %139 = vector.shape_cast %138 : vector<1x1x8xf32> to vector<1x8xf32>
    %140 = vector.broadcast %139 : vector<1x8xf32> to vector<16x8xf32>
    %141 = arith.addf %137, %140 : vector<16x8xf32>
    %cst_61 = arith.constant dense<0.000000e+00> : vector<16x16xf32>
    %142 = tpu.matmul %127, %134, %cst_61 {dimension_numbers = #tpu.dot_dimension_numbers<[1], [1], [0], [0], [0, 0, 1, 0], [], []>} : vector<16x8xf32>, vector<16x8xf32>, vector<16x16xf32> -> vector<16x16xf32>
    %cst_62 = arith.constant 0.353553385 : f32
    %143 = vector.broadcast %cst_62 : f32 to vector<16x16xf32>
    %144 = arith.mulf %142, %143 : vector<16x16xf32>
    %145 = arith.addf %144, %1 : vector<16x16xf32>
    %cst_63 = arith.constant dense<0xFF800000> : vector<16xf32>
    %146 = vector.multi_reduction <maximumf>, %145, %cst_63 [1] : vector<16x16xf32> to vector<16xf32>
    %147 = vector.shape_cast %146 : vector<16xf32> to vector<16x1xf32>
    %148 = vector.broadcast %147 : vector<16x1xf32> to vector<16x16xf32>
    %149 = arith.subf %145, %148 : vector<16x16xf32>
    %150 = math.exp %149 : vector<16x16xf32>
    %cst_64 = arith.constant dense<0.000000e+00> : vector<16xf32>
    %151 = vector.multi_reduction <add>, %150, %cst_64 [1] : vector<16x16xf32> to vector<16xf32>
    %152 = vector.shape_cast %151 : vector<16xf32> to vector<16x1xf32>
    %153 = tpu.reciprocal %152 {approx = true} : vector<16x1xf32> -> vector<16x1xf32>
    %154 = vector.broadcast %153 : vector<16x1xf32> to vector<16x16xf32>
    %155 = arith.mulf %150, %154 : vector<16x16xf32>
    %cst_65 = arith.constant dense<0.000000e+00> : vector<16x8xf32>
    %156 = tpu.matmul %155, %141, %cst_65 {dimension_numbers = #tpu.dot_dimension_numbers<[1], [0], [0], [1], [0, 0, 1, 1], [], []>} : vector<16x16xf32>, vector<16x8xf32>, vector<16x8xf32> -> vector<16x8xf32>
    %157 = vector.extract_strided_slice %39 {offsets = [2, 0, 0], sizes = [1, 8, 32], strides = [1, 1, 1]} : vector<4x8x32xf32> to vector<1x8x32xf32>
    %158 = vector.shape_cast %157 : vector<1x8x32xf32> to vector<8x32xf32>
    %cst_66 = arith.constant dense<0.000000e+00> : vector<16x32xf32>
    %159 = tpu.matmul %156, %158, %cst_66 {dimension_numbers = #tpu.dot_dimension_numbers<[1], [0], [0], [1], [0, 0, 1, 1], [], []>} : vector<16x8xf32>, vector<8x32xf32>, vector<16x32xf32> -> vector<16x32xf32>
    %160 = arith.addf %120, %159 : vector<16x32xf32>
    %161 = vector.extract_strided_slice %27 {offsets = [3, 0, 0], sizes = [1, 32, 8], strides = [1, 1, 1]} : vector<4x32x8xf32> to vector<1x32x8xf32>
    %162 = vector.shape_cast %161 : vector<1x32x8xf32> to vector<32x8xf32>
    %cst_67 = arith.constant dense<0.000000e+00> : vector<16x8xf32>
    %163 = tpu.matmul %25, %162, %cst_67 {dimension_numbers = #tpu.dot_dimension_numbers<[1], [0], [0], [1], [0, 0, 1, 1], [], []>} : vector<16x32xf32>, vector<32x8xf32>, vector<16x8xf32> -> vector<16x8xf32>
    %164 = vector.extract_strided_slice %29 {offsets = [3, 0, 0], sizes = [1, 1, 8], strides = [1, 1, 1]} : vector<4x1x8xf32> to vector<1x1x8xf32>
    %165 = vector.shape_cast %164 : vector<1x1x8xf32> to vector<1x8xf32>
    %166 = vector.broadcast %165 : vector<1x8xf32> to vector<16x8xf32>
    %167 = arith.addf %163, %166 : vector<16x8xf32>
    %168 = vector.extract_strided_slice %31 {offsets = [3, 0, 0], sizes = [1, 32, 8], strides = [1, 1, 1]} : vector<4x32x8xf32> to vector<1x32x8xf32>
    %169 = vector.shape_cast %168 : vector<1x32x8xf32> to vector<32x8xf32>
    %cst_68 = arith.constant dense<0.000000e+00> : vector<16x8xf32>
    %170 = tpu.matmul %25, %169, %cst_68 {dimension_numbers = #tpu.dot_dimension_numbers<[1], [0], [0], [1], [0, 0, 1, 1], [], []>} : vector<16x32xf32>, vector<32x8xf32>, vector<16x8xf32> -> vector<16x8xf32>
    %171 = vector.extract_strided_slice %33 {offsets = [3, 0, 0], sizes = [1, 1, 8], strides = [1, 1, 1]} : vector<4x1x8xf32> to vector<1x1x8xf32>
    %172 = vector.shape_cast %171 : vector<1x1x8xf32> to vector<1x8xf32>
    %173 = vector.broadcast %172 : vector<1x8xf32> to vector<16x8xf32>
    %174 = arith.addf %170, %173 : vector<16x8xf32>
    %175 = vector.extract_strided_slice %35 {offsets = [3, 0, 0], sizes = [1, 32, 8], strides = [1, 1, 1]} : vector<4x32x8xf32> to vector<1x32x8xf32>
    %176 = vector.shape_cast %175 : vector<1x32x8xf32> to vector<32x8xf32>
    %cst_69 = arith.constant dense<0.000000e+00> : vector<16x8xf32>
    %177 = tpu.matmul %25, %176, %cst_69 {dimension_numbers = #tpu.dot_dimension_numbers<[1], [0], [0], [1], [0, 0, 1, 1], [], []>} : vector<16x32xf32>, vector<32x8xf32>, vector<16x8xf32> -> vector<16x8xf32>
    %178 = vector.extract_strided_slice %37 {offsets = [3, 0, 0], sizes = [1, 1, 8], strides = [1, 1, 1]} : vector<4x1x8xf32> to vector<1x1x8xf32>
    %179 = vector.shape_cast %178 : vector<1x1x8xf32> to vector<1x8xf32>
    %180 = vector.broadcast %179 : vector<1x8xf32> to vector<16x8xf32>
    %181 = arith.addf %177, %180 : vector<16x8xf32>
    %cst_70 = arith.constant dense<0.000000e+00> : vector<16x16xf32>
    %182 = tpu.matmul %167, %174, %cst_70 {dimension_numbers = #tpu.dot_dimension_numbers<[1], [1], [0], [0], [0, 0, 1, 0], [], []>} : vector<16x8xf32>, vector<16x8xf32>, vector<16x16xf32> -> vector<16x16xf32>
    %cst_71 = arith.constant 0.353553385 : f32
    %183 = vector.broadcast %cst_71 : f32 to vector<16x16xf32>
    %184 = arith.mulf %182, %183 : vector<16x16xf32>
    %185 = arith.addf %184, %1 : vector<16x16xf32>
    %cst_72 = arith.constant dense<0xFF800000> : vector<16xf32>
    %186 = vector.multi_reduction <maximumf>, %185, %cst_72 [1] : vector<16x16xf32> to vector<16xf32>
    %187 = vector.shape_cast %186 : vector<16xf32> to vector<16x1xf32>
    %188 = vector.broadcast %187 : vector<16x1xf32> to vector<16x16xf32>
    %189 = arith.subf %185, %188 : vector<16x16xf32>
    %190 = math.exp %189 : vector<16x16xf32>
    %cst_73 = arith.constant dense<0.000000e+00> : vector<16xf32>
    %191 = vector.multi_reduction <add>, %190, %cst_73 [1] : vector<16x16xf32> to vector<16xf32>
    %192 = vector.shape_cast %191 : vector<16xf32> to vector<16x1xf32>
    %193 = tpu.reciprocal %192 {approx = true} : vector<16x1xf32> -> vector<16x1xf32>
    %194 = vector.broadcast %193 : vector<16x1xf32> to vector<16x16xf32>
    %195 = arith.mulf %190, %194 : vector<16x16xf32>
    %cst_74 = arith.constant dense<0.000000e+00> : vector<16x8xf32>
    %196 = tpu.matmul %195, %181, %cst_74 {dimension_numbers = #tpu.dot_dimension_numbers<[1], [0], [0], [1], [0, 0, 1, 1], [], []>} : vector<16x16xf32>, vector<16x8xf32>, vector<16x8xf32> -> vector<16x8xf32>
    %197 = vector.extract_strided_slice %39 {offsets = [3, 0, 0], sizes = [1, 8, 32], strides = [1, 1, 1]} : vector<4x8x32xf32> to vector<1x8x32xf32>
    %198 = vector.shape_cast %197 : vector<1x8x32xf32> to vector<8x32xf32>
    %cst_75 = arith.constant dense<0.000000e+00> : vector<16x32xf32>
    %199 = tpu.matmul %196, %198, %cst_75 {dimension_numbers = #tpu.dot_dimension_numbers<[1], [0], [0], [1], [0, 0, 1, 1], [], []>} : vector<16x8xf32>, vector<8x32xf32>, vector<16x32xf32> -> vector<16x32xf32>
    %200 = arith.addf %160, %199 : vector<16x32xf32>
    %c0_76 = arith.constant 0 : index
    %c0_77 = arith.constant 0 : index
    %c0_78 = arith.constant 0 : index
    %201 = vector.load %arg11[%c0_76, %c0_77, %c0_78] : memref<2x1x32xf32, #tpu.memory_space<vmem>>, vector<1x1x32xf32>
    %202 = vector.shape_cast %201 : vector<1x1x32xf32> to vector<1x32xf32>
    %203 = vector.broadcast %202 : vector<1x32xf32> to vector<16x32xf32>
    %204 = arith.addf %200, %203 : vector<16x32xf32>
    %205 = arith.addf %204, %25 : vector<16x32xf32>
    %c0_79 = arith.constant 0 : index
    %c0_80 = arith.constant 0 : index
    %c0_81 = arith.constant 0 : index
    %206 = vector.load %arg12[%c0_79, %c0_80, %c0_81] : memref<2x1x32xf32, #tpu.memory_space<vmem>>, vector<1x1x32xf32>
    %207 = vector.shape_cast %206 : vector<1x1x32xf32> to vector<1x32xf32>
    %c0_82 = arith.constant 0 : index
    %c0_83 = arith.constant 0 : index
    %c0_84 = arith.constant 0 : index
    %208 = vector.load %arg13[%c0_82, %c0_83, %c0_84] : memref<2x1x32xf32, #tpu.memory_space<vmem>>, vector<1x1x32xf32>
    %209 = vector.shape_cast %208 : vector<1x1x32xf32> to vector<1x32xf32>
    %cst_85 = arith.constant dense<0.000000e+00> : vector<16xf32>
    %210 = vector.multi_reduction <add>, %205, %cst_85 [1] : vector<16x32xf32> to vector<16xf32>
    %211 = vector.shape_cast %210 : vector<16xf32> to vector<16x1xf32>
    %cst_86 = arith.constant 3.200000e+01 : f32
    %212 = vector.broadcast %cst_86 : f32 to vector<16x1xf32>
    %213 = arith.divf %211, %212 : vector<16x1xf32>
    %214 = vector.broadcast %213 : vector<16x1xf32> to vector<16x32xf32>
    %215 = arith.subf %205, %214 : vector<16x32xf32>
    %216 = arith.mulf %215, %215 : vector<16x32xf32>
    %cst_87 = arith.constant dense<0.000000e+00> : vector<16xf32>
    %217 = vector.multi_reduction <add>, %216, %cst_87 [1] : vector<16x32xf32> to vector<16xf32>
    %218 = vector.shape_cast %217 : vector<16xf32> to vector<16x1xf32>
    %cst_88 = arith.constant 3.200000e+01 : f32
    %219 = vector.broadcast %cst_88 : f32 to vector<16x1xf32>
    %220 = arith.divf %218, %219 : vector<16x1xf32>
    %221 = vector.broadcast %213 : vector<16x1xf32> to vector<16x32xf32>
    %222 = arith.subf %205, %221 : vector<16x32xf32>
    %cst_89 = arith.constant 9.99999996E-13 : f32
    %223 = vector.broadcast %cst_89 : f32 to vector<16x1xf32>
    %224 = arith.addf %220, %223 : vector<16x1xf32>
    %225 = math.rsqrt %224 : vector<16x1xf32>
    %226 = vector.broadcast %225 : vector<16x1xf32> to vector<16x32xf32>
    %227 = arith.mulf %222, %226 : vector<16x32xf32>
    %228 = vector.broadcast %207 : vector<1x32xf32> to vector<16x32xf32>
    %229 = arith.mulf %227, %228 : vector<16x32xf32>
    %230 = vector.broadcast %209 : vector<1x32xf32> to vector<16x32xf32>
    %231 = arith.addf %229, %230 : vector<16x32xf32>
    %c0_90 = arith.constant 0 : index
    %c0_91 = arith.constant 0 : index
    %c0_92 = arith.constant 0 : index
    %232 = vector.load %arg14[%c0_90, %c0_91, %c0_92] : memref<2x32x64xf32, #tpu.memory_space<vmem>>, vector<1x32x64xf32>
    %233 = vector.shape_cast %232 : vector<1x32x64xf32> to vector<32x64xf32>
    %cst_93 = arith.constant dense<0.000000e+00> : vector<16x64xf32>
    %234 = tpu.matmul %231, %233, %cst_93 {dimension_numbers = #tpu.dot_dimension_numbers<[1], [0], [0], [1], [0, 0, 1, 1], [], []>} : vector<16x32xf32>, vector<32x64xf32>, vector<16x64xf32> -> vector<16x64xf32>
    %c0_94 = arith.constant 0 : index
    %c0_95 = arith.constant 0 : index
    %c0_96 = arith.constant 0 : index
    %235 = vector.load %arg15[%c0_94, %c0_95, %c0_96] : memref<2x1x64xf32, #tpu.memory_space<vmem>>, vector<1x1x64xf32>
    %236 = vector.shape_cast %235 : vector<1x1x64xf32> to vector<1x64xf32>
    %237 = vector.broadcast %236 : vector<1x64xf32> to vector<16x64xf32>
    %238 = arith.addf %234, %237 : vector<16x64xf32>
    %239 = arith.mulf %238, %238 : vector<16x64xf32>
    %240 = arith.mulf %238, %239 : vector<16x64xf32>
    %cst_97 = arith.constant 4.471500e-02 : f32
    %241 = vector.broadcast %cst_97 : f32 to vector<16x64xf32>
    %242 = arith.mulf %241, %240 : vector<16x64xf32>
    %243 = arith.addf %238, %242 : vector<16x64xf32>
    %cst_98 = arith.constant 0.797884583 : f32
    %244 = vector.broadcast %cst_98 : f32 to vector<16x64xf32>
    %245 = arith.mulf %244, %243 : vector<16x64xf32>
    %246 = math.tanh %245 : vector<16x64xf32>
    %cst_99 = arith.constant 1.000000e+00 : f32
    %247 = vector.broadcast %cst_99 : f32 to vector<16x64xf32>
    %248 = arith.addf %247, %246 : vector<16x64xf32>
    %cst_100 = arith.constant 5.000000e-01 : f32
    %249 = vector.broadcast %cst_100 : f32 to vector<16x64xf32>
    %250 = arith.mulf %249, %248 : vector<16x64xf32>
    %251 = arith.mulf %238, %250 : vector<16x64xf32>
    %c0_101 = arith.constant 0 : index
    %c0_102 = arith.constant 0 : index
    %c0_103 = arith.constant 0 : index
    %252 = vector.load %arg16[%c0_101, %c0_102, %c0_103] : memref<2x64x32xf32, #tpu.memory_space<vmem>>, vector<1x64x32xf32>
    %253 = vector.shape_cast %252 : vector<1x64x32xf32> to vector<64x32xf32>
    %cst_104 = arith.constant dense<0.000000e+00> : vector<16x32xf32>
    %254 = tpu.matmul %251, %253, %cst_104 {dimension_numbers = #tpu.dot_dimension_numbers<[1], [0], [0], [1], [0, 0, 1, 1], [], []>} : vector<16x64xf32>, vector<64x32xf32>, vector<16x32xf32> -> vector<16x32xf32>
    %c0_105 = arith.constant 0 : index
    %c0_106 = arith.constant 0 : index
    %c0_107 = arith.constant 0 : index
    %255 = vector.load %arg17[%c0_105, %c0_106, %c0_107] : memref<2x1x32xf32, #tpu.memory_space<vmem>>, vector<1x1x32xf32>
    %256 = vector.shape_cast %255 : vector<1x1x32xf32> to vector<1x32xf32>
    %257 = vector.broadcast %256 : vector<1x32xf32> to vector<16x32xf32>
    %258 = arith.addf %254, %257 : vector<16x32xf32>
    %259 = arith.addf %258, %231 : vector<16x32xf32>
    %c0_108 = arith.constant 0 : index
    %c0_109 = arith.constant 0 : index
    %c0_110 = arith.constant 0 : index
    %260 = vector.load %arg18[%c0_108, %c0_109, %c0_110] : memref<2x1x32xf32, #tpu.memory_space<vmem>>, vector<1x1x32xf32>
    %261 = vector.shape_cast %260 : vector<1x1x32xf32> to vector<1x32xf32>
    %c0_111 = arith.constant 0 : index
    %c0_112 = arith.constant 0 : index
    %c0_113 = arith.constant 0 : index
    %262 = vector.load %arg19[%c0_111, %c0_112, %c0_113] : memref<2x1x32xf32, #tpu.memory_space<vmem>>, vector<1x1x32xf32>
    %263 = vector.shape_cast %262 : vector<1x1x32xf32> to vector<1x32xf32>
    %cst_114 = arith.constant dense<0.000000e+00> : vector<16xf32>
    %264 = vector.multi_reduction <add>, %259, %cst_114 [1] : vector<16x32xf32> to vector<16xf32>
    %265 = vector.shape_cast %264 : vector<16xf32> to vector<16x1xf32>
    %cst_115 = arith.constant 3.200000e+01 : f32
    %266 = vector.broadcast %cst_115 : f32 to vector<16x1xf32>
    %267 = arith.divf %265, %266 : vector<16x1xf32>
    %268 = vector.broadcast %267 : vector<16x1xf32> to vector<16x32xf32>
    %269 = arith.subf %259, %268 : vector<16x32xf32>
    %270 = arith.mulf %269, %269 : vector<16x32xf32>
    %cst_116 = arith.constant dense<0.000000e+00> : vector<16xf32>
    %271 = vector.multi_reduction <add>, %270, %cst_116 [1] : vector<16x32xf32> to vector<16xf32>
    %272 = vector.shape_cast %271 : vector<16xf32> to vector<16x1xf32>
    %cst_117 = arith.constant 3.200000e+01 : f32
    %273 = vector.broadcast %cst_117 : f32 to vector<16x1xf32>
    %274 = arith.divf %272, %273 : vector<16x1xf32>
    %275 = vector.broadcast %267 : vector<16x1xf32> to vector<16x32xf32>
    %276 = arith.subf %259, %275 : vector<16x32xf32>
    %cst_118 = arith.constant 9.99999996E-13 : f32
    %277 = vector.broadcast %cst_118 : f32 to vector<16x1xf32>
    %278 = arith.addf %274, %277 : vector<16x1xf32>
    %279 = math.rsqrt %278 : vector<16x1xf32>
    %280 = vector.broadcast %279 : vector<16x1xf32> to vector<16x32xf32>
    %281 = arith.mulf %276, %280 : vector<16x32xf32>
    %282 = vector.broadcast %261 : vector<1x32xf32> to vector<16x32xf32>
    %283 = arith.mulf %281, %282 : vector<16x32xf32>
    %284 = vector.broadcast %263 : vector<1x32xf32> to vector<16x32xf32>
    %285 = arith.addf %283, %284 : vector<16x32xf32>
    %c1 = arith.constant 1 : index
    %c0_119 = arith.constant 0 : index
    %c0_120 = arith.constant 0 : index
    %c0_121 = arith.constant 0 : index
    %286 = vector.load %arg4[%c1, %c0_119, %c0_120, %c0_121] : memref<2x4x32x8xf32, #tpu.memory_space<vmem>>, vector<1x4x32x8xf32>
    %287 = vector.shape_cast %286 : vector<1x4x32x8xf32> to vector<4x32x8xf32>
    %c1_122 = arith.constant 1 : index
    %c0_123 = arith.constant 0 : index
    %c0_124 = arith.constant 0 : index
    %c0_125 = arith.constant 0 : index
    %288 = vector.load %arg5[%c1_122, %c0_123, %c0_124, %c0_125] : memref<2x4x1x8xf32, #tpu.memory_space<vmem>>, vector<1x4x1x8xf32>
    %289 = vector.shape_cast %288 : vector<1x4x1x8xf32> to vector<4x1x8xf32>
    %c1_126 = arith.constant 1 : index
    %c0_127 = arith.constant 0 : index
    %c0_128 = arith.constant 0 : index
    %c0_129 = arith.constant 0 : index
    %290 = vector.load %arg6[%c1_126, %c0_127, %c0_128, %c0_129] : memref<2x4x32x8xf32, #tpu.memory_space<vmem>>, vector<1x4x32x8xf32>
    %291 = vector.shape_cast %290 : vector<1x4x32x8xf32> to vector<4x32x8xf32>
    %c1_130 = arith.constant 1 : index
    %c0_131 = arith.constant 0 : index
    %c0_132 = arith.constant 0 : index
    %c0_133 = arith.constant 0 : index
    %292 = vector.load %arg7[%c1_130, %c0_131, %c0_132, %c0_133] : memref<2x4x1x8xf32, #tpu.memory_space<vmem>>, vector<1x4x1x8xf32>
    %293 = vector.shape_cast %292 : vector<1x4x1x8xf32> to vector<4x1x8xf32>
    %c1_134 = arith.constant 1 : index
    %c0_135 = arith.constant 0 : index
    %c0_136 = arith.constant 0 : index
    %c0_137 = arith.constant 0 : index
    %294 = vector.load %arg8[%c1_134, %c0_135, %c0_136, %c0_137] : memref<2x4x32x8xf32, #tpu.memory_space<vmem>>, vector<1x4x32x8xf32>
    %295 = vector.shape_cast %294 : vector<1x4x32x8xf32> to vector<4x32x8xf32>
    %c1_138 = arith.constant 1 : index
    %c0_139 = arith.constant 0 : index
    %c0_140 = arith.constant 0 : index
    %c0_141 = arith.constant 0 : index
    %296 = vector.load %arg9[%c1_138, %c0_139, %c0_140, %c0_141] : memref<2x4x1x8xf32, #tpu.memory_space<vmem>>, vector<1x4x1x8xf32>
    %297 = vector.shape_cast %296 : vector<1x4x1x8xf32> to vector<4x1x8xf32>
    %c1_142 = arith.constant 1 : index
    %c0_143 = arith.constant 0 : index
    %c0_144 = arith.constant 0 : index
    %c0_145 = arith.constant 0 : index
    %298 = vector.load %arg10[%c1_142, %c0_143, %c0_144, %c0_145] : memref<2x4x8x32xf32, #tpu.memory_space<vmem>>, vector<1x4x8x32xf32>
    %299 = vector.shape_cast %298 : vector<1x4x8x32xf32> to vector<4x8x32xf32>
    %cst_146 = arith.constant 0.000000e+00 : f32
    %300 = vector.broadcast %cst_146 : f32 to vector<16x32xf32>
    %301 = vector.extract_strided_slice %287 {offsets = [0, 0, 0], sizes = [1, 32, 8], strides = [1, 1, 1]} : vector<4x32x8xf32> to vector<1x32x8xf32>
    %302 = vector.shape_cast %301 : vector<1x32x8xf32> to vector<32x8xf32>
    %cst_147 = arith.constant dense<0.000000e+00> : vector<16x8xf32>
    %303 = tpu.matmul %285, %302, %cst_147 {dimension_numbers = #tpu.dot_dimension_numbers<[1], [0], [0], [1], [0, 0, 1, 1], [], []>} : vector<16x32xf32>, vector<32x8xf32>, vector<16x8xf32> -> vector<16x8xf32>
    %304 = vector.extract_strided_slice %289 {offsets = [0, 0, 0], sizes = [1, 1, 8], strides = [1, 1, 1]} : vector<4x1x8xf32> to vector<1x1x8xf32>
    %305 = vector.shape_cast %304 : vector<1x1x8xf32> to vector<1x8xf32>
    %306 = vector.broadcast %305 : vector<1x8xf32> to vector<16x8xf32>
    %307 = arith.addf %303, %306 : vector<16x8xf32>
    %308 = vector.extract_strided_slice %291 {offsets = [0, 0, 0], sizes = [1, 32, 8], strides = [1, 1, 1]} : vector<4x32x8xf32> to vector<1x32x8xf32>
    %309 = vector.shape_cast %308 : vector<1x32x8xf32> to vector<32x8xf32>
    %cst_148 = arith.constant dense<0.000000e+00> : vector<16x8xf32>
    %310 = tpu.matmul %285, %309, %cst_148 {dimension_numbers = #tpu.dot_dimension_numbers<[1], [0], [0], [1], [0, 0, 1, 1], [], []>} : vector<16x32xf32>, vector<32x8xf32>, vector<16x8xf32> -> vector<16x8xf32>
    %311 = vector.extract_strided_slice %293 {offsets = [0, 0, 0], sizes = [1, 1, 8], strides = [1, 1, 1]} : vector<4x1x8xf32> to vector<1x1x8xf32>
    %312 = vector.shape_cast %311 : vector<1x1x8xf32> to vector<1x8xf32>
    %313 = vector.broadcast %312 : vector<1x8xf32> to vector<16x8xf32>
    %314 = arith.addf %310, %313 : vector<16x8xf32>
    %315 = vector.extract_strided_slice %295 {offsets = [0, 0, 0], sizes = [1, 32, 8], strides = [1, 1, 1]} : vector<4x32x8xf32> to vector<1x32x8xf32>
    %316 = vector.shape_cast %315 : vector<1x32x8xf32> to vector<32x8xf32>
    %cst_149 = arith.constant dense<0.000000e+00> : vector<16x8xf32>
    %317 = tpu.matmul %285, %316, %cst_149 {dimension_numbers = #tpu.dot_dimension_numbers<[1], [0], [0], [1], [0, 0, 1, 1], [], []>} : vector<16x32xf32>, vector<32x8xf32>, vector<16x8xf32> -> vector<16x8xf32>
    %318 = vector.extract_strided_slice %297 {offsets = [0, 0, 0], sizes = [1, 1, 8], strides = [1, 1, 1]} : vector<4x1x8xf32> to vector<1x1x8xf32>
    %319 = vector.shape_cast %318 : vector<1x1x8xf32> to vector<1x8xf32>
    %320 = vector.broadcast %319 : vector<1x8xf32> to vector<16x8xf32>
    %321 = arith.addf %317, %320 : vector<16x8xf32>
    %cst_150 = arith.constant dense<0.000000e+00> : vector<16x16xf32>
    %322 = tpu.matmul %307, %314, %cst_150 {dimension_numbers = #tpu.dot_dimension_numbers<[1], [1], [0], [0], [0, 0, 1, 0], [], []>} : vector<16x8xf32>, vector<16x8xf32>, vector<16x16xf32> -> vector<16x16xf32>
    %cst_151 = arith.constant 0.353553385 : f32
    %323 = vector.broadcast %cst_151 : f32 to vector<16x16xf32>
    %324 = arith.mulf %322, %323 : vector<16x16xf32>
    %325 = arith.addf %324, %1 : vector<16x16xf32>
    %cst_152 = arith.constant dense<0xFF800000> : vector<16xf32>
    %326 = vector.multi_reduction <maximumf>, %325, %cst_152 [1] : vector<16x16xf32> to vector<16xf32>
    %327 = vector.shape_cast %326 : vector<16xf32> to vector<16x1xf32>
    %328 = vector.broadcast %327 : vector<16x1xf32> to vector<16x16xf32>
    %329 = arith.subf %325, %328 : vector<16x16xf32>
    %330 = math.exp %329 : vector<16x16xf32>
    %cst_153 = arith.constant dense<0.000000e+00> : vector<16xf32>
    %331 = vector.multi_reduction <add>, %330, %cst_153 [1] : vector<16x16xf32> to vector<16xf32>
    %332 = vector.shape_cast %331 : vector<16xf32> to vector<16x1xf32>
    %333 = tpu.reciprocal %332 {approx = true} : vector<16x1xf32> -> vector<16x1xf32>
    %334 = vector.broadcast %333 : vector<16x1xf32> to vector<16x16xf32>
    %335 = arith.mulf %330, %334 : vector<16x16xf32>
    %cst_154 = arith.constant dense<0.000000e+00> : vector<16x8xf32>
    %336 = tpu.matmul %335, %321, %cst_154 {dimension_numbers = #tpu.dot_dimension_numbers<[1], [0], [0], [1], [0, 0, 1, 1], [], []>} : vector<16x16xf32>, vector<16x8xf32>, vector<16x8xf32> -> vector<16x8xf32>
    %337 = vector.extract_strided_slice %299 {offsets = [0, 0, 0], sizes = [1, 8, 32], strides = [1, 1, 1]} : vector<4x8x32xf32> to vector<1x8x32xf32>
    %338 = vector.shape_cast %337 : vector<1x8x32xf32> to vector<8x32xf32>
    %cst_155 = arith.constant dense<0.000000e+00> : vector<16x32xf32>
    %339 = tpu.matmul %336, %338, %cst_155 {dimension_numbers = #tpu.dot_dimension_numbers<[1], [0], [0], [1], [0, 0, 1, 1], [], []>} : vector<16x8xf32>, vector<8x32xf32>, vector<16x32xf32> -> vector<16x32xf32>
    %340 = arith.addf %300, %339 : vector<16x32xf32>
    %341 = vector.extract_strided_slice %287 {offsets = [1, 0, 0], sizes = [1, 32, 8], strides = [1, 1, 1]} : vector<4x32x8xf32> to vector<1x32x8xf32>
    %342 = vector.shape_cast %341 : vector<1x32x8xf32> to vector<32x8xf32>
    %cst_156 = arith.constant dense<0.000000e+00> : vector<16x8xf32>
    %343 = tpu.matmul %285, %342, %cst_156 {dimension_numbers = #tpu.dot_dimension_numbers<[1], [0], [0], [1], [0, 0, 1, 1], [], []>} : vector<16x32xf32>, vector<32x8xf32>, vector<16x8xf32> -> vector<16x8xf32>
    %344 = vector.extract_strided_slice %289 {offsets = [1, 0, 0], sizes = [1, 1, 8], strides = [1, 1, 1]} : vector<4x1x8xf32> to vector<1x1x8xf32>
    %345 = vector.shape_cast %344 : vector<1x1x8xf32> to vector<1x8xf32>
    %346 = vector.broadcast %345 : vector<1x8xf32> to vector<16x8xf32>
    %347 = arith.addf %343, %346 : vector<16x8xf32>
    %348 = vector.extract_strided_slice %291 {offsets = [1, 0, 0], sizes = [1, 32, 8], strides = [1, 1, 1]} : vector<4x32x8xf32> to vector<1x32x8xf32>
    %349 = vector.shape_cast %348 : vector<1x32x8xf32> to vector<32x8xf32>
    %cst_157 = arith.constant dense<0.000000e+00> : vector<16x8xf32>
    %350 = tpu.matmul %285, %349, %cst_157 {dimension_numbers = #tpu.dot_dimension_numbers<[1], [0], [0], [1], [0, 0, 1, 1], [], []>} : vector<16x32xf32>, vector<32x8xf32>, vector<16x8xf32> -> vector<16x8xf32>
    %351 = vector.extract_strided_slice %293 {offsets = [1, 0, 0], sizes = [1, 1, 8], strides = [1, 1, 1]} : vector<4x1x8xf32> to vector<1x1x8xf32>
    %352 = vector.shape_cast %351 : vector<1x1x8xf32> to vector<1x8xf32>
    %353 = vector.broadcast %352 : vector<1x8xf32> to vector<16x8xf32>
    %354 = arith.addf %350, %353 : vector<16x8xf32>
    %355 = vector.extract_strided_slice %295 {offsets = [1, 0, 0], sizes = [1, 32, 8], strides = [1, 1, 1]} : vector<4x32x8xf32> to vector<1x32x8xf32>
    %356 = vector.shape_cast %355 : vector<1x32x8xf32> to vector<32x8xf32>
    %cst_158 = arith.constant dense<0.000000e+00> : vector<16x8xf32>
    %357 = tpu.matmul %285, %356, %cst_158 {dimension_numbers = #tpu.dot_dimension_numbers<[1], [0], [0], [1], [0, 0, 1, 1], [], []>} : vector<16x32xf32>, vector<32x8xf32>, vector<16x8xf32> -> vector<16x8xf32>
    %358 = vector.extract_strided_slice %297 {offsets = [1, 0, 0], sizes = [1, 1, 8], strides = [1, 1, 1]} : vector<4x1x8xf32> to vector<1x1x8xf32>
    %359 = vector.shape_cast %358 : vector<1x1x8xf32> to vector<1x8xf32>
    %360 = vector.broadcast %359 : vector<1x8xf32> to vector<16x8xf32>
    %361 = arith.addf %357, %360 : vector<16x8xf32>
    %cst_159 = arith.constant dense<0.000000e+00> : vector<16x16xf32>
    %362 = tpu.matmul %347, %354, %cst_159 {dimension_numbers = #tpu.dot_dimension_numbers<[1], [1], [0], [0], [0, 0, 1, 0], [], []>} : vector<16x8xf32>, vector<16x8xf32>, vector<16x16xf32> -> vector<16x16xf32>
    %cst_160 = arith.constant 0.353553385 : f32
    %363 = vector.broadcast %cst_160 : f32 to vector<16x16xf32>
    %364 = arith.mulf %362, %363 : vector<16x16xf32>
    %365 = arith.addf %364, %1 : vector<16x16xf32>
    %cst_161 = arith.constant dense<0xFF800000> : vector<16xf32>
    %366 = vector.multi_reduction <maximumf>, %365, %cst_161 [1] : vector<16x16xf32> to vector<16xf32>
    %367 = vector.shape_cast %366 : vector<16xf32> to vector<16x1xf32>
    %368 = vector.broadcast %367 : vector<16x1xf32> to vector<16x16xf32>
    %369 = arith.subf %365, %368 : vector<16x16xf32>
    %370 = math.exp %369 : vector<16x16xf32>
    %cst_162 = arith.constant dense<0.000000e+00> : vector<16xf32>
    %371 = vector.multi_reduction <add>, %370, %cst_162 [1] : vector<16x16xf32> to vector<16xf32>
    %372 = vector.shape_cast %371 : vector<16xf32> to vector<16x1xf32>
    %373 = tpu.reciprocal %372 {approx = true} : vector<16x1xf32> -> vector<16x1xf32>
    %374 = vector.broadcast %373 : vector<16x1xf32> to vector<16x16xf32>
    %375 = arith.mulf %370, %374 : vector<16x16xf32>
    %cst_163 = arith.constant dense<0.000000e+00> : vector<16x8xf32>
    %376 = tpu.matmul %375, %361, %cst_163 {dimension_numbers = #tpu.dot_dimension_numbers<[1], [0], [0], [1], [0, 0, 1, 1], [], []>} : vector<16x16xf32>, vector<16x8xf32>, vector<16x8xf32> -> vector<16x8xf32>
    %377 = vector.extract_strided_slice %299 {offsets = [1, 0, 0], sizes = [1, 8, 32], strides = [1, 1, 1]} : vector<4x8x32xf32> to vector<1x8x32xf32>
    %378 = vector.shape_cast %377 : vector<1x8x32xf32> to vector<8x32xf32>
    %cst_164 = arith.constant dense<0.000000e+00> : vector<16x32xf32>
    %379 = tpu.matmul %376, %378, %cst_164 {dimension_numbers = #tpu.dot_dimension_numbers<[1], [0], [0], [1], [0, 0, 1, 1], [], []>} : vector<16x8xf32>, vector<8x32xf32>, vector<16x32xf32> -> vector<16x32xf32>
    %380 = arith.addf %340, %379 : vector<16x32xf32>
    %381 = vector.extract_strided_slice %287 {offsets = [2, 0, 0], sizes = [1, 32, 8], strides = [1, 1, 1]} : vector<4x32x8xf32> to vector<1x32x8xf32>
    %382 = vector.shape_cast %381 : vector<1x32x8xf32> to vector<32x8xf32>
    %cst_165 = arith.constant dense<0.000000e+00> : vector<16x8xf32>
    %383 = tpu.matmul %285, %382, %cst_165 {dimension_numbers = #tpu.dot_dimension_numbers<[1], [0], [0], [1], [0, 0, 1, 1], [], []>} : vector<16x32xf32>, vector<32x8xf32>, vector<16x8xf32> -> vector<16x8xf32>
    %384 = vector.extract_strided_slice %289 {offsets = [2, 0, 0], sizes = [1, 1, 8], strides = [1, 1, 1]} : vector<4x1x8xf32> to vector<1x1x8xf32>
    %385 = vector.shape_cast %384 : vector<1x1x8xf32> to vector<1x8xf32>
    %386 = vector.broadcast %385 : vector<1x8xf32> to vector<16x8xf32>
    %387 = arith.addf %383, %386 : vector<16x8xf32>
    %388 = vector.extract_strided_slice %291 {offsets = [2, 0, 0], sizes = [1, 32, 8], strides = [1, 1, 1]} : vector<4x32x8xf32> to vector<1x32x8xf32>
    %389 = vector.shape_cast %388 : vector<1x32x8xf32> to vector<32x8xf32>
    %cst_166 = arith.constant dense<0.000000e+00> : vector<16x8xf32>
    %390 = tpu.matmul %285, %389, %cst_166 {dimension_numbers = #tpu.dot_dimension_numbers<[1], [0], [0], [1], [0, 0, 1, 1], [], []>} : vector<16x32xf32>, vector<32x8xf32>, vector<16x8xf32> -> vector<16x8xf32>
    %391 = vector.extract_strided_slice %293 {offsets = [2, 0, 0], sizes = [1, 1, 8], strides = [1, 1, 1]} : vector<4x1x8xf32> to vector<1x1x8xf32>
    %392 = vector.shape_cast %391 : vector<1x1x8xf32> to vector<1x8xf32>
    %393 = vector.broadcast %392 : vector<1x8xf32> to vector<16x8xf32>
    %394 = arith.addf %390, %393 : vector<16x8xf32>
    %395 = vector.extract_strided_slice %295 {offsets = [2, 0, 0], sizes = [1, 32, 8], strides = [1, 1, 1]} : vector<4x32x8xf32> to vector<1x32x8xf32>
    %396 = vector.shape_cast %395 : vector<1x32x8xf32> to vector<32x8xf32>
    %cst_167 = arith.constant dense<0.000000e+00> : vector<16x8xf32>
    %397 = tpu.matmul %285, %396, %cst_167 {dimension_numbers = #tpu.dot_dimension_numbers<[1], [0], [0], [1], [0, 0, 1, 1], [], []>} : vector<16x32xf32>, vector<32x8xf32>, vector<16x8xf32> -> vector<16x8xf32>
    %398 = vector.extract_strided_slice %297 {offsets = [2, 0, 0], sizes = [1, 1, 8], strides = [1, 1, 1]} : vector<4x1x8xf32> to vector<1x1x8xf32>
    %399 = vector.shape_cast %398 : vector<1x1x8xf32> to vector<1x8xf32>
    %400 = vector.broadcast %399 : vector<1x8xf32> to vector<16x8xf32>
    %401 = arith.addf %397, %400 : vector<16x8xf32>
    %cst_168 = arith.constant dense<0.000000e+00> : vector<16x16xf32>
    %402 = tpu.matmul %387, %394, %cst_168 {dimension_numbers = #tpu.dot_dimension_numbers<[1], [1], [0], [0], [0, 0, 1, 0], [], []>} : vector<16x8xf32>, vector<16x8xf32>, vector<16x16xf32> -> vector<16x16xf32>
    %cst_169 = arith.constant 0.353553385 : f32
    %403 = vector.broadcast %cst_169 : f32 to vector<16x16xf32>
    %404 = arith.mulf %402, %403 : vector<16x16xf32>
    %405 = arith.addf %404, %1 : vector<16x16xf32>
    %cst_170 = arith.constant dense<0xFF800000> : vector<16xf32>
    %406 = vector.multi_reduction <maximumf>, %405, %cst_170 [1] : vector<16x16xf32> to vector<16xf32>
    %407 = vector.shape_cast %406 : vector<16xf32> to vector<16x1xf32>
    %408 = vector.broadcast %407 : vector<16x1xf32> to vector<16x16xf32>
    %409 = arith.subf %405, %408 : vector<16x16xf32>
    %410 = math.exp %409 : vector<16x16xf32>
    %cst_171 = arith.constant dense<0.000000e+00> : vector<16xf32>
    %411 = vector.multi_reduction <add>, %410, %cst_171 [1] : vector<16x16xf32> to vector<16xf32>
    %412 = vector.shape_cast %411 : vector<16xf32> to vector<16x1xf32>
    %413 = tpu.reciprocal %412 {approx = true} : vector<16x1xf32> -> vector<16x1xf32>
    %414 = vector.broadcast %413 : vector<16x1xf32> to vector<16x16xf32>
    %415 = arith.mulf %410, %414 : vector<16x16xf32>
    %cst_172 = arith.constant dense<0.000000e+00> : vector<16x8xf32>
    %416 = tpu.matmul %415, %401, %cst_172 {dimension_numbers = #tpu.dot_dimension_numbers<[1], [0], [0], [1], [0, 0, 1, 1], [], []>} : vector<16x16xf32>, vector<16x8xf32>, vector<16x8xf32> -> vector<16x8xf32>
    %417 = vector.extract_strided_slice %299 {offsets = [2, 0, 0], sizes = [1, 8, 32], strides = [1, 1, 1]} : vector<4x8x32xf32> to vector<1x8x32xf32>
    %418 = vector.shape_cast %417 : vector<1x8x32xf32> to vector<8x32xf32>
    %cst_173 = arith.constant dense<0.000000e+00> : vector<16x32xf32>
    %419 = tpu.matmul %416, %418, %cst_173 {dimension_numbers = #tpu.dot_dimension_numbers<[1], [0], [0], [1], [0, 0, 1, 1], [], []>} : vector<16x8xf32>, vector<8x32xf32>, vector<16x32xf32> -> vector<16x32xf32>
    %420 = arith.addf %380, %419 : vector<16x32xf32>
    %421 = vector.extract_strided_slice %287 {offsets = [3, 0, 0], sizes = [1, 32, 8], strides = [1, 1, 1]} : vector<4x32x8xf32> to vector<1x32x8xf32>
    %422 = vector.shape_cast %421 : vector<1x32x8xf32> to vector<32x8xf32>
    %cst_174 = arith.constant dense<0.000000e+00> : vector<16x8xf32>
    %423 = tpu.matmul %285, %422, %cst_174 {dimension_numbers = #tpu.dot_dimension_numbers<[1], [0], [0], [1], [0, 0, 1, 1], [], []>} : vector<16x32xf32>, vector<32x8xf32>, vector<16x8xf32> -> vector<16x8xf32>
    %424 = vector.extract_strided_slice %289 {offsets = [3, 0, 0], sizes = [1, 1, 8], strides = [1, 1, 1]} : vector<4x1x8xf32> to vector<1x1x8xf32>
    %425 = vector.shape_cast %424 : vector<1x1x8xf32> to vector<1x8xf32>
    %426 = vector.broadcast %425 : vector<1x8xf32> to vector<16x8xf32>
    %427 = arith.addf %423, %426 : vector<16x8xf32>
    %428 = vector.extract_strided_slice %291 {offsets = [3, 0, 0], sizes = [1, 32, 8], strides = [1, 1, 1]} : vector<4x32x8xf32> to vector<1x32x8xf32>
    %429 = vector.shape_cast %428 : vector<1x32x8xf32> to vector<32x8xf32>
    %cst_175 = arith.constant dense<0.000000e+00> : vector<16x8xf32>
    %430 = tpu.matmul %285, %429, %cst_175 {dimension_numbers = #tpu.dot_dimension_numbers<[1], [0], [0], [1], [0, 0, 1, 1], [], []>} : vector<16x32xf32>, vector<32x8xf32>, vector<16x8xf32> -> vector<16x8xf32>
    %431 = vector.extract_strided_slice %293 {offsets = [3, 0, 0], sizes = [1, 1, 8], strides = [1, 1, 1]} : vector<4x1x8xf32> to vector<1x1x8xf32>
    %432 = vector.shape_cast %431 : vector<1x1x8xf32> to vector<1x8xf32>
    %433 = vector.broadcast %432 : vector<1x8xf32> to vector<16x8xf32>
    %434 = arith.addf %430, %433 : vector<16x8xf32>
    %435 = vector.extract_strided_slice %295 {offsets = [3, 0, 0], sizes = [1, 32, 8], strides = [1, 1, 1]} : vector<4x32x8xf32> to vector<1x32x8xf32>
    %436 = vector.shape_cast %435 : vector<1x32x8xf32> to vector<32x8xf32>
    %cst_176 = arith.constant dense<0.000000e+00> : vector<16x8xf32>
    %437 = tpu.matmul %285, %436, %cst_176 {dimension_numbers = #tpu.dot_dimension_numbers<[1], [0], [0], [1], [0, 0, 1, 1], [], []>} : vector<16x32xf32>, vector<32x8xf32>, vector<16x8xf32> -> vector<16x8xf32>
    %438 = vector.extract_strided_slice %297 {offsets = [3, 0, 0], sizes = [1, 1, 8], strides = [1, 1, 1]} : vector<4x1x8xf32> to vector<1x1x8xf32>
    %439 = vector.shape_cast %438 : vector<1x1x8xf32> to vector<1x8xf32>
    %440 = vector.broadcast %439 : vector<1x8xf32> to vector<16x8xf32>
    %441 = arith.addf %437, %440 : vector<16x8xf32>
    %cst_177 = arith.constant dense<0.000000e+00> : vector<16x16xf32>
    %442 = tpu.matmul %427, %434, %cst_177 {dimension_numbers = #tpu.dot_dimension_numbers<[1], [1], [0], [0], [0, 0, 1, 0], [], []>} : vector<16x8xf32>, vector<16x8xf32>, vector<16x16xf32> -> vector<16x16xf32>
    %cst_178 = arith.constant 0.353553385 : f32
    %443 = vector.broadcast %cst_178 : f32 to vector<16x16xf32>
    %444 = arith.mulf %442, %443 : vector<16x16xf32>
    %445 = arith.addf %444, %1 : vector<16x16xf32>
    %cst_179 = arith.constant dense<0xFF800000> : vector<16xf32>
    %446 = vector.multi_reduction <maximumf>, %445, %cst_179 [1] : vector<16x16xf32> to vector<16xf32>
    %447 = vector.shape_cast %446 : vector<16xf32> to vector<16x1xf32>
    %448 = vector.broadcast %447 : vector<16x1xf32> to vector<16x16xf32>
    %449 = arith.subf %445, %448 : vector<16x16xf32>
    %450 = math.exp %449 : vector<16x16xf32>
    %cst_180 = arith.constant dense<0.000000e+00> : vector<16xf32>
    %451 = vector.multi_reduction <add>, %450, %cst_180 [1] : vector<16x16xf32> to vector<16xf32>
    %452 = vector.shape_cast %451 : vector<16xf32> to vector<16x1xf32>
    %453 = tpu.reciprocal %452 {approx = true} : vector<16x1xf32> -> vector<16x1xf32>
    %454 = vector.broadcast %453 : vector<16x1xf32> to vector<16x16xf32>
    %455 = arith.mulf %450, %454 : vector<16x16xf32>
    %cst_181 = arith.constant dense<0.000000e+00> : vector<16x8xf32>
    %456 = tpu.matmul %455, %441, %cst_181 {dimension_numbers = #tpu.dot_dimension_numbers<[1], [0], [0], [1], [0, 0, 1, 1], [], []>} : vector<16x16xf32>, vector<16x8xf32>, vector<16x8xf32> -> vector<16x8xf32>
    %457 = vector.extract_strided_slice %299 {offsets = [3, 0, 0], sizes = [1, 8, 32], strides = [1, 1, 1]} : vector<4x8x32xf32> to vector<1x8x32xf32>
    %458 = vector.shape_cast %457 : vector<1x8x32xf32> to vector<8x32xf32>
    %cst_182 = arith.constant dense<0.000000e+00> : vector<16x32xf32>
    %459 = tpu.matmul %456, %458, %cst_182 {dimension_numbers = #tpu.dot_dimension_numbers<[1], [0], [0], [1], [0, 0, 1, 1], [], []>} : vector<16x8xf32>, vector<8x32xf32>, vector<16x32xf32> -> vector<16x32xf32>
    %460 = arith.addf %420, %459 : vector<16x32xf32>
    %c1_183 = arith.constant 1 : index
    %c0_184 = arith.constant 0 : index
    %c0_185 = arith.constant 0 : index
    %461 = vector.load %arg11[%c1_183, %c0_184, %c0_185] : memref<2x1x32xf32, #tpu.memory_space<vmem>>, vector<1x1x32xf32>
    %462 = vector.shape_cast %461 : vector<1x1x32xf32> to vector<1x32xf32>
    %463 = vector.broadcast %462 : vector<1x32xf32> to vector<16x32xf32>
    %464 = arith.addf %460, %463 : vector<16x32xf32>
    %465 = arith.addf %464, %285 : vector<16x32xf32>
    %c1_186 = arith.constant 1 : index
    %c0_187 = arith.constant 0 : index
    %c0_188 = arith.constant 0 : index
    %466 = vector.load %arg12[%c1_186, %c0_187, %c0_188] : memref<2x1x32xf32, #tpu.memory_space<vmem>>, vector<1x1x32xf32>
    %467 = vector.shape_cast %466 : vector<1x1x32xf32> to vector<1x32xf32>
    %c1_189 = arith.constant 1 : index
    %c0_190 = arith.constant 0 : index
    %c0_191 = arith.constant 0 : index
    %468 = vector.load %arg13[%c1_189, %c0_190, %c0_191] : memref<2x1x32xf32, #tpu.memory_space<vmem>>, vector<1x1x32xf32>
    %469 = vector.shape_cast %468 : vector<1x1x32xf32> to vector<1x32xf32>
    %cst_192 = arith.constant dense<0.000000e+00> : vector<16xf32>
    %470 = vector.multi_reduction <add>, %465, %cst_192 [1] : vector<16x32xf32> to vector<16xf32>
    %471 = vector.shape_cast %470 : vector<16xf32> to vector<16x1xf32>
    %cst_193 = arith.constant 3.200000e+01 : f32
    %472 = vector.broadcast %cst_193 : f32 to vector<16x1xf32>
    %473 = arith.divf %471, %472 : vector<16x1xf32>
    %474 = vector.broadcast %473 : vector<16x1xf32> to vector<16x32xf32>
    %475 = arith.subf %465, %474 : vector<16x32xf32>
    %476 = arith.mulf %475, %475 : vector<16x32xf32>
    %cst_194 = arith.constant dense<0.000000e+00> : vector<16xf32>
    %477 = vector.multi_reduction <add>, %476, %cst_194 [1] : vector<16x32xf32> to vector<16xf32>
    %478 = vector.shape_cast %477 : vector<16xf32> to vector<16x1xf32>
    %cst_195 = arith.constant 3.200000e+01 : f32
    %479 = vector.broadcast %cst_195 : f32 to vector<16x1xf32>
    %480 = arith.divf %478, %479 : vector<16x1xf32>
    %481 = vector.broadcast %473 : vector<16x1xf32> to vector<16x32xf32>
    %482 = arith.subf %465, %481 : vector<16x32xf32>
    %cst_196 = arith.constant 9.99999996E-13 : f32
    %483 = vector.broadcast %cst_196 : f32 to vector<16x1xf32>
    %484 = arith.addf %480, %483 : vector<16x1xf32>
    %485 = math.rsqrt %484 : vector<16x1xf32>
    %486 = vector.broadcast %485 : vector<16x1xf32> to vector<16x32xf32>
    %487 = arith.mulf %482, %486 : vector<16x32xf32>
    %488 = vector.broadcast %467 : vector<1x32xf32> to vector<16x32xf32>
    %489 = arith.mulf %487, %488 : vector<16x32xf32>
    %490 = vector.broadcast %469 : vector<1x32xf32> to vector<16x32xf32>
    %491 = arith.addf %489, %490 : vector<16x32xf32>
    %c1_197 = arith.constant 1 : index
    %c0_198 = arith.constant 0 : index
    %c0_199 = arith.constant 0 : index
    %492 = vector.load %arg14[%c1_197, %c0_198, %c0_199] : memref<2x32x64xf32, #tpu.memory_space<vmem>>, vector<1x32x64xf32>
    %493 = vector.shape_cast %492 : vector<1x32x64xf32> to vector<32x64xf32>
    %cst_200 = arith.constant dense<0.000000e+00> : vector<16x64xf32>
    %494 = tpu.matmul %491, %493, %cst_200 {dimension_numbers = #tpu.dot_dimension_numbers<[1], [0], [0], [1], [0, 0, 1, 1], [], []>} : vector<16x32xf32>, vector<32x64xf32>, vector<16x64xf32> -> vector<16x64xf32>
    %c1_201 = arith.constant 1 : index
    %c0_202 = arith.constant 0 : index
    %c0_203 = arith.constant 0 : index
    %495 = vector.load %arg15[%c1_201, %c0_202, %c0_203] : memref<2x1x64xf32, #tpu.memory_space<vmem>>, vector<1x1x64xf32>
    %496 = vector.shape_cast %495 : vector<1x1x64xf32> to vector<1x64xf32>
    %497 = vector.broadcast %496 : vector<1x64xf32> to vector<16x64xf32>
    %498 = arith.addf %494, %497 : vector<16x64xf32>
    %499 = arith.mulf %498, %498 : vector<16x64xf32>
    %500 = arith.mulf %498, %499 : vector<16x64xf32>
    %cst_204 = arith.constant 4.471500e-02 : f32
    %501 = vector.broadcast %cst_204 : f32 to vector<16x64xf32>
    %502 = arith.mulf %501, %500 : vector<16x64xf32>
    %503 = arith.addf %498, %502 : vector<16x64xf32>
    %cst_205 = arith.constant 0.797884583 : f32
    %504 = vector.broadcast %cst_205 : f32 to vector<16x64xf32>
    %505 = arith.mulf %504, %503 : vector<16x64xf32>
    %506 = math.tanh %505 : vector<16x64xf32>
    %cst_206 = arith.constant 1.000000e+00 : f32
    %507 = vector.broadcast %cst_206 : f32 to vector<16x64xf32>
    %508 = arith.addf %507, %506 : vector<16x64xf32>
    %cst_207 = arith.constant 5.000000e-01 : f32
    %509 = vector.broadcast %cst_207 : f32 to vector<16x64xf32>
    %510 = arith.mulf %509, %508 : vector<16x64xf32>
    %511 = arith.mulf %498, %510 : vector<16x64xf32>
    %c1_208 = arith.constant 1 : index
    %c0_209 = arith.constant 0 : index
    %c0_210 = arith.constant 0 : index
    %512 = vector.load %arg16[%c1_208, %c0_209, %c0_210] : memref<2x64x32xf32, #tpu.memory_space<vmem>>, vector<1x64x32xf32>
    %513 = vector.shape_cast %512 : vector<1x64x32xf32> to vector<64x32xf32>
    %cst_211 = arith.constant dense<0.000000e+00> : vector<16x32xf32>
    %514 = tpu.matmul %511, %513, %cst_211 {dimension_numbers = #tpu.dot_dimension_numbers<[1], [0], [0], [1], [0, 0, 1, 1], [], []>} : vector<16x64xf32>, vector<64x32xf32>, vector<16x32xf32> -> vector<16x32xf32>
    %c1_212 = arith.constant 1 : index
    %c0_213 = arith.constant 0 : index
    %c0_214 = arith.constant 0 : index
    %515 = vector.load %arg17[%c1_212, %c0_213, %c0_214] : memref<2x1x32xf32, #tpu.memory_space<vmem>>, vector<1x1x32xf32>
    %516 = vector.shape_cast %515 : vector<1x1x32xf32> to vector<1x32xf32>
    %517 = vector.broadcast %516 : vector<1x32xf32> to vector<16x32xf32>
    %518 = arith.addf %514, %517 : vector<16x32xf32>
    %519 = arith.addf %518, %491 : vector<16x32xf32>
    %c1_215 = arith.constant 1 : index
    %c0_216 = arith.constant 0 : index
    %c0_217 = arith.constant 0 : index
    %520 = vector.load %arg18[%c1_215, %c0_216, %c0_217] : memref<2x1x32xf32, #tpu.memory_space<vmem>>, vector<1x1x32xf32>
    %521 = vector.shape_cast %520 : vector<1x1x32xf32> to vector<1x32xf32>
    %c1_218 = arith.constant 1 : index
    %c0_219 = arith.constant 0 : index
    %c0_220 = arith.constant 0 : index
    %522 = vector.load %arg19[%c1_218, %c0_219, %c0_220] : memref<2x1x32xf32, #tpu.memory_space<vmem>>, vector<1x1x32xf32>
    %523 = vector.shape_cast %522 : vector<1x1x32xf32> to vector<1x32xf32>
    %cst_221 = arith.constant dense<0.000000e+00> : vector<16xf32>
    %524 = vector.multi_reduction <add>, %519, %cst_221 [1] : vector<16x32xf32> to vector<16xf32>
    %525 = vector.shape_cast %524 : vector<16xf32> to vector<16x1xf32>
    %cst_222 = arith.constant 3.200000e+01 : f32
    %526 = vector.broadcast %cst_222 : f32 to vector<16x1xf32>
    %527 = arith.divf %525, %526 : vector<16x1xf32>
    %528 = vector.broadcast %527 : vector<16x1xf32> to vector<16x32xf32>
    %529 = arith.subf %519, %528 : vector<16x32xf32>
    %530 = arith.mulf %529, %529 : vector<16x32xf32>
    %cst_223 = arith.constant dense<0.000000e+00> : vector<16xf32>
    %531 = vector.multi_reduction <add>, %530, %cst_223 [1] : vector<16x32xf32> to vector<16xf32>
    %532 = vector.shape_cast %531 : vector<16xf32> to vector<16x1xf32>
    %cst_224 = arith.constant 3.200000e+01 : f32
    %533 = vector.broadcast %cst_224 : f32 to vector<16x1xf32>
    %534 = arith.divf %532, %533 : vector<16x1xf32>
    %535 = vector.broadcast %527 : vector<16x1xf32> to vector<16x32xf32>
    %536 = arith.subf %519, %535 : vector<16x32xf32>
    %cst_225 = arith.constant 9.99999996E-13 : f32
    %537 = vector.broadcast %cst_225 : f32 to vector<16x1xf32>
    %538 = arith.addf %534, %537 : vector<16x1xf32>
    %539 = math.rsqrt %538 : vector<16x1xf32>
    %540 = vector.broadcast %539 : vector<16x1xf32> to vector<16x32xf32>
    %541 = arith.mulf %536, %540 : vector<16x32xf32>
    %542 = vector.broadcast %521 : vector<1x32xf32> to vector<16x32xf32>
    %543 = arith.mulf %541, %542 : vector<16x32xf32>
    %544 = vector.broadcast %523 : vector<1x32xf32> to vector<16x32xf32>
    %545 = arith.addf %543, %544 : vector<16x32xf32>
    %546 = vector.shape_cast %545 : vector<16x32xf32> to vector<2x8x32xf32>
    %cst_226 = arith.constant dense<0xFF800000> : vector<2x8xf32>
    %547 = vector.multi_reduction <maximumf>, %546, %cst_226 [2] : vector<2x8x32xf32> to vector<2x8xf32>
    %c0_227 = arith.constant 0 : index
    %c0_228 = arith.constant 0 : index
    %548 = vector.load %arg20[%c0_227, %c0_228] : memref<8x16xf32, #tpu.memory_space<vmem>>, vector<8x16xf32>
    %cst_229 = arith.constant dense<0.000000e+00> : vector<2x16xf32>
    %549 = tpu.matmul %547, %548, %cst_229 {dimension_numbers = #tpu.dot_dimension_numbers<[1], [0], [0], [1], [0, 0, 1, 1], [], []>} : vector<2x8xf32>, vector<8x16xf32>, vector<2x16xf32> -> vector<2x16xf32>
    %c0_230 = arith.constant 0 : index
    %c0_231 = arith.constant 0 : index
    %550 = vector.load %arg21[%c0_230, %c0_231] : memref<1x16xf32, #tpu.memory_space<vmem>>, vector<1x16xf32>
    %551 = vector.broadcast %550 : vector<1x16xf32> to vector<2x16xf32>
    %552 = arith.addf %549, %551 : vector<2x16xf32>
    %cst_232 = arith.constant 0.000000e+00 : f32
    %553 = vector.broadcast %cst_232 : f32 to vector<2x16xf32>
    %554 = arith.maximumf %552, %553 : vector<2x16xf32>
    %c0_233 = arith.constant 0 : index
    %c0_234 = arith.constant 0 : index
    %555 = vector.load %arg22[%c0_233, %c0_234] : memref<16x2xf32, #tpu.memory_space<vmem>>, vector<16x2xf32>
    %cst_235 = arith.constant dense<0.000000e+00> : vector<2x2xf32>
    %556 = tpu.matmul %554, %555, %cst_235 {dimension_numbers = #tpu.dot_dimension_numbers<[1], [0], [0], [1], [0, 0, 1, 1], [], []>} : vector<2x16xf32>, vector<16x2xf32>, vector<2x2xf32> -> vector<2x2xf32>
    %c0_236 = arith.constant 0 : index
    %c0_237 = arith.constant 0 : index
    %557 = vector.load %arg23[%c0_236, %c0_237] : memref<1x2xf32, #tpu.memory_space<vmem>>, vector<1x2xf32>
    %558 = vector.broadcast %557 : vector<1x2xf32> to vector<2x2xf32>
    %559 = arith.addf %556, %558 : vector<2x2xf32>
    %c0_238 = arith.constant 0 : index
    %c0_239 = arith.constant 0 : index
    %560 = vector.load %arg24[%c0_238, %c0_239] : memref<2x2xf32, #tpu.memory_space<vmem>>, vector<2x2xf32>
    tpu.vector_store %arg24[%c0_238, %c0_239], %559 {strides = array<i32>} : memref<2x2xf32, #tpu.memory_space<vmem>>, vector<2x2xf32>,
    return
  }
}

</mosaic_0001>

<bundles_post_ra>
// kernel: forward.1
= control target key start
LH: loop header
LB: loop body
LE: loop exit
PB: predicated region body
PF: predicated region fallthrough
CT: control target
= control target key end

     0   :  { %s7685_s0 = inlined_call_operand.vmem [shape: f32[16,32], index: 0, kind: input, shape index: {}]   ;;  %s7686_s1 = inlined_call_operand.vmem [shape: f32[16,16], index: 1, kind: input, shape index: {}]   ;;  %s7687_s2 = inlined_call_operand.vmem [shape: f32[1,32], index: 2, kind: input, shape index: {}]   ;;  %s7688_s3 = inlined_call_operand.vmem [shape: f32[1,32], index: 3, kind: input, shape index: {}]   ;;  %s7689_s4 = inlined_call_operand.vmem [shape: f32[2,4,32,8], index: 4, kind: input, shape index: {}]   ;;  %s7690_s5 = inlined_call_operand.vmem [shape: f32[2,4,1,8], index: 5, kind: input, shape index: {}]   ;;  %s7691_s6 = inlined_call_operand.vmem [shape: f32[2,4,32,8], index: 6, kind: input, shape index: {}]   ;;  %s7692_s7 = inlined_call_operand.vmem [shape: f32[2,4,1,8], index: 7, kind: input, shape index: {}]   ;;  %s7693_s8 = inlined_call_operand.vmem [shape: f32[2,4,32,8], index: 8, kind: input, shape index: {}]   ;;  %s7694_s9 = inlined_call_operand.vmem [shape: f32[2,4,1,8], index: 9, kind: input, shape index: {}]   ;;  %s7695_s10 = inlined_call_operand.vmem [shape: f32[2,4,8,32], index: 10, kind: input, shape index: {}]   ;;  %s7696_s11 = inlined_call_operand.vmem [shape: f32[2,1,32], index: 11, kind: input, shape index: {}]   ;;  %s7697_s12 = inlined_call_operand.vmem [shape: f32[2,1,32], index: 12, kind: input, shape index: {}]   ;;  %s7698_s13 = inlined_call_operand.vmem [shape: f32[2,1,32], index: 13, kind: input, shape index: {}]   ;;  %s7699_s14 = inlined_call_operand.vmem [shape: f32[2,32,64], index: 14, kind: input, shape index: {}]   ;;  %s7700_s15 = inlined_call_operand.vmem [shape: f32[2,1,64], index: 15, kind: input, shape index: {}]   ;;  %s7701_s16 = inlined_call_operand.vmem [shape: f32[2,64,32], index: 16, kind: input, shape index: {}]   ;;  %s7702_s17 = inlined_call_operand.vmem [shape: f32[2,1,32], index: 17, kind: input, shape index: {}]   ;;  %s7703_s18 = inlined_call_operand.vmem [shape: f32[2,1,32], index: 18, kind: input, shape index: {}]   ;;  %s7704_s19 = inlined_call_operand.vmem [shape: f32[2,1,32], index: 19, kind: input, shape index: {}]   ;;  %s7705_s20 = inlined_call_operand.vmem [shape: f32[8,16], index: 20, kind: input, shape index: {}]   ;;  %s7706_s21 = inlined_call_operand.vmem [shape: f32[1,16], index: 21, kind: input, shape index: {}]   ;;  %s7707_s22 = inlined_call_operand.vmem [shape: f32[16,2], index: 22, kind: input, shape index: {}]   ;;  %s7708_s23 = inlined_call_operand.vmem [shape: f32[1,2], index: 23, kind: input, shape index: {}]   ;;  %s7709_s24 = inlined_call_operand.hbm [shape: f32[2,2], index: 24, kind: output, shape index: {}]  }
   0x1   :  { %7717 = sst [smem:[#allocation5_spill]] %s7685_s0 }
   0x2   :  { %7718 = sst [smem:[#allocation6_spill]] %s7686_s1 }
   0x3   :  { %7719 = sst [smem:[#allocation7_spill]] %s7687_s2 }
   0x4   :  { %7720 = sst [smem:[#allocation8_spill]] %s7688_s3 }
   0x5   :  { %7721 = sst [smem:[#allocation9_spill]] %s7689_s4 }
   0x6   :  { %7722 = sst [smem:[#allocation10_spill]] %s7690_s5 }
   0x7   :  { %7723 = sst [smem:[#allocation11_spill]] %s7691_s6 }
   0x8   :  { %7724 = sst [smem:[#allocation12_spill]] %s7692_s7 }
   0x9   :  { %7725 = sst [smem:[#allocation13_spill]] %s7693_s8 }
   0xa   :  { %s7726_s27 = sld [smem:[#allocation5_spill]]  ;;  %vm84_vm0 = vcmask 261120  }
  0x10   :  { %v78_v0 = vld [vmem:[%s7726_s27] sm:$0xff]  ;;  %v79_v1 = vld [vmem:[%s7726_s27 + $0x8] sm:$0xff] }
  0x11   :  { %29 = vsyncpa [#allocation3], 0  ;;  %v85_v2 = vsel %vm84_vm0, %v78_v0, 0.0  ;;  %v88_v3 = vsel %vm84_vm0, %v79_v1, 0.0  ;;  %s7727_s0 = sld [smem:[#allocation9_spill]]  ;;  %s7728_s8 = sld [smem:[#allocation11_spill]] }
  0x12   :  { %86 = vadd.xlane.f32.xlu0 %v85_v2  ;;  %s7729_s25 = sld [smem:[#allocation13_spill]]  ;;  %s7730_s27 = sld [smem:[#allocation7_spill]]  ;;  %vm441_vm1 = vcmask 64512   ;;  %vm533_vm3 = vcmask 130048   ;;  %vm2456_vm4 = vcmask 523264   ;;  %vm6714_vm5 = vmmov 0  }
  0x13   :  { %s7731_s2 = sld [smem:[#allocation8_spill]]  ;;  %s7732_s30 = sld [smem:[#allocation12_spill]]  ;;  %vm6934_vm2 = vmpackc.low %vm441_vm1, %vm441_vm1  ;;  %vm5079_vm6 = vcmask 1041409   ;;  %vm5236_vm7 = vcmask 9216  }
  0x14   :  { %s7733_s1 = sld [smem:[#allocation10_spill]]  ;;  %s7736_s29 = sld [smem:[#allocation6_spill]] }
  0x16   :  { %89 = vadd.xlane.f32.xlu0 %v88_v3 }
  0x17   :  { %v128_v14 = vld [vmem:[%s7727_s0] sm:$0xff]  ;;  %v129_v15 = vld [vmem:[%s7727_s0 + $0x8] sm:$0xff]  ;;  %v130_v20 = vld [vmem:[%s7727_s0 + $0x10] sm:$0xff] }
  0x18   :  { %v6256_v16 = vpack.c.bf16 %v129_v15, %v128_v14  ;;  %v148_v17 = vld [vmem:[%s7728_s8] sm:$0xff]  ;;  %v149_v18 = vld [vmem:[%s7728_s8 + $0x8] sm:$0xff]  ;;  %v131_v21 = vld [vmem:[%s7727_s0 + $0x18] sm:$0xff] }
  0x19   :  { %v6264_v19 = vpack.c.bf16 %v149_v18, %v148_v17  ;;  %v6260_v22 = vpack.c.bf16 %v131_v21, %v130_v20  ;;  %v150_v23 = vld [vmem:[%s7728_s8 + $0x10] sm:$0xff]  ;;  %v151_v24 = vld [vmem:[%s7728_s8 + $0x18] sm:$0xff]  ;;  %v168_v26 = vld [vmem:[%s7729_s25] sm:$0xff] }
  0x1a   :  { %6257 = vmatprep.subr.bf16.mxu0 %v6256_v16  ;;  %v6268_v25 = vpack.c.bf16 %v151_v24, %v150_v23  ;;  %v169_v27 = vld [vmem:[%s7729_s25 + $0x8] sm:$0xff]  ;;  %v5252_v36 = vld [vmem:[%s7730_s27] ss:$0 sm:$0xff]  ;;  %v170_v43 = vld [vmem:[%s7729_s25 + $0x10] sm:$0xff] }
  0x1b   :  { %6259 = vmatpush3.bf16.msra.mxu0 %v6256_v16  ;;  %6265 = vmatprep.subr.bf16.mxu1 %v6264_v19  ;;  %v6272_v28 = vpack.c.bf16 %v169_v27, %v168_v26  ;;  %v5253_v38 = vld [vmem:[%s7731_s2] ss:$0 sm:$0xff]  ;;  %v171_v44 = vld [vmem:[%s7729_s25 + $0x18] sm:$0xff]  ;;  %v153_v49 = vld [vmem:[%s7728_s8 + $0x28] sm:$0xff] }
  0x1c   :  { %6267 = vmatpush3.bf16.msra.mxu1 %v6264_v19  ;;  %6261 = vmatprep.subr.bf16.mxu0 %v6260_v22  ;;  %v6276_v47 = vpack.c.bf16 %v171_v44, %v170_v43  ;;  %v152_v48 = vld [vmem:[%s7728_s8 + $0x20] sm:$0xff]  ;;  %v154_v51 = vld [vmem:[%s7728_s8 + $0x30] sm:$0xff]  ;;  %v155_v52 = vld [vmem:[%s7728_s8 + $0x38] sm:$0xff] }
  0x1d   :  { %6269 = vmatprep.subr.bf16.mxu1 %v6268_v25  ;;  %v6298_v50 = vpack.c.bf16 %v153_v49, %v152_v48  ;;  %v6302_v53 = vpack.c.bf16 %v155_v52, %v154_v51  ;;  %v5257_v54 = vld [vmem:[%s7732_s30] ss:$0 sm:$0xff]  ;;  %v6957_v15 = vld [vmem:[%s7736_s29 + $0x8] sm:$0xff]  ;;  %v174_v51 = vld [vmem:[%s7729_s25 + $0x30] sm:$0xff] }
  0x1e   :  { %v5254_v55 = vld [vmem:[%s7733_s1] ss:$0 sm:$0xff]  ;;  %v173_v49 = vld [vmem:[%s7729_s25 + $0x28] sm:$0xff]  ;;  %v175_v52 = vld [vmem:[%s7729_s25 + $0x38] sm:$0xff] }
  0x1f   :  { %6263 = vmatpush3.bf16.msra.mxu0 %v6260_v22  ;;  %v6962_v18 = vld [vmem:[%s7736_s29] sm:$0xff] }
  0x20   :  { %6271 = vmatpush3.bf16.msra.mxu1 %v6268_v25  ;;  %6273 = vmatprep.subr.bf16.mxu0 %v6272_v28  ;;  %v172_v48 = vld [vmem:[%s7729_s25 + $0x20] sm:$0xff] }
  0x9f   :  { %v87_v4 = vpop.xlane.xlu0 %86 }
  0xa0   :  { %v92_v5 = vmul.f32 0.03125, %v87_v4 }
  0xa2   :  { %v94_v6 = vsub.f32 %v78_v0, %v92_v5 }
  0xa3   :  { %v90_v7 = vpop.xlane.xlu0 %89 }
  0xa4   :  { %v93_v8 = vmul.f32 0.03125, %v90_v7  ;;  %v96_v9 = vmul.f32 %v94_v6, %v94_v6 }
  0xa6   :  { %v95_v10 = vsub.f32 %v79_v1, %v93_v8  ;;  %v98_v11 = vsel %vm84_vm0, %v96_v9, 0.0  ;;  %v5260_v1 = vld [vmem:[%s7694_s9] ss:$0 sm:$0xff]  ;;  %v5272_v8 = vld [vmem:[%s7732_s30 + $0x1] ss:$0 sm:$0xff] }
  0xa7   :  { %99 = vadd.xlane.f32.xlu1 %v98_v11 }
  0xa8   :  { %v97_v12 = vmul.f32 %v95_v10, %v95_v10 }
  0xaa   :  { %v101_v13 = vsel %vm84_vm0, %v97_v12, 0.0 }
  0xab   :  { %102 = vadd.xlane.f32.xlu1 %v101_v13 }
 0x134   :  { %v100_v29 = vpop.xlane.xlu1 %99 }
 0x135   :  { %v104_v30 = vmul.f32 0.03125, %v100_v29 }
 0x137   :  { %v106_v31 = vadd.f32 1e-12, %v104_v30 }
 0x138   :  { %v103_v32 = vpop.xlane.xlu1 %102 }
 0x139   :  { %6595 = vrsqrt.f32 %v106_v31  ;;  %v105_v33 = vmul.f32 0.03125, %v103_v32 }
 0x13b   :  { %v107_v34 = vadd.f32 1e-12, %v105_v33 }
 0x13d   :  { %6597 = vrsqrt.f32 %v107_v34  ;;  %v132_v34 = vld [vmem:[%s7727_s0 + $0x20] sm:$0xff] }
 0x143   :  { %v6596_v35 = vpop.eup %6595 }
 0x144   :  { %v110_v37 = vmul.f32 %v6596_v35, %v94_v6  ;;  %v133_v35 = vld [vmem:[%s7727_s0 + $0x28] sm:$0xff] }
 0x146   :  { %v118_v39 = vmul.f32 %v5252_v36, %v110_v37 }
 0x147   :  { %v6598_v40 = vpop.eup %6597 }
 0x148   :  { %v6888_v41 = vadd.f32 %v5253_v38, %v118_v39  ;;  %v111_v42 = vmul.f32 %v6598_v40, %v95_v10  ;;  %v134_v40 = vld [vmem:[%s7727_s0 + $0x30] sm:$0xff] }
 0x14a   :  { %v119_v45 = vmul.f32 %v5252_v36, %v111_v42  ;;  %5776 = vmatprep.mubr.msk.f32.mxu0 %vm84_vm0, %v6888_v41  ;;  %5787 = vmatprep.mubr.msk.f32.mxu1 %vm84_vm0, %v6888_v41  ;;  %v6290_v36 = vpack.c.bf16 %v133_v35, %v132_v34  ;;  %v135_v42 = vld [vmem:[%s7727_s0 + $0x38] sm:$0xff] }
 0x14c   :  { %v6900_v46 = vadd.f32 %v5253_v38, %v119_v45 }
 0x14e   :  { %5777 = vmatmul.mubr.msk.f32.vlgmr.msra.gmra.mrb[0].mxu0 %vm84_vm0, %v6900_v46  ;;  %5788 = vmatmul.mubr.msk.f32.vlgmr.msra.gmra.mrb[0].mxu1 %vm84_vm0, %v6900_v46 }
 0x14f   :  { %6275 = vmatpush3.bf16.msra.mxu0 %v6272_v28  ;;  %5798 = vmatprep.mubr.msk.f32.mxu0 %vm84_vm0, %v6888_v41 }
 0x150   :  { %6277 = vmatprep.subr.bf16.mxu0 %v6276_v47 }
 0x153   :  { %6279 = vmatpush3.bf16.msra.mxu0 %v6276_v47  ;;  %v6294_v47 = vpack.c.bf16 %v135_v42, %v134_v40  ;;  %v178_v40 = vld [vmem:[%s7729_s25 + $0x50] sm:$0xff]  ;;  %v179_v42 = vld [vmem:[%s7729_s25 + $0x58] sm:$0xff] }
 0x154   :  { %6299 = vmatprep.subr.bf16.mxu0 %v6298_v50 }
 0x156   :  { %5799 = vmatmul.mubr.msk.f32.vlgmr.msra.gmra.mrb[2].mxu0 %vm84_vm0, %v6900_v46 }
 0x157   :  { %6301 = vmatpush3.bf16.msra.mxu0 %v6298_v50  ;;  %5834 = vmatprep.mubr.msk.f32.mxu0 %vm84_vm0, %v6888_v41  ;;  %v6306_v50 = vpack.c.bf16 %v173_v49, %v172_v48 }
 0x158   :  { %6303 = vmatprep.subr.bf16.mxu0 %v6302_v53 }
 0x15b   :  { %6305 = vmatpush3.bf16.msra.mxu0 %v6302_v53  ;;  %v6310_v53 = vpack.c.bf16 %v175_v52, %v174_v51  ;;  %v5288_v51 = vld [vmem:[%s7733_s1 + $0x2] ss:$0 sm:$0xff]  ;;  %v158_v52 = vld [vmem:[%s7728_s8 + $0x50] sm:$0xff] }
 0x15e   :  { %5835 = vmatmul.mubr.msk.f32.vlgmr.msra.gmra.mrb[4].mxu0 %vm84_vm0, %v6900_v46 }
 0x221   :  { %v5778_v56 = vpop.f32.mrb[0].mxu0  ;;  %v5789_v57 = vpop.f32.mrb[0].mxu1 }
 0x222   :  { %v357_v58 = vadd.f32 %v5789_v57, %v5257_v54  ;;  %v270_v59 = vpop.f32.mrb[1].mxu0  ;;  %v351_v60 = vpop.f32.mrb[1].mxu1  ;;  %v276_v6 = vadd.f32 %v5778_v56, %v5254_v55  ;;  %v5269_v56 = vld [vmem:[%s7733_s1 + $0x1] ss:$0 sm:$0xff] }
 0x223   :  { %v271_v61 = vadd.f32 %v5254_v55, %v270_v59  ;;  %v352_v62 = vadd.f32 %v5257_v54, %v351_v60 }
 0x225   :  { %v6280_v0 = vpack.c.bf16 %v357_v58, %v352_v62  ;;  %5805 = vmatprep.mubr.msk.f32.mxu1 %vm441_vm1, %v271_v61  ;;  %v5275_v61 = vld [vmem:[%s7694_s9 + $0x1] ss:$0 sm:$0xff] }
 0x227   :  { %6282 = vmatprep.subr.msk.bf16.mxu1 %vm6934_vm2, %v6280_v0 }
 0x228   :  { %6285 = vmatpush3.bf16.xpose.msk.msra.mxu1 %vm6934_vm2, %v6280_v0 }
 0x229   :  { %v5800_v2 = vpop.f32.mrb[2].mxu0 }
 0x22a   :  { %v438_v3 = vadd.f32 %v5800_v2, %v5260_v1  ;;  %v432_v4 = vpop.f32.mrb[3].mxu0 }
 0x22b   :  { %v433_v5 = vadd.f32 %v5260_v1, %v432_v4 }
 0x22d   :  { %v6286_v7 = vpack.c.bf16 %v438_v3, %v433_v5 }
 0x22f   :  { %6287 = vmatprep.subr.bf16.mxu1 %v6286_v7  ;;  %5806 = vmatmul.mubr.msk.f32.vlgmr.msra.gmra.mrb[2].mxu1 %vm441_vm1, %v276_v6 }
 0x230   :  { %6289 = vmatpush3.bf16.msra.mxu1 %v6286_v7 }
 0x231   :  { %v5836_v9 = vpop.f32.mrb[4].mxu0  ;;  %6291 = vmatprep.subr.bf16.mxu1 %v6290_v36 }
 0x232   :  { %v796_v10 = vadd.f32 %v5836_v9, %v5272_v8  ;;  %v790_v11 = vpop.f32.mrb[5].mxu0 }
 0x233   :  { %v791_v12 = vadd.f32 %v5272_v8, %v790_v11 }
 0x235   :  { %v6314_v13 = vpack.c.bf16 %v796_v10, %v791_v12 }
 0x237   :  { %6316 = vmatprep.subr.msk.bf16.mxu0 %vm6934_vm2, %v6314_v13 }
 0x238   :  { %6319 = vmatpush3.bf16.xpose.msk.msra.mxu0 %vm6934_vm2, %v6314_v13 }
 0x302   :  { %v5807_v14 = vpop.f32.mrb[2].mxu1 }
 0x303   :  { %v530_v16 = vmul.f32 0.35355338, %v5807_v14  ;;  %v520_v17 = vpop.f32.mrb[3].mxu1 }
 0x304   :  { %v529_v19 = vmul.f32 0.35355338, %v520_v17 }
 0x305   :  { %v532_v20 = vadd.f32 %v530_v16, %v6957_v15 }
 0x306   :  { %v531_v21 = vadd.f32 %v529_v19, %v6962_v18 }
 0x307   :  { %v537_v22 = vsel %vm533_vm3, %v532_v20, -inf }
 0x308   :  { %538 = vmax.xlane.f32.xlu1 %v537_v22  ;;  %v534_v23 = vsel %vm533_vm3, %v531_v21, -inf }
 0x309   :  { %535 = vmax.xlane.f32.xlu0 %v534_v23 }
 0x395   :  { %v539_v24 = vpop.xlane.xlu1 %538 }
 0x396   :  { %v541_v25 = vsub.f32 %v532_v20, %v539_v24  ;;  %v536_v26 = vpop.xlane.xlu0 %535  ;;  %v136_v24 = vld [vmem:[%s7727_s0 + $0x40] sm:$0xff] }
 0x397   :  { %v540_v27 = vsub.f32 %v531_v21, %v536_v26 }
 0x398   :  { %v544_v28 = vmul.f32 1.442695, %v541_v25  ;;  %v137_v25 = vld [vmem:[%s7727_s0 + $0x48] sm:$0xff] }
 0x399   :  { %v542_v29 = vmul.f32 1.442695, %v540_v27  ;;  %v6324_v26 = vpack.c.bf16 %v137_v25, %v136_v24  ;;  %v189_v27 = vld [vmem:[%s7695_s10 + $0x8] sm:$0xff] }
 0x39a   :  { %6599 = vpow2.f32 %v544_v28  ;;  %5862 = vmatprep.subr.mxu0 %v189_v27 }
 0x39b   :  { %6601 = vpow2.f32 %v542_v29 }
 0x3a4   :  { %v6600_v30 = vpop.eup %6599 }
 0x3a5   :  { %v6602_v31 = vpop.eup %6601  ;;  %v549_v32 = vsel %vm533_vm3, %v6600_v30, 0.0 }
 0x3a6   :  { %550 = vadd.xlane.f32.xlu1 %v549_v32  ;;  %v546_v33 = vsel %vm533_vm3, %v6602_v31, 0.0  ;;  %v139_v32 = vld [vmem:[%s7727_s0 + $0x58] sm:$0xff] }
 0x3a7   :  { %547 = vadd.xlane.f32.xlu0 %v546_v33 }
 0x433   :  { %v551_v37 = vpop.xlane.xlu1 %550 }
 0x434   :  { %6603 = vrcp.f32 %v551_v37  ;;  %v548_v38 = vpop.xlane.xlu0 %547  ;;  %v176_v37 = vld [vmem:[%s7729_s25 + $0x40] sm:$0xff] }
 0x435   :  { %6605 = vrcp.f32 %v548_v38  ;;  %v177_v38 = vld [vmem:[%s7729_s25 + $0x48] sm:$0xff] }
 0x43e   :  { %v6604_v39 = vpop.eup %6603 }
 0x43f   :  { %v6606_v43 = vpop.eup %6605  ;;  %v555_v45 = vmul.f32 %v6604_v39, %v6600_v30  ;;  %v6340_v39 = vpack.c.bf16 %v177_v38, %v176_v37 }
 0x440   :  { %v554_v44 = vmul.f32 %v6606_v43, %v6602_v31  ;;  %v138_v31 = vld [vmem:[%s7727_s0 + $0x50] sm:$0xff]  ;;  %v6344_v43 = vpack.c.bf16 %v179_v42, %v178_v40  ;;  %v180_v42 = vld [vmem:[%s7729_s25 + $0x60] sm:$0xff] }
 0x442   :  { %5812 = vmatprep.mubr.msk.f32.mxu1 %vm533_vm3, %v554_v44  ;;  %v188_v44 = vld [vmem:[%s7695_s10] sm:$0xff] }
 0x443   :  { %5813 = vmatmul.mubr.msk.f32.vlgmr.msra.gmra.mrb[4].mxu1 %vm533_vm3, %v555_v45  ;;  %v156_v45 = vld [vmem:[%s7728_s8 + $0x40] sm:$0xff] }
 0x444   :  { %6293 = vmatpush3.bf16.msra.mxu1 %v6290_v36  ;;  %5823 = vmatprep.mubr.msk.f32.mxu1 %vm84_vm0, %v6888_v41  ;;  %v6328_v36 = vpack.c.bf16 %v139_v32, %v138_v31  ;;  %v190_v31 = vld [vmem:[%s7695_s10 + $0x10] sm:$0xff] }
 0x445   :  { %6295 = vmatprep.subr.bf16.mxu1 %v6294_v47 }
 0x448   :  { %6297 = vmatpush3.bf16.msra.mxu1 %v6294_v47  ;;  %v157_v47 = vld [vmem:[%s7728_s8 + $0x48] sm:$0xff] }
 0x449   :  { %6307 = vmatprep.subr.bf16.mxu1 %v6306_v50 }
 0x44b   :  { %5824 = vmatmul.mubr.msk.f32.vlgmr.msra.gmra.mrb[6].mxu1 %vm84_vm0, %v6900_v46 }
 0x44c   :  { %6309 = vmatpush3.bf16.msra.mxu1 %v6306_v50  ;;  %5845 = vmatprep.mubr.msk.f32.mxu1 %vm84_vm0, %v6888_v41  ;;  %v6332_v50 = vpack.c.bf16 %v157_v47, %v156_v45  ;;  %v182_v45 = vld [vmem:[%s7729_s25 + $0x70] sm:$0xff]  ;;  %v183_v47 = vld [vmem:[%s7729_s25 + $0x78] sm:$0xff] }
 0x44d   :  { %6311 = vmatprep.subr.bf16.mxu1 %v6310_v53 }
 0x450   :  { %6313 = vmatpush3.bf16.msra.mxu1 %v6310_v53  ;;  %v159_v53 = vld [vmem:[%s7728_s8 + $0x58] sm:$0xff] }
 0x453   :  { %5846 = vmatmul.mubr.msk.f32.vlgmr.msra.gmra.mrb[8].mxu1 %vm84_vm0, %v6900_v46 }
 0x516   :  { %v7004_v54 = vpop.f32.mrb[4].mxu1 }
 0x517   :  { %v7006_v55 = vpop.f32.mrb[5].mxu1 }
 0x51e   :  { %v5825_v57 = vpop.f32.mrb[6].mxu1 }
 0x51f   :  { %v709_v58 = vpop.f32.mrb[7].mxu1  ;;  %v715_v60 = vadd.f32 %v5825_v57, %v5269_v56 }
 0x520   :  { %v710_v59 = vadd.f32 %v5269_v56, %v709_v58 }
 0x522   :  { %5852 = vmatprep.mubr.msk.f32.mxu0 %vm441_vm1, %v710_v59  ;;  %v6336_v59 = vpack.c.bf16 %v159_v53, %v158_v52  ;;  %v162_v52 = vld [vmem:[%s7728_s8 + $0x70] sm:$0xff]  ;;  %v163_v53 = vld [vmem:[%s7728_s8 + $0x78] sm:$0xff] }
 0x523   :  { %5853 = vmatmul.mubr.msk.f32.vlgmr.msra.gmra.mrb[6].mxu0 %vm441_vm1, %v715_v60 }
 0x524   :  { %5863 = vmatpush3.msra.mxu0 %v189_v27 }
 0x525   :  { %5867 = vmatprep.subr.mxu0 %v188_v44 }
 0x526   :  { %v5847_v62 = vpop.f32.mrb[8].mxu1 }
 0x527   :  { %v877_v0 = vadd.f32 %v5847_v62, %v5275_v61  ;;  %v871_v1 = vpop.f32.mrb[9].mxu1 }
 0x528   :  { %v872_v2 = vadd.f32 %v5275_v61, %v871_v1 }
 0x52a   :  { %v6320_v3 = vpack.c.bf16 %v877_v0, %v872_v2 }
 0x52c   :  { %6321 = vmatprep.subr.bf16.mxu1 %v6320_v3 }
 0x52d   :  { %6323 = vmatpush3.bf16.msra.mxu1 %v6320_v3 }
 0x52e   :  { %6325 = vmatprep.subr.bf16.mxu1 %v6324_v26 }
 0x5f6   :  { %v5854_v4 = vpop.f32.mrb[6].mxu0 }
 0x5f7   :  { %v968_v5 = vmul.f32 0.35355338, %v5854_v4  ;;  %v958_v6 = vpop.f32.mrb[7].mxu0 }
 0x5f8   :  { %v967_v7 = vmul.f32 0.35355338, %v958_v6 }
 0x5f9   :  { %v970_v8 = vadd.f32 %v968_v5, %v6957_v15 }
 0x5fa   :  { %v969_v9 = vadd.f32 %v967_v7, %v6962_v18 }
 0x5fb   :  { %v974_v10 = vsel %vm533_vm3, %v970_v8, -inf }
 0x5fc   :  { %975 = vmax.xlane.f32.xlu1 %v974_v10  ;;  %v971_v11 = vsel %vm533_vm3, %v969_v9, -inf }
 0x5fd   :  { %972 = vmax.xlane.f32.xlu0 %v971_v11 }
 0x689   :  { %v976_v12 = vpop.xlane.xlu1 %975 }
 0x68a   :  { %v978_v13 = vsub.f32 %v970_v8, %v976_v12  ;;  %v973_v14 = vpop.xlane.xlu0 %972 }
 0x68b   :  { %v977_v16 = vsub.f32 %v969_v9, %v973_v14 }
 0x68c   :  { %v981_v17 = vmul.f32 1.442695, %v978_v13 }
 0x68d   :  { %v979_v19 = vmul.f32 1.442695, %v977_v16 }
 0x68e   :  { %6607 = vpow2.f32 %v981_v17 }
 0x68f   :  { %6609 = vpow2.f32 %v979_v19 }
 0x698   :  { %v6608_v20 = vpop.eup %6607 }
 0x699   :  { %v6610_v21 = vpop.eup %6609  ;;  %v986_v22 = vsel %vm533_vm3, %v6608_v20, 0.0 }
 0x69a   :  { %987 = vadd.xlane.f32.xlu1 %v986_v22  ;;  %v983_v23 = vsel %vm533_vm3, %v6610_v21, 0.0 }
 0x69b   :  { %984 = vadd.xlane.f32.xlu0 %v983_v23 }
 0x727   :  { %v988_v28 = vpop.xlane.xlu1 %987 }
 0x728   :  { %6611 = vrcp.f32 %v988_v28  ;;  %v985_v29 = vpop.xlane.xlu0 %984  ;;  %v140_v28 = vld [vmem:[%s7727_s0 + $0x60] sm:$0xff] }
 0x729   :  { %6613 = vrcp.f32 %v985_v29  ;;  %v141_v29 = vld [vmem:[%s7727_s0 + $0x68] sm:$0xff] }
 0x732   :  { %v6612_v30 = vpop.eup %6611 }
 0x733   :  { %v6614_v33 = vpop.eup %6613  ;;  %v992_v35 = vmul.f32 %v6612_v30, %v6608_v20  ;;  %v6358_v30 = vpack.c.bf16 %v141_v29, %v140_v28  ;;  %v191_v29 = vld [vmem:[%s7695_s10 + $0x18] sm:$0xff] }
 0x734   :  { %v991_v34 = vmul.f32 %v6614_v33, %v6610_v21 }
 0x736   :  { %5859 = vmatprep.mubr.msk.f32.mxu1 %vm533_vm3, %v991_v34 }
 0x737   :  { %5860 = vmatmul.mubr.msk.f32.vlgmr.msra.gmra.mrb[10].mxu1 %vm533_vm3, %v992_v35  ;;  %v142_v35 = vld [vmem:[%s7727_s0 + $0x70] sm:$0xff] }
 0x738   :  { %6327 = vmatpush3.bf16.msra.mxu1 %v6324_v26  ;;  %5880 = vmatprep.mubr.msk.f32.mxu1 %vm84_vm0, %v6888_v41 }
 0x739   :  { %6329 = vmatprep.subr.bf16.mxu1 %v6328_v36 }
 0x73c   :  { %6331 = vmatpush3.bf16.msra.mxu1 %v6328_v36  ;;  %v143_v36 = vld [vmem:[%s7727_s0 + $0x78] sm:$0xff] }
 0x73d   :  { %6341 = vmatprep.subr.bf16.mxu1 %v6340_v39  ;;  %v6362_v40 = vpack.c.bf16 %v143_v36, %v142_v35 }
 0x73f   :  { %5881 = vmatmul.mubr.msk.f32.vlgmr.msra.gmra.mrb[12].mxu1 %vm84_vm0, %v6900_v46 }
 0x740   :  { %6343 = vmatpush3.bf16.msra.mxu1 %v6340_v39  ;;  %5902 = vmatprep.mubr.msk.f32.mxu1 %vm84_vm0, %v6888_v41 }
 0x741   :  { %6345 = vmatprep.subr.bf16.mxu1 %v6344_v43 }
 0x744   :  { %6347 = vmatpush3.bf16.msra.mxu1 %v6344_v43  ;;  %v181_v43 = vld [vmem:[%s7729_s25 + $0x68] sm:$0xff] }
 0x747   :  { %5903 = vmatmul.mubr.msk.f32.vlgmr.msra.gmra.mrb[14].mxu1 %vm84_vm0, %v6900_v46 }
 0x80a   :  { %v5861_v48 = vpop.f32.mrb[10].mxu1 }
 0x80b   :  { %v1065_v49 = vpop.f32.mrb[11].mxu1 }
 0x80c   :  { %5864 = vmatprep.mubr.msk.f32.mxu0 %vm441_vm1, %v1065_v49  ;;  %v160_v49 = vld [vmem:[%s7728_s8 + $0x60] sm:$0xff] }
 0x80d   :  { %5865 = vmatmul.mubr.msk.f32.vlgmr.msra.gmra.mrb[8].mxu0 %vm441_vm1, %v5861_v48  ;;  %v6378_v48 = vpack.c.bf16 %v183_v47, %v182_v45 }
 0x80e   :  { %5868 = vmatpush3.msra.mxu0 %v188_v44  ;;  %5869 = vmatprep.mubr.msk.f32.mxu0 %vm441_vm1, %v7006_v55  ;;  %v5294_v55 = vld [vmem:[%s7694_s9 + $0x2] ss:$0 sm:$0xff]  ;;  %v6374_v44 = vpack.c.bf16 %v181_v43, %v180_v42 }
 0x80f   :  { %6333 = vmatprep.subr.bf16.mxu0 %v6332_v50 }
 0x812   :  { %v5882_v56 = vpop.f32.mrb[12].mxu1 }
 0x813   :  { %v1314_v57 = vadd.f32 %v5882_v56, %v5288_v51  ;;  %v1308_v58 = vpop.f32.mrb[13].mxu1 }
 0x814   :  { %v1309_v0 = vadd.f32 %v5288_v51, %v1308_v58  ;;  %v6370_v58 = vpack.c.bf16 %v163_v53, %v162_v52 }
 0x815   :  { %5870 = vmatmul.mubr.msk.f32.vlgmr.msra.gmra.mrb[8].mxu0 %vm441_vm1, %v7004_v54  ;;  %v5291_v54 = vld [vmem:[%s7732_s30 + $0x2] ss:$0 sm:$0xff] }
 0x816   :  { %6335 = vmatpush3.bf16.msra.mxu0 %v6332_v50  ;;  %5891 = vmatprep.mubr.msk.f32.mxu0 %vm84_vm0, %v6888_v41  ;;  %v161_v50 = vld [vmem:[%s7728_s8 + $0x68] sm:$0xff] }
 0x817   :  { %6337 = vmatprep.subr.bf16.mxu0 %v6336_v59  ;;  %v6366_v51 = vpack.c.bf16 %v161_v50, %v160_v49 }
 0x81a   :  { %6339 = vmatpush3.bf16.msra.mxu0 %v6336_v59  ;;  %v5904_v60 = vpop.f32.mrb[14].mxu1  ;;  %v5305_v59 = vld [vmem:[%s7733_s1 + $0x3] ss:$0 sm:$0xff] }
 0x81b   :  { %v1476_v61 = vadd.f32 %v5904_v60, %v5294_v55  ;;  %v1470_v62 = vpop.f32.mrb[15].mxu1 }
 0x81c   :  { %v1471_v1 = vadd.f32 %v5294_v55, %v1470_v62 }
 0x81d   :  { %5892 = vmatmul.mubr.msk.f32.vlgmr.msra.gmra.mrb[10].mxu0 %vm84_vm0, %v6900_v46 }
 0x81e   :  { %v6354_v2 = vpack.c.bf16 %v1476_v61, %v1471_v1  ;;  %5909 = vmatprep.mubr.msk.f32.mxu0 %vm441_vm1, %v1309_v0  ;;  %v5311_v0 = vld [vmem:[%s7694_s9 + $0x3] ss:$0 sm:$0xff] }
 0x820   :  { %6355 = vmatprep.subr.bf16.mxu1 %v6354_v2 }
 0x821   :  { %6357 = vmatpush3.bf16.msra.mxu1 %v6354_v2 }
 0x822   :  { %6359 = vmatprep.subr.bf16.mxu1 %v6358_v30 }
 0x8f0   :  { %v5893_v3 = vpop.f32.mrb[10].mxu0 }
 0x8f1   :  { %v1395_v4 = vadd.f32 %v5893_v3, %v5291_v54  ;;  %v1389_v5 = vpop.f32.mrb[11].mxu0 }
 0x8f2   :  { %v1390_v6 = vadd.f32 %v5291_v54, %v1389_v5  ;;  %v5308_v5 = vld [vmem:[%s7732_s30 + $0x3] ss:$0 sm:$0xff] }
 0x8f4   :  { %v6348_v7 = vpack.c.bf16 %v1395_v4, %v1390_v6 }
 0x8f6   :  { %6350 = vmatprep.subr.msk.bf16.mxu0 %vm6934_vm2, %v6348_v7 }
 0x8f7   :  { %6353 = vmatpush3.bf16.xpose.msk.msra.mxu0 %vm6934_vm2, %v6348_v7 }
 0x8f8   :  { %5919 = vmatprep.subr.mxu0 %v190_v31 }
 0x8fe   :  { %5910 = vmatmul.mubr.msk.f32.vlgmr.msra.gmra.mrb[12].mxu0 %vm441_vm1, %v1314_v57 }
 0x8ff   :  { %5920 = vmatpush3.msra.mxu0 %v190_v31 }
 0x900   :  { %6367 = vmatprep.subr.bf16.mxu0 %v6366_v51 }
 0x9d1   :  { %v5911_v8 = vpop.f32.mrb[12].mxu0 }
 0x9d2   :  { %v1567_v9 = vmul.f32 0.35355338, %v5911_v8  ;;  %v1557_v10 = vpop.f32.mrb[13].mxu0 }
 0x9d3   :  { %v1566_v11 = vmul.f32 0.35355338, %v1557_v10 }
 0x9d4   :  { %v1569_v12 = vadd.f32 %v1567_v9, %v6957_v15 }
 0x9d5   :  { %v1568_v13 = vadd.f32 %v1566_v11, %v6962_v18 }
 0x9d6   :  { %v1573_v14 = vsel %vm533_vm3, %v1569_v12, -inf }
 0x9d7   :  { %1574 = vmax.xlane.f32.xlu1 %v1573_v14  ;;  %v1570_v16 = vsel %vm533_vm3, %v1568_v13, -inf }
 0x9d8   :  { %1571 = vmax.xlane.f32.xlu0 %v1570_v16 }
 0xa64   :  { %v1575_v17 = vpop.xlane.xlu1 %1574 }
 0xa65   :  { %v1577_v19 = vsub.f32 %v1569_v12, %v1575_v17  ;;  %v1572_v20 = vpop.xlane.xlu0 %1571 }
 0xa66   :  { %v1576_v21 = vsub.f32 %v1568_v13, %v1572_v20 }
 0xa67   :  { %v1580_v22 = vmul.f32 1.442695, %v1577_v19 }
 0xa68   :  { %v1578_v23 = vmul.f32 1.442695, %v1576_v21 }
 0xa69   :  { %6615 = vpow2.f32 %v1580_v22 }
 0xa6a   :  { %6617 = vpow2.f32 %v1578_v23 }
 0xa73   :  { %v6616_v24 = vpop.eup %6615 }
 0xa74   :  { %v6618_v25 = vpop.eup %6617  ;;  %v1585_v26 = vsel %vm533_vm3, %v6616_v24, 0.0 }
 0xa75   :  { %1586 = vadd.xlane.f32.xlu1 %v1585_v26  ;;  %v1582_v27 = vsel %vm533_vm3, %v6618_v25, 0.0 }
 0xa76   :  { %1583 = vadd.xlane.f32.xlu0 %v1582_v27 }
 0xb02   :  { %v1587_v32 = vpop.xlane.xlu1 %1586 }
 0xb03   :  { %6619 = vrcp.f32 %v1587_v32  ;;  %v1584_v33 = vpop.xlane.xlu0 %1583 }
 0xb04   :  { %6621 = vrcp.f32 %v1584_v33 }
 0xb0d   :  { %v6620_v34 = vpop.eup %6619 }
 0xb0e   :  { %v6622_v37 = vpop.eup %6621  ;;  %v1591_v39 = vmul.f32 %v6620_v34, %v6616_v24 }
 0xb0f   :  { %v1590_v38 = vmul.f32 %v6622_v37, %v6618_v25 }
 0xb11   :  { %5916 = vmatprep.mubr.msk.f32.mxu1 %vm533_vm3, %v1590_v38  ;;  %v5322_v38 = vld [vmem:[%s7696_s11] ss:$0 sm:$0xff] }
 0xb12   :  { %5917 = vmatmul.mubr.msk.f32.vlgmr.msra.gmra.mrb[16].mxu1 %vm533_vm3, %v1591_v39 }
 0xb13   :  { %6361 = vmatpush3.bf16.msra.mxu1 %v6358_v30  ;;  %5932 = vmatprep.mubr.msk.f32.mxu1 %vm84_vm0, %v6888_v41 }
 0xb14   :  { %6363 = vmatprep.subr.bf16.mxu1 %v6362_v40 }
 0xb17   :  { %6365 = vmatpush3.bf16.msra.mxu1 %v6362_v40 }
 0xb18   :  { %6375 = vmatprep.subr.bf16.mxu1 %v6374_v44 }
 0xb1a   :  { %5933 = vmatmul.mubr.msk.f32.vlgmr.msra.gmra.mrb[18].mxu1 %vm84_vm0, %v6900_v46 }
 0xb1b   :  { %6377 = vmatpush3.bf16.msra.mxu1 %v6374_v44  ;;  %5954 = vmatprep.mubr.msk.f32.mxu1 %vm84_vm0, %v6888_v41 }
 0xb1c   :  { %6379 = vmatprep.subr.bf16.mxu1 %v6378_v48 }
 0xb1f   :  { %6381 = vmatpush3.bf16.msra.mxu1 %v6378_v48 }
 0xb22   :  { %5955 = vmatmul.mubr.msk.f32.vlgmr.msra.gmra.mrb[20].mxu1 %vm84_vm0, %v6900_v46 }
 0xbe5   :  { %v5918_v56 = vpop.f32.mrb[16].mxu1 }
 0xbe6   :  { %v1664_v57 = vpop.f32.mrb[17].mxu1 }
 0xbe7   :  { %5921 = vmatprep.mubr.msk.f32.mxu0 %vm441_vm1, %v1664_v57 }
 0xbe8   :  { %5922 = vmatmul.mubr.msk.f32.vlgmr.msra.gmra.mrb[8].mxu0 %vm441_vm1, %v5918_v56 }
 0xbe9   :  { %6369 = vmatpush3.bf16.msra.mxu0 %v6366_v51  ;;  %5943 = vmatprep.mubr.msk.f32.mxu0 %vm84_vm0, %v6888_v41 }
 0xbea   :  { %6371 = vmatprep.subr.bf16.mxu0 %v6370_v58 }
 0xbed   :  { %v5934_v55 = vpop.f32.mrb[18].mxu1  ;;  %6373 = vmatpush3.bf16.msra.mxu0 %v6370_v58 }
 0xbee   :  { %v1834_v60 = vadd.f32 %v5934_v55, %v5305_v59  ;;  %v1828_v61 = vpop.f32.mrb[19].mxu1  ;;  %v2332_v55 = vld [vmem:[%s7699_s14 + $0x8] sm:$0xff] }
 0xbef   :  { %v1829_v62 = vadd.f32 %v5305_v59, %v1828_v61  ;;  %v2333_v61 = vld [vmem:[%s7699_s14 + $0x10] sm:$0xff] }
 0xbf0   :  { %5944 = vmatmul.mubr.msk.f32.vlgmr.msra.gmra.mrb[14].mxu0 %vm84_vm0, %v6900_v46 }
 0xbf1   :  { %5961 = vmatprep.mubr.msk.f32.mxu0 %vm441_vm1, %v1829_v62  ;;  %v2334_v62 = vld [vmem:[%s7699_s14 + $0x18] sm:$0xff] }
 0xbf5   :  { %v5956_v1 = vpop.f32.mrb[20].mxu1 }
 0xbf6   :  { %v1996_v2 = vadd.f32 %v5956_v1, %v5311_v0  ;;  %v1990_v54 = vpop.f32.mrb[21].mxu1 }
 0xbf7   :  { %v1991_v3 = vadd.f32 %v5311_v0, %v1990_v54  ;;  %v6396_v0 = vpack.c.bf16 %v2334_v62, %v2333_v61 }
 0xbf9   :  { %v6388_v4 = vpack.c.bf16 %v1996_v2, %v1991_v3 }
 0xbfb   :  { %6389 = vmatprep.subr.bf16.mxu1 %v6388_v4 }
 0xbfc   :  { %6391 = vmatpush3.bf16.msra.mxu1 %v6388_v4 }
 0xcc3   :  { %v5945_v6 = vpop.f32.mrb[14].mxu0 }
 0xcc4   :  { %v1915_v7 = vadd.f32 %v5945_v6, %v5308_v5  ;;  %v1909_v8 = vpop.f32.mrb[15].mxu0 }
 0xcc5   :  { %v1910_v9 = vadd.f32 %v5308_v5, %v1909_v8 }
 0xcc7   :  { %v6382_v10 = vpack.c.bf16 %v1915_v7, %v1910_v9  ;;  %v5323_v7 = vld [vmem:[%s7697_s12] ss:$0 sm:$0xff] }
 0xcc9   :  { %6384 = vmatprep.subr.msk.bf16.mxu0 %vm6934_vm2, %v6382_v10 }
 0xcca   :  { %6387 = vmatpush3.bf16.xpose.msk.msra.mxu0 %vm6934_vm2, %v6382_v10 }
 0xccb   :  { %5971 = vmatprep.subr.mxu0 %v191_v29 }
 0xcd1   :  { %5962 = vmatmul.mubr.msk.f32.vlgmr.msra.gmra.mrb[16].mxu0 %vm441_vm1, %v1834_v60 }
 0xcd2   :  { %5972 = vmatpush3.msra.mxu0 %v191_v29 }
 0xda4   :  { %v5963_v11 = vpop.f32.mrb[16].mxu0 }
 0xda5   :  { %v2087_v12 = vmul.f32 0.35355338, %v5963_v11  ;;  %v2077_v13 = vpop.f32.mrb[17].mxu0  ;;  %v5324_v11 = vld [vmem:[%s7698_s13] ss:$0 sm:$0xff] }
 0xda6   :  { %v2086_v14 = vmul.f32 0.35355338, %v2077_v13 }
 0xda7   :  { %v2089_v16 = vadd.f32 %v2087_v12, %v6957_v15 }
 0xda8   :  { %v2088_v17 = vadd.f32 %v2086_v14, %v6962_v18 }
 0xda9   :  { %v2093_v19 = vsel %vm533_vm3, %v2089_v16, -inf }
 0xdaa   :  { %2094 = vmax.xlane.f32.xlu1 %v2093_v19  ;;  %v2090_v20 = vsel %vm533_vm3, %v2088_v17, -inf  ;;  %v2442_v19 = vld [vmem:[%s7701_s16 + $0x8] sm:$0xff] }
 0xdab   :  { %2091 = vmax.xlane.f32.xlu0 %v2090_v20 }
 0xe37   :  { %v2095_v21 = vpop.xlane.xlu1 %2094 }
 0xe38   :  { %v2097_v22 = vsub.f32 %v2089_v16, %v2095_v21  ;;  %v2092_v23 = vpop.xlane.xlu0 %2091  ;;  %v2443_v21 = vld [vmem:[%s7701_s16 + $0x10] sm:$0xff] }
 0xe39   :  { %v2096_v24 = vsub.f32 %v2088_v17, %v2092_v23  ;;  %v2441_v17 = vld [vmem:[%s7701_s16] sm:$0xff] }
 0xe3a   :  { %v2100_v25 = vmul.f32 1.442695, %v2097_v22  ;;  %v6400_v20 = vpack.c.bf16 %v2442_v19, %v2441_v17  ;;  %v2444_v22 = vld [vmem:[%s7701_s16 + $0x18] sm:$0xff]  ;;  %v5375_v17 = vld [vmem:[%s7729_s25 + $0x90] sm:$0xff] }
 0xe3b   :  { %v2098_v26 = vmul.f32 1.442695, %v2096_v24  ;;  %v6404_v23 = vpack.c.bf16 %v2444_v22, %v2443_v21  ;;  %v2445_v24 = vld [vmem:[%s7701_s16 + $0x20] sm:$0xff]  ;;  %v5376_v19 = vld [vmem:[%s7729_s25 + $0x98] sm:$0xff]  ;;  %v5354_v22 = vld [vmem:[%s7728_s8 + $0x88] sm:$0xff] }
 0xe3c   :  { %6623 = vpow2.f32 %v2100_v25  ;;  %6401 = vmatprep.subr.bf16.mxu0 %v6400_v20  ;;  %v2446_v25 = vld [vmem:[%s7701_s16 + $0x28] sm:$0xff]  ;;  %v5353_v21 = vld [vmem:[%s7728_s8 + $0x80] sm:$0xff] }
 0xe3d   :  { %6625 = vpow2.f32 %v2098_v26  ;;  %v6408_v26 = vpack.c.bf16 %v2446_v25, %v2445_v24 }
 0xe46   :  { %v6624_v27 = vpop.eup %6623 }
 0xe47   :  { %v6626_v28 = vpop.eup %6625  ;;  %v2105_v15 = vsel %vm533_vm3, %v6624_v27, 0.0 }
 0xe48   :  { %2106 = vadd.xlane.f32.xlu1 %v2105_v15  ;;  %v2102_v18 = vsel %vm533_vm3, %v6626_v28, 0.0 }
 0xe49   :  { %2103 = vadd.xlane.f32.xlu0 %v2102_v18  ;;  %v5325_v18 = vld [vmem:[%s7700_s15] ss:$0 sm:$0xff] }
 0xed5   :  { %v2107_v30 = vpop.xlane.xlu1 %2106 }
 0xed6   :  { %6627 = vrcp.f32 %v2107_v30  ;;  %v2104_v31 = vpop.xlane.xlu0 %2103 }
 0xed7   :  { %6629 = vrcp.f32 %v2104_v31 }
 0xee0   :  { %v6628_v32 = vpop.eup %6627 }
 0xee1   :  { %v6630_v33 = vpop.eup %6629  ;;  %v2111_v35 = vmul.f32 %v6628_v32, %v6624_v27  ;;  %v2447_v27 = vld [vmem:[%s7701_s16 + $0x30] sm:$0xff] }
 0xee2   :  { %v2110_v34 = vmul.f32 %v6630_v33, %v6626_v28  ;;  %v2448_v28 = vld [vmem:[%s7701_s16 + $0x38] sm:$0xff] }
 0xee3   :  { %v6412_v15 = vpack.c.bf16 %v2448_v28, %v2447_v27 }
 0xee4   :  { %5968 = vmatprep.mubr.msk.f32.mxu1 %vm533_vm3, %v2110_v34 }
 0xee5   :  { %5969 = vmatmul.mubr.msk.f32.vlgmr.msra.gmra.mrb[22].mxu1 %vm533_vm3, %v2111_v35 }
 0xfb8   :  { %v5970_v36 = vpop.f32.mrb[22].mxu1 }
 0xfb9   :  { %v2184_v37 = vpop.f32.mrb[23].mxu1 }
 0xfba   :  { %5973 = vmatprep.mubr.msk.f32.mxu0 %vm441_vm1, %v2184_v37 }
 0xfbb   :  { %5974 = vmatmul.mubr.msk.f32.vlgmr.msra.gmra.mrb[8].mxu0 %vm441_vm1, %v5970_v36 }
 0xfbc   :  { %6403 = vmatpush3.bf16.msra.mxu0 %v6400_v20  ;;  %v6436_v20 = vpack.c.bf16 %v5376_v19, %v5375_v17  ;;  %v5412_v19 = vld [vmem:[%s7733_s1 + $0x5] ss:$0 sm:$0xff] }
 0xfbd   :  { %6405 = vmatprep.subr.bf16.mxu0 %v6404_v23 }
 0xfc0   :  { %6407 = vmatpush3.bf16.msra.mxu0 %v6404_v23  ;;  %v6424_v23 = vpack.c.bf16 %v5354_v22, %v5353_v21 }
 0xfc1   :  { %6409 = vmatprep.subr.bf16.mxu0 %v6408_v26 }
 0xfc4   :  { %6411 = vmatpush3.bf16.msra.mxu0 %v6408_v26 }
 0xfc5   :  { %6413 = vmatprep.subr.bf16.mxu0 %v6412_v15 }
 0xfc8   :  { %6415 = vmatpush3.bf16.msra.mxu0 %v6412_v15 }
0x108e   :  { %v5975_v39 = vpop.f32.mrb[8].mxu0 }
0x108f   :  { %v2284_v40 = vadd.f32 %v5975_v39, %v5322_v38  ;;  %v2265_v42 = vpop.f32.mrb[9].mxu0 }
0x1090   :  { %v2283_v43 = vadd.f32 %v5322_v38, %v2265_v42 }
0x1091   :  { %v2286_v44 = vadd.f32 %v2284_v40, %v6900_v46 }
0x1092   :  { %v2285_v45 = vadd.f32 %v2283_v43, %v6888_v41  ;;  %v2331_v41 = vld [vmem:[%s7699_s14] sm:$0xff] }
0x1093   :  { %v2292_v47 = vsel %vm84_vm0, %v2286_v44, 0.0  ;;  %v6392_v60 = vpack.c.bf16 %v2332_v55, %v2331_v41 }
0x1094   :  { %2293 = vadd.xlane.f32.xlu1 %v2292_v47  ;;  %v2289_v48 = vsel %vm84_vm0, %v2285_v45, 0.0 }
0x1095   :  { %2290 = vadd.xlane.f32.xlu0 %v2289_v48  ;;  %6393 = vmatprep.subr.bf16.mxu1 %v6392_v60 }
0x1096   :  { %6395 = vmatpush3.bf16.msra.mxu1 %v6392_v60 }
0x1097   :  { %6397 = vmatprep.subr.bf16.mxu1 %v6396_v0 }
0x109a   :  { %6399 = vmatpush3.bf16.msra.mxu1 %v6396_v0 }
0x1121   :  { %v2294_v49 = vpop.xlane.xlu1 %2293 }
0x1122   :  { %v2296_v50 = vmul.f32 0.03125, %v2294_v49  ;;  %v2291_v51 = vpop.xlane.xlu0 %2290 }
0x1123   :  { %v2295_v52 = vmul.f32 0.03125, %v2291_v51 }
0x1124   :  { %v2298_v53 = vsub.f32 %v2286_v44, %v2296_v50 }
0x1125   :  { %v2297_v56 = vsub.f32 %v2285_v45, %v2295_v52 }
0x1126   :  { %v2300_v57 = vmul.f32 %v2298_v53, %v2298_v53 }
0x1127   :  { %v2299_v58 = vmul.f32 %v2297_v56, %v2297_v56 }
0x1128   :  { %v2304_v59 = vsel %vm84_vm0, %v2300_v57, 0.0 }
0x1129   :  { %2305 = vadd.xlane.f32.xlu1 %v2304_v59  ;;  %v2301_v46 = vsel %vm84_vm0, %v2299_v58, 0.0 }
0x112a   :  { %2302 = vadd.xlane.f32.xlu0 %v2301_v46 }
0x11b6   :  { %v2306_v1 = vpop.xlane.xlu1 %2305 }
0x11b7   :  { %v2308_v2 = vmul.f32 0.03125, %v2306_v1  ;;  %v2303_v54 = vpop.xlane.xlu0 %2302 }
0x11b8   :  { %v2307_v3 = vmul.f32 0.03125, %v2303_v54 }
0x11b9   :  { %v2310_v4 = vadd.f32 1e-12, %v2308_v2 }
0x11ba   :  { %v2309_v5 = vadd.f32 1e-12, %v2307_v3 }
0x11bb   :  { %6631 = vrsqrt.f32 %v2310_v4 }
0x11bc   :  { %6633 = vrsqrt.f32 %v2309_v5 }
0x11c5   :  { %v6632_v6 = vpop.eup %6631 }
0x11c6   :  { %v6634_v8 = vpop.eup %6633  ;;  %v2314_v9 = vmul.f32 %v6632_v6, %v2298_v53  ;;  %v5328_v53 = vld [vmem:[%s7702_s17] ss:$0 sm:$0xff] }
0x11c7   :  { %v2313_v10 = vmul.f32 %v6634_v8, %v2297_v56  ;;  %v5334_v8 = vld [vmem:[%s7727_s0 + $0x88] sm:$0xff] }
0x11c8   :  { %v2322_v12 = vmul.f32 %v5323_v7, %v2314_v9 }
0x11c9   :  { %v2321_v13 = vmul.f32 %v5323_v7, %v2313_v10  ;;  %v5333_v7 = vld [vmem:[%s7727_s0 + $0x80] sm:$0xff] }
0x11ca   :  { %v2330_v16 = vadd.f32 %v5324_v11, %v2322_v12  ;;  %v6416_v9 = vpack.c.bf16 %v5334_v8, %v5333_v7  ;;  %v5373_v10 = vld [vmem:[%s7729_s25 + $0x80] sm:$0xff] }
0x11cb   :  { %v2329_v14 = vadd.f32 %v5324_v11, %v2321_v13  ;;  %v5374_v11 = vld [vmem:[%s7729_s25 + $0x88] sm:$0xff]  ;;  %v5335_v13 = vld [vmem:[%s7727_s0 + $0x90] sm:$0xff] }
0x11cc   :  { %v6432_v12 = vpack.c.bf16 %v5374_v11, %v5373_v10  ;;  %6417 = vmatprep.subr.bf16.mxu1 %v6416_v9  ;;  %v7361_v11 = vld [vmem:[%s7736_s29 + $0x8] sm:$0xff] }
0x11cd   :  { %5984 = vmatprep.mubr.msk.f32.mxu1 %vm84_vm0, %v2329_v14 }
0x11ce   :  { %5985 = vmatmul.mubr.msk.f32.vlgmr.msra.gmra.mrb[24].mxu1 %vm84_vm0, %v2330_v16  ;;  %6433 = vmatprep.subr.bf16.mxu0 %v6432_v12 }
0x11cf   :  { %6419 = vmatpush3.bf16.msra.mxu1 %v6416_v9 }
0x12a1   :  { %v5986_v29 = vpop.f32.mrb[24].mxu1 }
0x12a2   :  { %v2420_v30 = vadd.f32 %v5986_v29, %v5325_v18  ;;  %v2414_v31 = vpop.f32.mrb[25].mxu1  ;;  %v5331_v29 = vld [vmem:[%s7703_s18] ss:$0 sm:$0xff] }
0x12a3   :  { %v2415_v32 = vadd.f32 %v5325_v18, %v2414_v31 }
0x12a4   :  { %v2424_v33 = vmul.f32 %v2420_v30, %v2420_v30 }
0x12a5   :  { %v2423_v34 = vmul.f32 %v2415_v32, %v2415_v32 }
0x12a6   :  { %v2426_v35 = vmul.f32 %v2424_v33, %v2420_v30  ;;  %v5332_v33 = vld [vmem:[%s7704_s19] ss:$0 sm:$0xff] }
0x12a7   :  { %v2425_v36 = vmul.f32 %v2423_v34, %v2415_v32 }
0x12a8   :  { %v2428_v37 = vmul.f32 0.044715, %v2426_v35 }
0x12a9   :  { %v2427_v38 = vmul.f32 0.044715, %v2425_v36  ;;  %v5355_v36 = vld [vmem:[%s7728_s8 + $0x90] sm:$0xff] }
0x12aa   :  { %v2430_v39 = vadd.f32 %v2428_v37, %v2420_v30  ;;  %v5356_v37 = vld [vmem:[%s7728_s8 + $0x98] sm:$0xff] }
0x12ab   :  { %v2429_v40 = vadd.f32 %v2427_v38, %v2415_v32 }
0x12ac   :  { %v2432_v42 = vmul.f32 0.7978846, %v2430_v39 }
0x12ad   :  { %v2431_v43 = vmul.f32 0.7978846, %v2429_v40  ;;  %v6428_v40 = vpack.c.bf16 %v5356_v37, %v5355_v36  ;;  %v5357_v37 = vld [vmem:[%s7728_s8 + $0xa0] sm:$0xff] }
0x12ae   :  { %6635 = vtanh.f32 %v2432_v42  ;;  %v5403_v42 = vld [vmem:[%s7694_s9 + $0x4] ss:$0 sm:$0xff] }
0x12af   :  { %6637 = vtanh.f32 %v2431_v43  ;;  %v5397_v43 = vld [vmem:[%s7733_s1 + $0x4] ss:$0 sm:$0xff] }
0x12b8   :  { %v6636_v44 = vpop.eup %6635 }
0x12b9   :  { %v6638_v45 = vpop.eup %6637  ;;  %v2436_v47 = vadd.f32 1.0, %v6636_v44 }
0x12ba   :  { %v2435_v48 = vadd.f32 1.0, %v6638_v45 }
0x12bb   :  { %v2438_v49 = vmul.f32 0.5, %v2436_v47 }
0x12bc   :  { %v2437_v50 = vmul.f32 0.5, %v2435_v48 }
0x12bd   :  { %v2440_v52 = vmul.f32 %v2438_v49, %v2420_v30 }
0x12be   :  { %v2439_v51 = vmul.f32 %v2437_v50, %v2415_v32 }
0x12c0   :  { %6003 = vmatprep.mubr.msk.f32.mxu0 %vm2456_vm4, %v2439_v51 }
0x12c1   :  { %6004 = vmatmul.mubr.msk.f32.vlgmr.msra.gmra.mrb[18].mxu0 %vm2456_vm4, %v2440_v52 }
0x12c2   :  { %6435 = vmatpush3.bf16.msra.mxu0 %v6432_v12 }
0x12c3   :  { %6437 = vmatprep.subr.bf16.mxu0 %v6436_v20 }
0x12c6   :  { %6439 = vmatpush3.bf16.msra.mxu0 %v6436_v20 }
0x1394   :  { %v6005_v56 = vpop.f32.mrb[18].mxu0 }
0x1395   :  { %v2535_v57 = vadd.f32 %v6005_v56, %v5328_v53  ;;  %v2529_v58 = vpop.f32.mrb[19].mxu0 }
0x1396   :  { %v2530_v59 = vadd.f32 %v5328_v53, %v2529_v58  ;;  %v5400_v53 = vld [vmem:[%s7732_s30 + $0x4] ss:$0 sm:$0xff] }
0x1397   :  { %v2539_v46 = vadd.f32 %v2535_v57, %v2330_v16 }
0x1398   :  { %v2538_v41 = vadd.f32 %v2530_v59, %v2329_v14  ;;  %v5336_v14 = vld [vmem:[%s7727_s0 + $0x98] sm:$0xff]  ;;  %v5337_v59 = vld [vmem:[%s7727_s0 + $0xa0] sm:$0xff] }
0x1399   :  { %v2545_v55 = vsel %vm84_vm0, %v2539_v46, 0.0  ;;  %v6420_v16 = vpack.c.bf16 %v5336_v14, %v5335_v13  ;;  %v7367_v13 = vld [vmem:[%s7736_s29] sm:$0xff] }
0x139a   :  { %2546 = vadd.xlane.f32.xlu1 %v2545_v55  ;;  %v2542_v60 = vsel %vm84_vm0, %v2538_v41, 0.0 }
0x139b   :  { %2543 = vadd.xlane.f32.xlu0 %v2542_v60  ;;  %6421 = vmatprep.subr.bf16.mxu1 %v6420_v16 }
0x139c   :  { %6423 = vmatpush3.bf16.msra.mxu1 %v6420_v16 }
0x139d   :  { %6425 = vmatprep.subr.bf16.mxu1 %v6424_v23 }
0x1427   :  { %v2547_v61 = vpop.xlane.xlu1 %2546 }
0x1428   :  { %v2549_v62 = vmul.f32 0.03125, %v2547_v61  ;;  %v2544_v0 = vpop.xlane.xlu0 %2543  ;;  %v5339_v61 = vld [vmem:[%s7727_s0 + $0xb0] sm:$0xff] }
0x1429   :  { %v2548_v1 = vmul.f32 0.03125, %v2544_v0 }
0x142a   :  { %v2551_v2 = vsub.f32 %v2539_v46, %v2549_v62  ;;  %v5338_v46 = vld [vmem:[%s7727_s0 + $0xa8] sm:$0xff]  ;;  %v5340_v62 = vld [vmem:[%s7727_s0 + $0xb8] sm:$0xff] }
0x142b   :  { %v2550_v54 = vsub.f32 %v2538_v41, %v2548_v1  ;;  %v6450_v60 = vpack.c.bf16 %v5338_v46, %v5337_v59  ;;  %v6454_v1 = vpack.c.bf16 %v5340_v62, %v5339_v61 }
0x142c   :  { %v2553_v3 = vmul.f32 %v2551_v2, %v2551_v2 }
0x142d   :  { %v2552_v4 = vmul.f32 %v2550_v54, %v2550_v54 }
0x142e   :  { %v2557_v5 = vsel %vm84_vm0, %v2553_v3, 0.0 }
0x142f   :  { %2558 = vadd.xlane.f32.xlu1 %v2557_v5  ;;  %v2554_v6 = vsel %vm84_vm0, %v2552_v4, 0.0  ;;  %v5379_v4 = vld [vmem:[%s7729_s25 + $0xb0] sm:$0xff]  ;;  %v5380_v5 = vld [vmem:[%s7729_s25 + $0xb8] sm:$0xff] }
0x1430   :  { %2555 = vadd.xlane.f32.xlu0 %v2554_v6  ;;  %v6470_v6 = vpack.c.bf16 %v5380_v5, %v5379_v4 }
0x14bc   :  { %v2559_v24 = vpop.xlane.xlu1 %2558 }
0x14bd   :  { %v2561_v25 = vmul.f32 0.03125, %v2559_v24  ;;  %v2556_v26 = vpop.xlane.xlu0 %2555 }
0x14be   :  { %v2560_v27 = vmul.f32 0.03125, %v2556_v26 }
0x14bf   :  { %v2563_v28 = vadd.f32 1e-12, %v2561_v25 }
0x14c0   :  { %v2562_v15 = vadd.f32 1e-12, %v2560_v27 }
0x14c1   :  { %6639 = vrsqrt.f32 %v2563_v28 }
0x14c2   :  { %6641 = vrsqrt.f32 %v2562_v15 }
0x14cb   :  { %v6640_v18 = vpop.eup %6639 }
0x14cc   :  { %v6642_v30 = vpop.eup %6641  ;;  %v2567_v31 = vmul.f32 %v6640_v18, %v2551_v2  ;;  %v5377_v2 = vld [vmem:[%s7729_s25 + $0xa0] sm:$0xff] }
0x14cd   :  { %v2566_v32 = vmul.f32 %v6642_v30, %v2550_v54  ;;  %v5378_v54 = vld [vmem:[%s7729_s25 + $0xa8] sm:$0xff] }
0x14ce   :  { %v2575_v34 = vmul.f32 %v5331_v29, %v2567_v31  ;;  %v6466_v3 = vpack.c.bf16 %v5378_v54, %v5377_v2 }
0x14cf   :  { %v2574_v35 = vmul.f32 %v5331_v29, %v2566_v32 }
0x14d0   :  { %v7297_v39 = vadd.f32 %v5332_v33, %v2575_v34 }
0x14d1   :  { %v7295_v38 = vadd.f32 %v5332_v33, %v2574_v35 }
0x14d3   :  { %6014 = vmatprep.mubr.msk.f32.mxu1 %vm84_vm0, %v7295_v38  ;;  %6036 = vmatprep.mubr.msk.f32.mxu0 %vm84_vm0, %v7295_v38 }
0x14d4   :  { %6015 = vmatmul.mubr.msk.f32.vlgmr.msra.gmra.mrb[26].mxu1 %vm84_vm0, %v7297_v39  ;;  %6037 = vmatmul.mubr.msk.f32.vlgmr.msra.gmra.mrb[20].mxu0 %vm84_vm0, %v7297_v39 }
0x14d5   :  { %6427 = vmatpush3.bf16.msra.mxu1 %v6424_v23  ;;  %6025 = vmatprep.mubr.msk.f32.mxu1 %vm84_vm0, %v7295_v38  ;;  %v5418_v23 = vld [vmem:[%s7694_s9 + $0x5] ss:$0 sm:$0xff] }
0x14d6   :  { %6429 = vmatprep.subr.bf16.mxu1 %v6428_v40 }
0x14d9   :  { %6431 = vmatpush3.bf16.msra.mxu1 %v6428_v40  ;;  %v5358_v40 = vld [vmem:[%s7728_s8 + $0xa8] sm:$0xff] }
0x14dc   :  { %6026 = vmatmul.mubr.msk.f32.vlgmr.msra.gmra.mrb[28].mxu1 %vm84_vm0, %v7297_v39 }
0x15a7   :  { %v6016_v44 = vpop.f32.mrb[26].mxu1  ;;  %v6038_v45 = vpop.f32.mrb[20].mxu0 }
0x15a8   :  { %v2901_v47 = vadd.f32 %v6038_v45, %v5403_v42  ;;  %v2733_v48 = vpop.f32.mrb[27].mxu1  ;;  %v2895_v49 = vpop.f32.mrb[21].mxu0  ;;  %v2739_v0 = vadd.f32 %v6016_v44, %v5397_v43 }
0x15a9   :  { %v2734_v50 = vadd.f32 %v5397_v43, %v2733_v48  ;;  %v2896_v51 = vadd.f32 %v5403_v42, %v2895_v49  ;;  %v6458_v42 = vpack.c.bf16 %v5358_v40, %v5357_v37  ;;  %v5360_v48 = vld [vmem:[%s7728_s8 + $0xb8] sm:$0xff]  ;;  %v5361_v37 = vld [vmem:[%s7728_s8 + $0xc0] sm:$0xff]  ;;  %v5362_v40 = vld [vmem:[%s7728_s8 + $0xc8] sm:$0xff] }
0x15ab   :  { %v6446_v52 = vpack.c.bf16 %v2901_v47, %v2896_v51  ;;  %6043 = vmatprep.mubr.msk.f32.mxu1 %vm441_vm1, %v2734_v50  ;;  %v5359_v47 = vld [vmem:[%s7728_s8 + $0xb0] sm:$0xff] }
0x15ad   :  { %6447 = vmatprep.subr.bf16.mxu0 %v6446_v52 }
0x15ae   :  { %6449 = vmatpush3.bf16.msra.mxu0 %v6446_v52  ;;  %v6462_v52 = vpack.c.bf16 %v5360_v48, %v5359_v47  ;;  %v5363_v47 = vld [vmem:[%s7728_s8 + $0xd0] sm:$0xff]  ;;  %v5364_v48 = vld [vmem:[%s7728_s8 + $0xd8] sm:$0xff] }
0x15af   :  { %v6027_v56 = vpop.f32.mrb[28].mxu1  ;;  %6459 = vmatprep.subr.bf16.mxu0 %v6458_v42 }
0x15b0   :  { %v2820_v57 = vadd.f32 %v6027_v56, %v5400_v53  ;;  %v2814_v58 = vpop.f32.mrb[29].mxu1 }
0x15b1   :  { %v2815_v41 = vadd.f32 %v5400_v53, %v2814_v58  ;;  %v5415_v58 = vld [vmem:[%s7732_s30 + $0x5] ss:$0 sm:$0xff] }
0x15b3   :  { %v6440_v55 = vpack.c.bf16 %v2820_v57, %v2815_v41 }
0x15b5   :  { %6442 = vmatprep.subr.msk.bf16.mxu1 %vm6934_vm2, %v6440_v55 }
0x15b6   :  { %6445 = vmatpush3.bf16.xpose.msk.msra.mxu1 %vm6934_vm2, %v6440_v55 }
0x15b7   :  { %6451 = vmatprep.subr.bf16.mxu1 %v6450_v60 }
0x15bd   :  { %6044 = vmatmul.mubr.msk.f32.vlgmr.msra.gmra.mrb[30].mxu1 %vm441_vm1, %v2739_v0 }
0x15be   :  { %6453 = vmatpush3.bf16.msra.mxu1 %v6450_v60  ;;  %6061 = vmatprep.mubr.msk.f32.mxu1 %vm84_vm0, %v7295_v38 }
0x15bf   :  { %6455 = vmatprep.subr.bf16.mxu1 %v6454_v1 }
0x15c2   :  { %6457 = vmatpush3.bf16.msra.mxu1 %v6454_v1 }
0x15c3   :  { %6467 = vmatprep.subr.bf16.mxu1 %v6466_v3 }
0x15c5   :  { %6062 = vmatmul.mubr.msk.f32.vlgmr.msra.gmra.mrb[32].mxu1 %vm84_vm0, %v7297_v39 }
0x15c6   :  { %6469 = vmatpush3.bf16.msra.mxu1 %v6466_v3  ;;  %6083 = vmatprep.mubr.msk.f32.mxu1 %vm84_vm0, %v7295_v38 }
0x15c7   :  { %6471 = vmatprep.subr.bf16.mxu1 %v6470_v6 }
0x15ca   :  { %6473 = vmatpush3.bf16.msra.mxu1 %v6470_v6 }
0x15cd   :  { %6084 = vmatmul.mubr.msk.f32.vlgmr.msra.gmra.mrb[34].mxu1 %vm84_vm0, %v7297_v39 }
0x1690   :  { %v6045_v7 = vpop.f32.mrb[30].mxu1 }
0x1691   :  { %v2992_v8 = vmul.f32 0.35355338, %v6045_v7  ;;  %v2982_v9 = vpop.f32.mrb[31].mxu1 }
0x1692   :  { %v2991_v10 = vmul.f32 0.35355338, %v2982_v9 }
0x1693   :  { %v2994_v12 = vadd.f32 %v7361_v11, %v2992_v8 }
0x1694   :  { %v2993_v14 = vadd.f32 %v7367_v13, %v2991_v10 }
0x1695   :  { %v2998_v16 = vsel %vm533_vm3, %v2994_v12, -inf }
0x1696   :  { %2999 = vmax.xlane.f32.xlu1 %v2998_v16  ;;  %v2995_v17 = vsel %vm533_vm3, %v2993_v14, -inf }
0x1697   :  { %2996 = vmax.xlane.f32.xlu0 %v2995_v17 }
0x1698   :  { %v6063_v20 = vpop.f32.mrb[32].mxu1 }
0x1699   :  { %v3176_v21 = vadd.f32 %v6063_v20, %v5412_v19  ;;  %v3170_v22 = vpop.f32.mrb[33].mxu1  ;;  %v5342_v20 = vld [vmem:[%s7727_s0 + $0xc8] sm:$0xff] }
0x169a   :  { %v3171_v53 = vadd.f32 %v5412_v19, %v3170_v22  ;;  %v5341_v19 = vld [vmem:[%s7727_s0 + $0xc0] sm:$0xff]  ;;  %v5394_v22 = vld [vmem:[%s7695_s10 + $0x28] sm:$0xff] }
0x16a0   :  { %v6085_v24 = vpop.f32.mrb[34].mxu1 }
0x16a1   :  { %v3338_v25 = vadd.f32 %v6085_v24, %v5418_v23  ;;  %v3332_v26 = vpop.f32.mrb[35].mxu1 }
0x16a2   :  { %v3333_v27 = vadd.f32 %v5418_v23, %v3332_v26  ;;  %v5343_v26 = vld [vmem:[%s7727_s0 + $0xd0] sm:$0xff] }
0x16a4   :  { %v6480_v28 = vpack.c.bf16 %v3338_v25, %v3333_v27  ;;  %v5344_v27 = vld [vmem:[%s7727_s0 + $0xd8] sm:$0xff] }
0x16a6   :  { %6481 = vmatprep.subr.bf16.mxu1 %v6480_v28 }
0x16a7   :  { %6483 = vmatpush3.bf16.msra.mxu1 %v6480_v28 }
0x1723   :  { %v3000_v15 = vpop.xlane.xlu1 %2999 }
0x1724   :  { %v3002_v18 = vsub.f32 %v2994_v12, %v3000_v15  ;;  %v2997_v29 = vpop.xlane.xlu0 %2996 }
0x1725   :  { %v3001_v30 = vsub.f32 %v2993_v14, %v2997_v29  ;;  %v6488_v29 = vpack.c.bf16 %v5344_v27, %v5343_v26  ;;  %v5395_v26 = vld [vmem:[%s7695_s10 + $0x30] sm:$0xff] }
0x1726   :  { %v3005_v31 = vmul.f32 1.442695, %v3002_v18 }
0x1727   :  { %v3003_v32 = vmul.f32 1.442695, %v3001_v30  ;;  %v5381_v30 = vld [vmem:[%s7729_s25 + $0xc0] sm:$0xff] }
0x1728   :  { %6643 = vpow2.f32 %v3005_v31  ;;  %v5382_v31 = vld [vmem:[%s7729_s25 + $0xc8] sm:$0xff] }
0x1729   :  { %6645 = vpow2.f32 %v3003_v32  ;;  %v6500_v32 = vpack.c.bf16 %v5382_v31, %v5381_v30 }
0x1732   :  { %v6644_v33 = vpop.eup %6643 }
0x1733   :  { %v6646_v34 = vpop.eup %6645  ;;  %v3010_v35 = vsel %vm533_vm3, %v6644_v33, 0.0 }
0x1734   :  { %3011 = vadd.xlane.f32.xlu1 %v3010_v35  ;;  %v3007_v36 = vsel %vm533_vm3, %v6646_v34, 0.0 }
0x1735   :  { %3008 = vadd.xlane.f32.xlu0 %v3007_v36  ;;  %v5393_v36 = vld [vmem:[%s7695_s10 + $0x20] sm:$0xff] }
0x17c1   :  { %v3012_v43 = vpop.xlane.xlu1 %3011 }
0x17c2   :  { %6647 = vrcp.f32 %v3012_v43  ;;  %v3009_v44 = vpop.xlane.xlu0 %3008 }
0x17c3   :  { %6649 = vrcp.f32 %v3009_v44  ;;  %v6492_v44 = vpack.c.bf16 %v5362_v40, %v5361_v37  ;;  %v5387_v37 = vld [vmem:[%s7729_s25 + $0xf0] sm:$0xff]  ;;  %v5388_v40 = vld [vmem:[%s7729_s25 + $0xf8] sm:$0xff] }
0x17cc   :  { %v6648_v45 = vpop.eup %6647 }
0x17cd   :  { %v6650_v49 = vpop.eup %6649  ;;  %v3016_v51 = vmul.f32 %v6648_v45, %v6644_v33  ;;  %v5383_v33 = vld [vmem:[%s7729_s25 + $0xd0] sm:$0xff]  ;;  %v5431_v45 = vld [vmem:[%s7733_s1 + $0x6] ss:$0 sm:$0xff] }
0x17ce   :  { %v3015_v50 = vmul.f32 %v6650_v49, %v6646_v34  ;;  %v5384_v34 = vld [vmem:[%s7729_s25 + $0xd8] sm:$0xff] }
0x17cf   :  { %v6504_v35 = vpack.c.bf16 %v5384_v34, %v5383_v33  ;;  %v5385_v34 = vld [vmem:[%s7729_s25 + $0xe0] sm:$0xff] }
0x17d0   :  { %6050 = vmatprep.mubr.msk.f32.mxu0 %vm533_vm3, %v3015_v50 }
0x17d1   :  { %6051 = vmatmul.mubr.msk.f32.vlgmr.msra.gmra.mrb[22].mxu0 %vm533_vm3, %v3016_v51 }
0x17d2   :  { %6461 = vmatpush3.bf16.msra.mxu0 %v6458_v42  ;;  %6072 = vmatprep.mubr.msk.f32.mxu0 %vm84_vm0, %v7295_v38 }
0x17d3   :  { %6463 = vmatprep.subr.bf16.mxu0 %v6462_v52 }
0x17d6   :  { %6465 = vmatpush3.bf16.msra.mxu0 %v6462_v52  ;;  %v6496_v52 = vpack.c.bf16 %v5364_v48, %v5363_v47  ;;  %v5367_v47 = vld [vmem:[%s7728_s8 + $0xf0] sm:$0xff]  ;;  %v5368_v48 = vld [vmem:[%s7728_s8 + $0xf8] sm:$0xff] }
0x17d9   :  { %6073 = vmatmul.mubr.msk.f32.vlgmr.msra.gmra.mrb[24].mxu0 %vm84_vm0, %v7297_v39 }
0x17da   :  { %6090 = vmatprep.mubr.msk.f32.mxu0 %vm441_vm1, %v3171_v53  ;;  %v5437_v53 = vld [vmem:[%s7694_s9 + $0x6] ss:$0 sm:$0xff] }
0x18a4   :  { %v7399_v56 = vpop.f32.mrb[22].mxu0 }
0x18a5   :  { %v7401_v57 = vpop.f32.mrb[23].mxu0 }
0x18ac   :  { %v6074_v59 = vpop.f32.mrb[24].mxu0 }
0x18ad   :  { %v3257_v46 = vadd.f32 %v6074_v59, %v5415_v58  ;;  %v3251_v41 = vpop.f32.mrb[25].mxu0 }
0x18ae   :  { %v3252_v55 = vadd.f32 %v5415_v58, %v3251_v41 }
0x18b0   :  { %v6474_v60 = vpack.c.bf16 %v3257_v46, %v3252_v55 }
0x18b2   :  { %6476 = vmatprep.subr.msk.bf16.mxu0 %vm6934_vm2, %v6474_v60 }
0x18b3   :  { %6479 = vmatpush3.bf16.xpose.msk.msra.mxu0 %vm6934_vm2, %v6474_v60 }
0x18b4   :  { %6100 = vmatprep.subr.mxu0 %v5394_v22 }
0x18ba   :  { %6091 = vmatmul.mubr.msk.f32.vlgmr.msra.gmra.mrb[26].mxu0 %vm441_vm1, %v3176_v21  ;;  %v6484_v21 = vpack.c.bf16 %v5342_v20, %v5341_v19 }
0x18bb   :  { %6101 = vmatpush3.msra.mxu0 %v5394_v22 }
0x18bc   :  { %6485 = vmatprep.subr.bf16.mxu1 %v6484_v21  ;;  %6105 = vmatprep.subr.mxu0 %v5393_v36 }
0x198d   :  { %v6092_v61 = vpop.f32.mrb[26].mxu0 }
0x198e   :  { %v3429_v62 = vmul.f32 0.35355338, %v6092_v61  ;;  %v3419_v0 = vpop.f32.mrb[27].mxu0 }
0x198f   :  { %v3428_v1 = vmul.f32 0.35355338, %v3419_v0 }
0x1990   :  { %v3431_v2 = vadd.f32 %v7361_v11, %v3429_v62 }
0x1991   :  { %v3430_v54 = vadd.f32 %v7367_v13, %v3428_v1 }
0x1992   :  { %v3435_v3 = vsel %vm533_vm3, %v3431_v2, -inf }
0x1993   :  { %3436 = vmax.xlane.f32.xlu1 %v3435_v3  ;;  %v3432_v4 = vsel %vm533_vm3, %v3430_v54, -inf }
0x1994   :  { %3433 = vmax.xlane.f32.xlu0 %v3432_v4 }
0x1a20   :  { %v3437_v5 = vpop.xlane.xlu1 %3436 }
0x1a21   :  { %v3439_v6 = vsub.f32 %v3431_v2, %v3437_v5  ;;  %v3434_v7 = vpop.xlane.xlu0 %3433 }
0x1a22   :  { %v3438_v8 = vsub.f32 %v3430_v54, %v3434_v7 }
0x1a23   :  { %v3442_v9 = vmul.f32 1.442695, %v3439_v6 }
0x1a24   :  { %v3440_v10 = vmul.f32 1.442695, %v3438_v8 }
0x1a25   :  { %6651 = vpow2.f32 %v3442_v9 }
0x1a26   :  { %6653 = vpow2.f32 %v3440_v10 }
0x1a2f   :  { %v6652_v12 = vpop.eup %6651 }
0x1a30   :  { %v6654_v14 = vpop.eup %6653  ;;  %v3447_v16 = vsel %vm533_vm3, %v6652_v12, 0.0 }
0x1a31   :  { %3448 = vadd.xlane.f32.xlu1 %v3447_v16  ;;  %v3444_v17 = vsel %vm533_vm3, %v6654_v14, 0.0 }
0x1a32   :  { %3445 = vadd.xlane.f32.xlu0 %v3444_v17 }
0x1abe   :  { %v3449_v23 = vpop.xlane.xlu1 %3448 }
0x1abf   :  { %6655 = vrcp.f32 %v3449_v23  ;;  %v3446_v24 = vpop.xlane.xlu0 %3445  ;;  %v5345_v23 = vld [vmem:[%s7727_s0 + $0xe0] sm:$0xff] }
0x1ac0   :  { %6657 = vrcp.f32 %v3446_v24  ;;  %v5346_v24 = vld [vmem:[%s7727_s0 + $0xe8] sm:$0xff] }
0x1ac9   :  { %v6656_v25 = vpop.eup %6655 }
0x1aca   :  { %v6658_v28 = vpop.eup %6657  ;;  %v3453_v18 = vmul.f32 %v6656_v25, %v6652_v12  ;;  %v6518_v25 = vpack.c.bf16 %v5346_v24, %v5345_v23  ;;  %v5396_v23 = vld [vmem:[%s7695_s10 + $0x38] sm:$0xff]  ;;  %s6716_s10 = smov [#allocation2]  }
0x1acb   :  { %v3452_v15 = vmul.f32 %v6658_v28, %v6654_v14 }
0x1acd   :  { %6097 = vmatprep.mubr.msk.f32.mxu1 %vm533_vm3, %v3452_v15 }
0x1ace   :  { %6098 = vmatmul.mubr.msk.f32.vlgmr.msra.gmra.mrb[36].mxu1 %vm533_vm3, %v3453_v18  ;;  %v5347_v18 = vld [vmem:[%s7727_s0 + $0xf0] sm:$0xff] }
0x1acf   :  { %6487 = vmatpush3.bf16.msra.mxu1 %v6484_v21  ;;  %6118 = vmatprep.mubr.msk.f32.mxu1 %vm84_vm0, %v7295_v38 }
0x1ad0   :  { %6489 = vmatprep.subr.bf16.mxu1 %v6488_v29 }
0x1ad3   :  { %6491 = vmatpush3.bf16.msra.mxu1 %v6488_v29  ;;  %v5348_v29 = vld [vmem:[%s7727_s0 + $0xf8] sm:$0xff] }
0x1ad4   :  { %6501 = vmatprep.subr.bf16.mxu1 %v6500_v32  ;;  %v6522_v33 = vpack.c.bf16 %v5348_v29, %v5347_v18 }
0x1ad6   :  { %6119 = vmatmul.mubr.msk.f32.vlgmr.msra.gmra.mrb[38].mxu1 %vm84_vm0, %v7297_v39 }
0x1ad7   :  { %6503 = vmatpush3.bf16.msra.mxu1 %v6500_v32  ;;  %6140 = vmatprep.mubr.msk.f32.mxu1 %vm84_vm0, %v7295_v38 }
0x1ad8   :  { %6505 = vmatprep.subr.bf16.mxu1 %v6504_v35 }
0x1adb   :  { %6507 = vmatpush3.bf16.msra.mxu1 %v6504_v35  ;;  %v5386_v35 = vld [vmem:[%s7729_s25 + $0xe8] sm:$0xff] }
0x1ade   :  { %6141 = vmatmul.mubr.msk.f32.vlgmr.msra.gmra.mrb[40].mxu1 %vm84_vm0, %v7297_v39 }
0x1ba1   :  { %v6099_v42 = vpop.f32.mrb[36].mxu1 }
0x1ba2   :  { %v3526_v43 = vpop.f32.mrb[37].mxu1 }
0x1ba3   :  { %6102 = vmatprep.mubr.msk.f32.mxu0 %vm441_vm1, %v3526_v43  ;;  %v5365_v43 = vld [vmem:[%s7728_s8 + $0xe0] sm:$0xff] }
0x1ba4   :  { %6103 = vmatmul.mubr.msk.f32.vlgmr.msra.gmra.mrb[28].mxu0 %vm441_vm1, %v6099_v42  ;;  %v6538_v42 = vpack.c.bf16 %v5388_v40, %v5387_v37 }
0x1ba5   :  { %6106 = vmatpush3.msra.mxu0 %v5393_v36  ;;  %6107 = vmatprep.mubr.msk.f32.mxu0 %vm441_vm1, %v7401_v57  ;;  %v6534_v36 = vpack.c.bf16 %v5386_v35, %v5385_v34 }
0x1ba6   :  { %6493 = vmatprep.subr.bf16.mxu0 %v6492_v44 }
0x1ba9   :  { %v6120_v49 = vpop.f32.mrb[38].mxu1 }
0x1baa   :  { %v3775_v50 = vadd.f32 %v6120_v49, %v5431_v45  ;;  %v3769_v51 = vpop.f32.mrb[39].mxu1 }
0x1bab   :  { %v3770_v46 = vadd.f32 %v5431_v45, %v3769_v51  ;;  %v6530_v51 = vpack.c.bf16 %v5368_v48, %v5367_v47 }
0x1bac   :  { %6108 = vmatmul.mubr.msk.f32.vlgmr.msra.gmra.mrb[28].mxu0 %vm441_vm1, %v7399_v56  ;;  %v5434_v56 = vld [vmem:[%s7732_s30 + $0x6] ss:$0 sm:$0xff] }
0x1bad   :  { %6495 = vmatpush3.bf16.msra.mxu0 %v6492_v44  ;;  %6129 = vmatprep.mubr.msk.f32.mxu0 %vm84_vm0, %v7295_v38  ;;  %v5366_v44 = vld [vmem:[%s7728_s8 + $0xe8] sm:$0xff] }
0x1bae   :  { %6497 = vmatprep.subr.bf16.mxu0 %v6496_v52  ;;  %v6526_v45 = vpack.c.bf16 %v5366_v44, %v5365_v43 }
0x1bb1   :  { %6499 = vmatpush3.bf16.msra.mxu0 %v6496_v52  ;;  %v6142_v57 = vpop.f32.mrb[40].mxu1  ;;  %v5448_v52 = vld [vmem:[%s7733_s1 + $0x7] ss:$0 sm:$0xff] }
0x1bb2   :  { %v3937_v58 = vadd.f32 %v6142_v57, %v5437_v53  ;;  %v3931_v59 = vpop.f32.mrb[41].mxu1 }
0x1bb3   :  { %v3932_v41 = vadd.f32 %v5437_v53, %v3931_v59 }
0x1bb4   :  { %6130 = vmatmul.mubr.msk.f32.vlgmr.msra.gmra.mrb[30].mxu0 %vm84_vm0, %v7297_v39 }
0x1bb5   :  { %v6514_v55 = vpack.c.bf16 %v3937_v58, %v3932_v41  ;;  %6147 = vmatprep.mubr.msk.f32.mxu0 %vm441_vm1, %v3770_v46  ;;  %v5454_v46 = vld [vmem:[%s7694_s9 + $0x7] ss:$0 sm:$0xff] }
0x1bb7   :  { %6515 = vmatprep.subr.bf16.mxu1 %v6514_v55 }
0x1bb8   :  { %6517 = vmatpush3.bf16.msra.mxu1 %v6514_v55 }
0x1bb9   :  { %6519 = vmatprep.subr.bf16.mxu1 %v6518_v25 }
0x1c87   :  { %v6131_v60 = vpop.f32.mrb[30].mxu0 }
0x1c88   :  { %v3856_v61 = vadd.f32 %v6131_v60, %v5434_v56  ;;  %v3850_v62 = vpop.f32.mrb[31].mxu0 }
0x1c89   :  { %v3851_v0 = vadd.f32 %v5434_v56, %v3850_v62  ;;  %v5451_v62 = vld [vmem:[%s7732_s30 + $0x7] ss:$0 sm:$0xff] }
0x1c8b   :  { %v6508_v1 = vpack.c.bf16 %v3856_v61, %v3851_v0 }
0x1c8d   :  { %6510 = vmatprep.subr.msk.bf16.mxu0 %vm6934_vm2, %v6508_v1 }
0x1c8e   :  { %6513 = vmatpush3.bf16.xpose.msk.msra.mxu0 %vm6934_vm2, %v6508_v1 }
0x1c8f   :  { %6157 = vmatprep.subr.mxu0 %v5395_v26 }
0x1c95   :  { %6148 = vmatmul.mubr.msk.f32.vlgmr.msra.gmra.mrb[32].mxu0 %vm441_vm1, %v3775_v50 }
0x1c96   :  { %6158 = vmatpush3.msra.mxu0 %v5395_v26 }
0x1c97   :  { %6527 = vmatprep.subr.bf16.mxu0 %v6526_v45 }
0x1d68   :  { %v6149_v2 = vpop.f32.mrb[32].mxu0 }
0x1d69   :  { %v4028_v54 = vmul.f32 0.35355338, %v6149_v2  ;;  %v4018_v3 = vpop.f32.mrb[33].mxu0 }
0x1d6a   :  { %v4027_v4 = vmul.f32 0.35355338, %v4018_v3 }
0x1d6b   :  { %v4030_v5 = vadd.f32 %v7361_v11, %v4028_v54 }
0x1d6c   :  { %v4029_v6 = vadd.f32 %v7367_v13, %v4027_v4 }
0x1d6d   :  { %v4034_v7 = vsel %vm533_vm3, %v4030_v5, -inf }
0x1d6e   :  { %4035 = vmax.xlane.f32.xlu1 %v4034_v7  ;;  %v4031_v8 = vsel %vm533_vm3, %v4029_v6, -inf }
0x1d6f   :  { %4032 = vmax.xlane.f32.xlu0 %v4031_v8 }
0x1dfb   :  { %v4036_v9 = vpop.xlane.xlu1 %4035 }
0x1dfc   :  { %v4038_v10 = vsub.f32 %v4030_v5, %v4036_v9  ;;  %v4033_v12 = vpop.xlane.xlu0 %4032 }
0x1dfd   :  { %v4037_v14 = vsub.f32 %v4029_v6, %v4033_v12 }
0x1dfe   :  { %v4041_v16 = vmul.f32 1.442695, %v4038_v10 }
0x1dff   :  { %v4039_v17 = vmul.f32 1.442695, %v4037_v14 }
0x1e00   :  { %6659 = vpow2.f32 %v4041_v16 }
0x1e01   :  { %6661 = vpow2.f32 %v4039_v17 }
0x1e0a   :  { %v6660_v19 = vpop.eup %6659 }
0x1e0b   :  { %v6662_v20 = vpop.eup %6661  ;;  %v4046_v21 = vsel %vm533_vm3, %v6660_v19, 0.0 }
0x1e0c   :  { %4047 = vadd.xlane.f32.xlu1 %v4046_v21  ;;  %v4043_v22 = vsel %vm533_vm3, %v6662_v20, 0.0 }
0x1e0d   :  { %4044 = vadd.xlane.f32.xlu0 %v4043_v22 }
0x1e99   :  { %v4048_v27 = vpop.xlane.xlu1 %4047 }
0x1e9a   :  { %6663 = vrcp.f32 %v4048_v27  ;;  %v4045_v28 = vpop.xlane.xlu0 %4044 }
0x1e9b   :  { %6665 = vrcp.f32 %v4045_v28 }
0x1ea4   :  { %v6664_v15 = vpop.eup %6663 }
0x1ea5   :  { %v6666_v30 = vpop.eup %6665  ;;  %v4052_v32 = vmul.f32 %v6664_v15, %v6660_v19 }
0x1ea6   :  { %v4051_v31 = vmul.f32 %v6666_v30, %v6662_v20  ;;  %v5466_v30 = vld [vmem:[%s7696_s11 + $0x1] ss:$0 sm:$0xff] }
0x1ea8   :  { %6154 = vmatprep.mubr.msk.f32.mxu1 %vm533_vm3, %v4051_v31 }
0x1ea9   :  { %6155 = vmatmul.mubr.msk.f32.vlgmr.msra.gmra.mrb[42].mxu1 %vm533_vm3, %v4052_v32 }
0x1eaa   :  { %6521 = vmatpush3.bf16.msra.mxu1 %v6518_v25  ;;  %6170 = vmatprep.mubr.msk.f32.mxu1 %vm84_vm0, %v7295_v38 }
0x1eab   :  { %6523 = vmatprep.subr.bf16.mxu1 %v6522_v33 }
0x1eae   :  { %6525 = vmatpush3.bf16.msra.mxu1 %v6522_v33 }
0x1eaf   :  { %6535 = vmatprep.subr.bf16.mxu1 %v6534_v36 }
0x1eb1   :  { %6171 = vmatmul.mubr.msk.f32.vlgmr.msra.gmra.mrb[44].mxu1 %vm84_vm0, %v7297_v39 }
0x1eb2   :  { %6537 = vmatpush3.bf16.msra.mxu1 %v6534_v36  ;;  %6192 = vmatprep.mubr.msk.f32.mxu1 %vm84_vm0, %v7295_v38 }
0x1eb3   :  { %6539 = vmatprep.subr.bf16.mxu1 %v6538_v42 }
0x1eb6   :  { %6541 = vmatpush3.bf16.msra.mxu1 %v6538_v42 }
0x1eb9   :  { %6193 = vmatmul.mubr.msk.f32.vlgmr.msra.gmra.mrb[46].mxu1 %vm84_vm0, %v7297_v39 }
0x1f7c   :  { %v6156_v49 = vpop.f32.mrb[42].mxu1 }
0x1f7d   :  { %v4125_v50 = vpop.f32.mrb[43].mxu1 }
0x1f7e   :  { %6159 = vmatprep.mubr.msk.f32.mxu0 %vm441_vm1, %v4125_v50 }
0x1f7f   :  { %6160 = vmatmul.mubr.msk.f32.vlgmr.msra.gmra.mrb[28].mxu0 %vm441_vm1, %v6156_v49 }
0x1f80   :  { %6529 = vmatpush3.bf16.msra.mxu0 %v6526_v45  ;;  %6181 = vmatprep.mubr.msk.f32.mxu0 %vm84_vm0, %v7295_v38 }
0x1f81   :  { %6531 = vmatprep.subr.bf16.mxu0 %v6530_v51 }
0x1f84   :  { %v6172_v53 = vpop.f32.mrb[44].mxu1  ;;  %6533 = vmatpush3.bf16.msra.mxu0 %v6530_v51 }
0x1f85   :  { %v4295_v57 = vadd.f32 %v6172_v53, %v5448_v52  ;;  %v4289_v58 = vpop.f32.mrb[45].mxu1 }
0x1f86   :  { %v4290_v59 = vadd.f32 %v5448_v52, %v4289_v58  ;;  %v5472_v52 = vld [vmem:[%s7699_s14 + $0x28] sm:$0xff]  ;;  %v5474_v58 = vld [vmem:[%s7699_s14 + $0x38] sm:$0xff] }
0x1f87   :  { %6182 = vmatmul.mubr.msk.f32.vlgmr.msra.gmra.mrb[34].mxu0 %vm84_vm0, %v7297_v39 }
0x1f88   :  { %6199 = vmatprep.mubr.msk.f32.mxu0 %vm441_vm1, %v4290_v59 }
0x1f8c   :  { %v6194_v41 = vpop.f32.mrb[46].mxu1 }
0x1f8d   :  { %v4457_v55 = vadd.f32 %v6194_v41, %v5454_v46  ;;  %v4451_v56 = vpop.f32.mrb[47].mxu1 }
0x1f8e   :  { %v4452_v60 = vadd.f32 %v5454_v46, %v4451_v56 }
0x1f90   :  { %v6548_v61 = vpack.c.bf16 %v4457_v55, %v4452_v60 }
0x1f92   :  { %6549 = vmatprep.subr.bf16.mxu1 %v6548_v61 }
0x1f93   :  { %6551 = vmatpush3.bf16.msra.mxu1 %v6548_v61 }
0x205a   :  { %v6183_v0 = vpop.f32.mrb[34].mxu0 }
0x205b   :  { %v4376_v1 = vadd.f32 %v6183_v0, %v5451_v62  ;;  %v4370_v2 = vpop.f32.mrb[35].mxu0  ;;  %v5469_v0 = vld [vmem:[%s7697_s12 + $0x1] ss:$0 sm:$0xff] }
0x205c   :  { %v4371_v54 = vadd.f32 %v5451_v62, %v4370_v2 }
0x205e   :  { %v6542_v3 = vpack.c.bf16 %v4376_v1, %v4371_v54 }
0x2060   :  { %6544 = vmatprep.subr.msk.bf16.mxu0 %vm6934_vm2, %v6542_v3 }
0x2061   :  { %6547 = vmatpush3.bf16.xpose.msk.msra.mxu0 %vm6934_vm2, %v6542_v3  ;;  %v5470_v3 = vld [vmem:[%s7698_s13 + $0x1] ss:$0 sm:$0xff] }
0x2062   :  { %6209 = vmatprep.subr.mxu0 %v5396_v23 }
0x2068   :  { %6200 = vmatmul.mubr.msk.f32.vlgmr.msra.gmra.mrb[36].mxu0 %vm441_vm1, %v4295_v57  ;;  %v5473_v57 = vld [vmem:[%s7699_s14 + $0x30] sm:$0xff] }
0x2069   :  { %6210 = vmatpush3.msra.mxu0 %v5396_v23  ;;  %v6556_v59 = vpack.c.bf16 %v5474_v58, %v5473_v57 }
0x213b   :  { %v6201_v4 = vpop.f32.mrb[36].mxu0 }
0x213c   :  { %v4548_v5 = vmul.f32 0.35355338, %v6201_v4  ;;  %v4538_v6 = vpop.f32.mrb[37].mxu0 }
0x213d   :  { %v4547_v7 = vmul.f32 0.35355338, %v4538_v6 }
0x213e   :  { %v4550_v8 = vadd.f32 %v7361_v11, %v4548_v5 }
0x213f   :  { %v4549_v9 = vadd.f32 %v7367_v13, %v4547_v7 }
0x2140   :  { %v4554_v10 = vsel %vm533_vm3, %v4550_v8, -inf }
0x2141   :  { %4555 = vmax.xlane.f32.xlu1 %v4554_v10  ;;  %v4551_v12 = vsel %vm533_vm3, %v4549_v9, -inf }
0x2142   :  { %4552 = vmax.xlane.f32.xlu0 %v4551_v12  ;;  %v5481_v12 = vld [vmem:[%s7701_s16 + $0x50] sm:$0xff] }
0x21ce   :  { %v4556_v14 = vpop.xlane.xlu1 %4555 }
0x21cf   :  { %v4558_v16 = vsub.f32 %v4550_v8, %v4556_v14  ;;  %v4553_v63 = vpop.xlane.xlu0 %4552  ;;  %v5479_v8 = vld [vmem:[%s7701_s16 + $0x40] sm:$0xff]  ;;  %v5482_v14 = vld [vmem:[%s7701_s16 + $0x58] sm:$0xff] }
0x21d0   :  { %v4557_v17 = vsub.f32 %v4549_v9, %v4553_v63  ;;  %v5480_v9 = vld [vmem:[%s7701_s16 + $0x48] sm:$0xff]  ;;  %v5483_v63 = vld [vmem:[%s7701_s16 + $0x60] sm:$0xff] }
0x21d1   :  { %v4561_v19 = vmul.f32 1.442695, %v4558_v16  ;;  %v6560_v10 = vpack.c.bf16 %v5480_v9, %v5479_v8  ;;  %v6564_v16 = vpack.c.bf16 %v5482_v14, %v5481_v12  ;;  %v5494_v9 = vld [vmem:[%s7704_s19 + $0x1] ss:$0 sm:$0xff] }
0x21d2   :  { %v4559_v20 = vmul.f32 1.442695, %v4557_v17  ;;  %v5484_v17 = vld [vmem:[%s7701_s16 + $0x68] sm:$0xff] }
0x21d3   :  { %6667 = vpow2.f32 %v4561_v19  ;;  %6561 = vmatprep.subr.bf16.mxu0 %v6560_v10  ;;  %v6568_v19 = vpack.c.bf16 %v5484_v17, %v5483_v63 }
0x21d4   :  { %6669 = vpow2.f32 %v4559_v20  ;;  %v5485_v20 = vld [vmem:[%s7701_s16 + $0x70] sm:$0xff] }
0x21dd   :  { %v6668_v21 = vpop.eup %6667 }
0x21de   :  { %v6670_v22 = vpop.eup %6669  ;;  %v4566_v11 = vsel %vm533_vm3, %v6668_v21, 0.0 }
0x21df   :  { %4567 = vadd.xlane.f32.xlu1 %v4566_v11  ;;  %v4563_v13 = vsel %vm533_vm3, %v6670_v22, 0.0  ;;  %v5476_v11 = vld [vmem:[%s7700_s15 + $0x1] ss:$0 sm:$0xff] }
0x21e0   :  { %4564 = vadd.xlane.f32.xlu0 %v4563_v13 }
0x226c   :  { %v4568_v24 = vpop.xlane.xlu1 %4567 }
0x226d   :  { %6671 = vrcp.f32 %v4568_v24  ;;  %v4565_v25 = vpop.xlane.xlu0 %4564 }
0x226e   :  { %6673 = vrcp.f32 %v4565_v25 }
0x2277   :  { %v6672_v26 = vpop.eup %6671 }
0x2278   :  { %v6674_v27 = vpop.eup %6673  ;;  %v4572_v15 = vmul.f32 %v6672_v26, %v6668_v21  ;;  %v5486_v21 = vld [vmem:[%s7701_s16 + $0x78] sm:$0xff] }
0x2279   :  { %v4571_v28 = vmul.f32 %v6674_v27, %v6670_v22  ;;  %v6572_v22 = vpack.c.bf16 %v5486_v21, %v5485_v20  ;;  %v5059_v20 = vld [vmem:[%s7705_s20] sm:$0xff]  ;;  %v5069_v21 = vlaneseq }
0x227b   :  { %6206 = vmatprep.mubr.msk.f32.mxu1 %vm533_vm3, %v4571_v28 }
0x227c   :  { %6207 = vmatmul.mubr.msk.f32.vlgmr.msra.gmra.mrb[48].mxu1 %vm533_vm3, %v4572_v15 }
0x234f   :  { %v6208_v18 = vpop.f32.mrb[48].mxu1 }
0x2350   :  { %v4645_v29 = vpop.f32.mrb[49].mxu1 }
0x2351   :  { %6211 = vmatprep.mubr.msk.f32.mxu0 %vm441_vm1, %v4645_v29 }
0x2352   :  { %6212 = vmatmul.mubr.msk.f32.vlgmr.msra.gmra.mrb[28].mxu0 %vm441_vm1, %v6208_v18 }
0x2353   :  { %6563 = vmatpush3.bf16.msra.mxu0 %v6560_v10 }
0x2354   :  { %6565 = vmatprep.subr.bf16.mxu0 %v6564_v16 }
0x2357   :  { %6567 = vmatpush3.bf16.msra.mxu0 %v6564_v16 }
0x2358   :  { %6569 = vmatprep.subr.bf16.mxu0 %v6568_v19 }
0x235b   :  { %6571 = vmatpush3.bf16.msra.mxu0 %v6568_v19 }
0x235c   :  { %6573 = vmatprep.subr.bf16.mxu0 %v6572_v22 }
0x235f   :  { %6575 = vmatpush3.bf16.msra.mxu0 %v6572_v22  ;;  %v5070_v22 = vand.u32 127, %v5069_v21 }
0x2425   :  { %v6213_v31 = vpop.f32.mrb[28].mxu0 }
0x2426   :  { %v4746_v32 = vadd.f32 %v6213_v31, %v5466_v30  ;;  %v4726_v33 = vpop.f32.mrb[29].mxu0 }
0x2427   :  { %v4745_v34 = vadd.f32 %v5466_v30, %v4726_v33 }
0x2428   :  { %v4748_v35 = vadd.f32 %v4746_v32, %v7297_v39 }
0x2429   :  { %v4747_v36 = vadd.f32 %v4745_v34, %v7295_v38  ;;  %v5471_v38 = vld [vmem:[%s7699_s14 + $0x20] sm:$0xff] }
0x242a   :  { %v4756_v37 = vsel %vm84_vm0, %v4748_v35, 0.0  ;;  %v6552_v53 = vpack.c.bf16 %v5472_v52, %v5471_v38 }
0x242b   :  { %4757 = vadd.xlane.f32.xlu1 %v4756_v37  ;;  %v4753_v40 = vsel %vm84_vm0, %v4747_v36, 0.0 }
0x242c   :  { %4754 = vadd.xlane.f32.xlu0 %v4753_v40  ;;  %6553 = vmatprep.subr.bf16.mxu1 %v6552_v53 }
0x242d   :  { %6555 = vmatpush3.bf16.msra.mxu1 %v6552_v53 }
0x242e   :  { %6557 = vmatprep.subr.bf16.mxu1 %v6556_v59 }
0x2431   :  { %6559 = vmatpush3.bf16.msra.mxu1 %v6556_v59 }
0x24b8   :  { %v4758_v42 = vpop.xlane.xlu1 %4757 }
0x24b9   :  { %v4760_v43 = vmul.f32 0.03125, %v4758_v42  ;;  %v4755_v44 = vpop.xlane.xlu0 %4754 }
0x24ba   :  { %v4759_v45 = vmul.f32 0.03125, %v4755_v44 }
0x24bb   :  { %v4762_v47 = vsub.f32 %v4748_v35, %v4760_v43 }
0x24bc   :  { %v4761_v48 = vsub.f32 %v4747_v36, %v4759_v45  ;;  %v5488_v45 = vld [vmem:[%s7702_s17 + $0x1] ss:$0 sm:$0xff] }
0x24bd   :  { %v4764_v49 = vmul.f32 %v4762_v47, %v4762_v47 }
0x24be   :  { %v4763_v50 = vmul.f32 %v4761_v48, %v4761_v48 }
0x24bf   :  { %v4768_v51 = vsel %vm84_vm0, %v4764_v49, 0.0 }
0x24c0   :  { %4769 = vadd.xlane.f32.xlu1 %v4768_v51  ;;  %v4765_v39 = vsel %vm84_vm0, %v4763_v50, 0.0 }
0x24c1   :  { %4766 = vadd.xlane.f32.xlu0 %v4765_v39 }
0x254d   :  { %v4770_v46 = vpop.xlane.xlu1 %4769 }
0x254e   :  { %v4772_v41 = vmul.f32 0.03125, %v4770_v46  ;;  %v4767_v55 = vpop.xlane.xlu0 %4766 }
0x254f   :  { %v4771_v56 = vmul.f32 0.03125, %v4767_v55 }
0x2550   :  { %v4774_v60 = vadd.f32 1e-12, %v4772_v41 }
0x2551   :  { %v4773_v61 = vadd.f32 1e-12, %v4771_v56 }
0x2552   :  { %6675 = vrsqrt.f32 %v4774_v60 }
0x2553   :  { %6677 = vrsqrt.f32 %v4773_v61 }
0x255c   :  { %v6676_v62 = vpop.eup %6675 }
0x255d   :  { %v6678_v1 = vpop.eup %6677  ;;  %v4778_v2 = vmul.f32 %v6676_v62, %v4762_v47  ;;  %v6713_v62 = vmov 0.0  }
0x255e   :  { %v4777_v54 = vmul.f32 %v6678_v1, %v4761_v48  ;;  %6244 = vmatprep.subr.mxu1 %v6713_v62 }
0x255f   :  { %v4786_v4 = vmul.f32 %v5469_v0, %v4778_v2 }
0x2560   :  { %v4785_v5 = vmul.f32 %v5469_v0, %v4777_v54 }
0x2561   :  { %v4794_v7 = vadd.f32 %v5470_v3, %v4786_v4 }
0x2562   :  { %v4793_v6 = vadd.f32 %v5470_v3, %v4785_v5 }
0x2564   :  { %6222 = vmatprep.mubr.msk.f32.mxu1 %vm84_vm0, %v4793_v6 }
0x2565   :  { %6223 = vmatmul.mubr.msk.f32.vlgmr.msra.gmra.mrb[50].mxu1 %vm84_vm0, %v4794_v7 }
0x2566   :  { %6245 = vmatpush3.msra.mxu1 %v5059_v20  ;;  %6246 = vmatprep.mubr.msk.f32.mxu1 %vm6714_vm5, %v6713_v62 }
0x2638   :  { %v6224_v13 = vpop.f32.mrb[50].mxu1 }
0x2639   :  { %v4886_v23 = vadd.f32 %v6224_v13, %v5476_v11  ;;  %v4880_v24 = vpop.f32.mrb[51].mxu1 }
0x263a   :  { %v4881_v25 = vadd.f32 %v5476_v11, %v4880_v24  ;;  %v5072_v11 = vshrl.u32 %v5069_v21, 7 }
0x263b   :  { %v4890_v26 = vmul.f32 %v4886_v23, %v4886_v23 }
0x263c   :  { %v4889_v27 = vmul.f32 %v4881_v25, %v4881_v25  ;;  %v5073_v13 = vsub.s32 %v5070_v22, %v5072_v11 }
0x263d   :  { %v4892_v28 = vmul.f32 %v4890_v26, %v4886_v23 }
0x263e   :  { %v4891_v15 = vmul.f32 %v4889_v27, %v4881_v25 }
0x263f   :  { %v4894_v18 = vmul.f32 0.044715, %v4892_v28  ;;  %v5154_v28 = vld [vmem:[%s7707_s22] sm:$0xff] }
0x2640   :  { %v4893_v29 = vmul.f32 0.044715, %v4891_v15  ;;  %v5155_v15 = vld [vmem:[%s7707_s22 + $0x8] sm:$0xff]  ;;  %s5244_s22 = sshll.u32 %s6716_s10, 4  ;;  %s5245_s22 = int_to_ptr.vmem [resolvable:$true] %s5244_s22 }
0x2641   :  { %v4896_v30 = vadd.f32 %v4894_v18, %v4886_v23  ;;  %v6577_v18 = vpack.c.bf16 %v5155_v15, %v5154_v28  ;;  %s6689_s4 = scalar_lea.vmem %s5245_s22, 32  ;;  %p6694_p1 = scmp.lt.s32.totalorder %s5245_s22, %s5245_s22 }
0x2642   :  { %v4895_v31 = vadd.f32 %v4893_v29, %v4881_v25  ;;  %v6715_v29 = vmov 0.0|0.0   ;;  %p6690_p0 = scmp.ne.s32.totalorder %s5245_s22, %s6689_s4  ;;  %p6695_p2 = scmp.lt.s32.totalorder %s6689_s4, %s6689_s4 }
0x2643   :  { %v4898_v32 = vmul.f32 0.7978846, %v4896_v30  ;;  %6576 = vmatprep.subr.bf16.mxu1 %v6715_v29  ;;  %v5495_v30 = vld [vmem:[%s7706_s21] ss:$0 sm:$0xff] }
0x2644   :  { %v4897_v33 = vmul.f32 0.7978846, %v4895_v31  ;;  %p6696_p3 = por %p6695_p2, %p6694_p1 }
0x2645   :  { %6679 = vtanh.f32 %v4898_v32 }
0x2646   :  { %6681 = vtanh.f32 %v4897_v33  ;;  %p6697_p4 = pnand %p6696_p3, %p6690_p0 }
0x264f   :  { %v6680_v34 = vpop.eup %6679 }
0x2650   :  { %v6682_v35 = vpop.eup %6681  ;;  %v4902_v36 = vadd.f32 1.0, %v6680_v34 }
0x2651   :  { %v4901_v37 = vadd.f32 1.0, %v6682_v35  ;;  %v5497_v35 = vld [vmem:[%s7708_s23] ss:$0 sm:$0xff] }
0x2652   :  { %v4904_v40 = vmul.f32 0.5, %v4902_v36 }
0x2653   :  { %v4903_v42 = vmul.f32 0.5, %v4901_v37 }
0x2654   :  { %v4906_v44 = vmul.f32 %v4904_v40, %v4886_v23 }
0x2655   :  { %v4905_v43 = vmul.f32 %v4903_v42, %v4881_v25 }
0x2657   :  { %6241 = vmatprep.mubr.msk.f32.mxu0 %vm2456_vm4, %v4905_v43 }
0x2658   :  { %6242 = vmatmul.mubr.msk.f32.vlgmr.msra.gmra.mrb[38].mxu0 %vm2456_vm4, %v4906_v44 }
0x272b   :  { %v6243_v47 = vpop.f32.mrb[38].mxu0 }
0x272c   :  { %v5002_v48 = vadd.f32 %v6243_v47, %v5488_v45  ;;  %v4996_v49 = vpop.f32.mrb[39].mxu0 }
0x272d   :  { %v4997_v50 = vadd.f32 %v5488_v45, %v4996_v49 }
0x272e   :  { %v5006_v51 = vadd.f32 %v5002_v48, %v4794_v7 }
0x272f   :  { %v5005_v39 = vadd.f32 %v4997_v50, %v4793_v6  ;;  %v5493_v6 = vld [vmem:[%s7703_s18 + $0x1] ss:$0 sm:$0xff] }
0x2730   :  { %v5014_v38 = vsel %vm84_vm0, %v5006_v51, 0.0 }
0x2731   :  { %5015 = vadd.xlane.f32.xlu1 %v5014_v38  ;;  %v5011_v52 = vsel %vm84_vm0, %v5005_v39, 0.0 }
0x2732   :  { %5012 = vadd.xlane.f32.xlu0 %v5011_v52 }
0x27be   :  { %v5016_v53 = vpop.xlane.xlu1 %5015 }
0x27bf   :  { %v5018_v57 = vmul.f32 0.03125, %v5016_v53  ;;  %v5013_v58 = vpop.xlane.xlu0 %5012 }
0x27c0   :  { %v5017_v59 = vmul.f32 0.03125, %v5013_v58 }
0x27c1   :  { %v5020_v46 = vsub.f32 %v5006_v51, %v5018_v57 }
0x27c2   :  { %v5019_v41 = vsub.f32 %v5005_v39, %v5017_v59 }
0x27c3   :  { %v5022_v55 = vmul.f32 %v5020_v46, %v5020_v46 }
0x27c4   :  { %v5021_v56 = vmul.f32 %v5019_v41, %v5019_v41 }
0x27c5   :  { %v5026_v60 = vsel %vm84_vm0, %v5022_v55, 0.0 }
0x27c6   :  { %5027 = vadd.xlane.f32.xlu1 %v5026_v60  ;;  %v5023_v61 = vsel %vm84_vm0, %v5021_v56, 0.0 }
0x27c7   :  { %5024 = vadd.xlane.f32.xlu0 %v5023_v61 }
0x2853   :  { %v5028_v0 = vpop.xlane.xlu1 %5027 }
0x2854   :  { %v5030_v1 = vmul.f32 0.03125, %v5028_v0  ;;  %v5025_v2 = vpop.xlane.xlu0 %5024 }
0x2855   :  { %v5029_v54 = vmul.f32 0.03125, %v5025_v2 }
0x2856   :  { %v5032_v3 = vadd.f32 1e-12, %v5030_v1 }
0x2857   :  { %v5031_v4 = vadd.f32 1e-12, %v5029_v54 }
0x2858   :  { %6683 = vrsqrt.f32 %v5032_v3 }
0x2859   :  { %6685 = vrsqrt.f32 %v5031_v4 }
0x2862   :  { %v6684_v5 = vpop.eup %6683 }
0x2863   :  { %v6686_v7 = vpop.eup %6685  ;;  %v5036_v8 = vmul.f32 %v6684_v5, %v5020_v46 }
0x2864   :  { %v5035_v10 = vmul.f32 %v6686_v7, %v5019_v41 }
0x2865   :  { %v5044_v12 = vmul.f32 %v5493_v6, %v5036_v8 }
0x2866   :  { %v5043_v14 = vmul.f32 %v5493_v6, %v5035_v10 }
0x2867   :  { %v5052_v16 = vadd.f32 %v5494_v9, %v5044_v12 }
0x2868   :  { %v5051_v63 = vadd.f32 %v5494_v9, %v5043_v14 }
0x2869   :  { %v5056_v17 = vsel %vm84_vm0, %v5052_v16, -inf }
0x286a   :  { %5057 = vmax.xlane.f32.xlu1 %v5056_v17  ;;  %v5053_v19 = vsel %vm84_vm0, %v5051_v63, -inf }
0x286b   :  { %5054 = vmax.xlane.f32.xlu0 %v5053_v19 }
0x28f7   :  { %v5058_v23 = vpop.xlane.xlu1 %5057 }
0x28f8   :  { %v5078_v24 = vrot.slane %v5058_v23, %v5073_v13  ;;  %v5055_v25 = vpop.xlane.xlu0 %5054 }
0x28f9   :  { %v5074_v26 = vrot.slane %v5055_v25, %v5073_v13 }
0x28fb   :  { %v5080_v27 = vsel %vm5079_vm6, %v5078_v24, %v5074_v26 }
0x28fc   :  { %6247 = vmatmul.mubr.msk.f32.vlgmr.msra.gmra.mrb[52].mxu1 %vm441_vm1, %v5080_v27 }
0x28fd   :  { %6253 = vmatprep.mubr.msk.f32.mxu1 %vm6714_vm5, %v6713_v62  ;;  %6578 = vmatpush3.bf16.msra.mxu1 %v6577_v18 }
0x29cf   :  { %v5149_v31 = vpop.f32.mrb[52].mxu1 }
0x29d0   :  { %v5150_v32 = vadd.f32 %v5495_v30, %v5149_v31  ;;  %v6248_v33 = vpop.f32.mrb[53].mxu1 }
0x29d2   :  { %v5153_v34 = vmax.f32 %v5150_v32, 0.0 }
0x29d4   :  { %6254 = vmatmul.mubr.msk.f32.vlgmr.msra.gmra.mrb[54].mxu1 %vm533_vm3, %v5153_v34 }
0x2aa7   :  { %v5232_v36 = vpop.f32.mrb[54].mxu1 }
0x2aa8   :  { %v5233_v37 = vadd.f32 %v5497_v35, %v5232_v36  ;;  %v6255_v40 = vpop.f32.mrb[55].mxu1 }
0x2aaa   :  { %5237 = vst.msk [vmem:[#allocation2] sm:$0x3] %vm5236_vm7, %v5233_v37 }
0x2aab   :  { %6700 = shalt.err (!%p6697_p4)
}
0x2aac   :  { %s6701_s5 = scalar_lea.hbm %s7709_s24, 32 }
0x2aad   :  { %p6702_p5 = scmp.ne.s32.totalorder %s7709_s24, %s6701_s5  ;;  %p6705_p6 = scmp.lt.u32.totalorder %s6701_s5, %s7709_s24 }
0x2aaf   :  { %p6707_p7 = pnand %p6705_p6, %p6702_p5 }
0x2ab1   :  { %6710 = shalt.err (!%p6707_p7)
}
0x2ab2   :  { %5247 = dma.vmem_to_hbm [thread:$0]  %s5245_s22, 32, %s7709_s24, [#allocation3]  }
0x2ab3   :  { %6711 = dma.done.wait [#allocation3], 32  }
0x2ab4   :  { %6712 = vsyncadd [#allocation3], 4294967264 }
0x2ab5   :  { %5251 = vsyncpa [#allocation3], 1 }

</bundles_post_ra>
